<compile_context>
chip_gen: v5e
topology: v5e:2x2
jax: 0.10.0
libtpu: 0.0.40
codegen_flags: <defaults>
</compile_context>

<pallas_src>
import functools

import jax
import jax.numpy as jnp
from jax import lax
from jax.experimental import pallas as pl
from jax.experimental.pallas import tpu as pltpu


def _word_attention_kernel(x_ref, wqkv_ref, wc_ref, bias_ref, o_ref, *, n_heads):
    # x_ref:    (tb, W, C)     bf16   activations for this batch tile
    # wqkv_ref: (C, 3C)        bf16   fused [Wq*scale | Wk | Wv]^T (VMEM-resident)
    # wc_ref:   (C, C)         bf16   Wc^T (VMEM-resident)
    # bias_ref: (tb*W, tb*W)   f32    block-diagonal causal additive bias
    # o_ref:    (tb, W, C)     original x dtype
    tb, W, C = x_ref.shape
    R = tb * W
    hd = C // n_heads

    x2d = x_ref[...].reshape(R, C)                               # (R, C)

    # Single fused QKV projection on the MXU, f32 accumulation.
    qkv = jnp.dot(x2d, wqkv_ref[...],
                  preferred_element_type=jnp.float32)            # (R, 3C)

    bias = bias_ref[...]                                         # (R, R), f32

    ohs = []
    for h in range(n_heads):                                     # small & static
        qh = qkv[:, 0 * C + h * hd:0 * C + (h + 1) * hd]         # (R, hd)
        kh = qkv[:, 1 * C + h * hd:1 * C + (h + 1) * hd]
        vh = qkv[:, 2 * C + h * hd:2 * C + (h + 1) * hd]

        # Block-diagonal batched scores: one (R, R) matmul per head.
        s = lax.dot_general(qh, kh, (((1,), (1,)), ((), ())),
                            preferred_element_type=jnp.float32) + bias

        m = jnp.max(s, axis=-1, keepdims=True)
        p = jnp.exp(s - m)                                       # f32 softmax path
        l = jnp.sum(p, axis=-1, keepdims=True)

        oh = jnp.dot(p, vh, preferred_element_type=jnp.float32)  # (R, hd)
        # Deferred normalization on the narrow (R, hd) output; EUP reciprocal.
        oh = oh * pl.reciprocal(l, approx=True)
        ohs.append(oh)

    # concat(heads) @ Wc^T as one K=128 matmul (instead of 4 K=32 accumulations).
    o_heads = jnp.concatenate(ohs, axis=-1)                      # (R, C)
    out = jnp.dot(o_heads.astype(wc_ref.dtype), wc_ref[...],
                  preferred_element_type=jnp.float32)

    # TODO(synk): dropout (p=0.2) omitted — identity in eval mode; training-mode
    # dropout would use pltpu.prng_seed / pltpu.prng_random_bits.
    o_ref[...] = out.reshape(tb, W, C).astype(o_ref.dtype)


def pack_weights(w_attn, w_cproj, n_heads, compute_dtype=jnp.bfloat16):
    """PyTorch (out, in) weights -> fused, pre-transposed, scale-folded blocks."""
    C = w_attn.shape[1]
    hd = C // n_heads
    scale = 1.0 / (hd ** 0.5)
    wq_t = w_attn[0 * C:1 * C].T * scale        # fold softmax scale into Wq
    wk_t = w_attn[1 * C:2 * C].T
    wv_t = w_attn[2 * C:3 * C].T
    wqkv = jnp.concatenate([wq_t, wk_t, wv_t], axis=1).astype(compute_dtype)  # (C, 3C)
    wc_t = w_cproj.T.astype(compute_dtype)                                     # (C, C)
    return wqkv, wc_t


def _block_diag_causal_bias(tb, W):
    R = tb * W
    r = jnp.arange(R)
    same_batch = (r[:, None] // W) == (r[None, :] // W)
    causal = r[None, :] <= r[:, None]
    return jnp.where(same_batch & causal, 0.0, -1e30).astype(jnp.float32)


@functools.partial(jax.jit, static_argnames=("n_heads", "tb", "compute_dtype"))
def word_attention(x, w_attn, w_cproj, *, n_heads, tb=None,
                   compute_dtype=jnp.bfloat16):
    """x: (B, W, C); w_attn: (3C, C); w_cproj: (C, C)  (PyTorch (out, in))."""
    B, W, C = x.shape
    assert C % n_heads == 0
    assert w_attn.shape == (3 * C, C)
    assert w_cproj.shape == (C, C)

    wqkv, wc_t = pack_weights(w_attn, w_cproj, n_heads, compute_dtype)

    # tb*W rows per grid step: 128 is the MXU-filling granule everywhere, 256
    # better fills the v6e/v7x MXU when B is large; keep >=2 grid steps when B
    # allows so both v7x TensorCores get work.
    if tb is None:
        if B >= 32:
            tb = 16
        elif B >= 8:
            tb = 8
        else:
            tb = B
    tb = max(1, min(tb, B))
    n_blocks = -(-B // tb)
    Bp = n_blocks * tb
    if Bp != B:
        x = jnp.pad(x, ((0, Bp - B), (0, 0), (0, 0)))

    bias = _block_diag_causal_bias(tb, W)
    x_c = x.astype(compute_dtype)
    R = tb * W

    kernel = functools.partial(_word_attention_kernel, n_heads=n_heads)
    out = pl.pallas_call(
        kernel,
        out_shape=jax.ShapeDtypeStruct((Bp, W, C), x.dtype),
        grid_spec=pltpu.PrefetchScalarGridSpec(
            num_scalar_prefetch=0,
            grid=(n_blocks,),
            in_specs=[
                pl.BlockSpec((tb, W, C), lambda i: (i, 0, 0)),
                pl.BlockSpec((C, 3 * C), lambda i: (0, 0)),
                pl.BlockSpec((C, C), lambda i: (0, 0)),
                pl.BlockSpec((R, R), lambda i: (0, 0)),
            ],
            out_specs=pl.BlockSpec((tb, W, C), lambda i: (i, 0, 0)),
        ),
        compiler_params=pltpu.CompilerParams(
            dimension_semantics=("parallel",),
        ),
    )(x_c, wqkv, wc_t, bias)

    return out[:B] if Bp != B else out


def _reference_packed(x, wqkv, wc_t, n_heads):
    """Pure-JAX reference using the same packed (bf16-quantized) weights."""
    B, W, C = x.shape
    hd = C // n_heads
    qkv = jnp.einsum("bwc,cd->bwd", x.astype(jnp.float32),
                     wqkv.astype(jnp.float32), precision="highest")
    q, k, v = jnp.split(qkv, 3, axis=-1)

    def heads(t):
        return t.reshape(B, W, n_heads, hd).transpose(0, 2, 1, 3)

    q, k, v = heads(q), heads(k), heads(v)
    s = jnp.einsum("bhqd,bhkd->bhqk", q, k, precision="highest")  # scale in Wq
    causal = jnp.tril(jnp.ones((W, W), dtype=bool))
    s = jnp.where(causal[None, None], s, -jnp.inf)
    p = jax.nn.softmax(s, axis=-1)
    o = jnp.einsum("bhqk,bhkd->bhqd", p, v, precision="highest")
    o = o.transpose(0, 2, 1, 3).reshape(B, W, C)
    return jnp.einsum("bwc,cd->bwd", o, wc_t.astype(jnp.float32),
                      precision="highest")


if __name__ == "__main__":
    # Shapes from Config: batch_size=8, w_block_size=16, n_embd=128, n_heads=4.
    B, W, C, H = 8, 16, 128, 4

    key = jax.random.PRNGKey(0)
    kx, ka, kc = jax.random.split(key, 3)

    x = jax.random.normal(kx, (B, W, C), dtype=jnp.float32)
    w_attn = jax.random.normal(ka, (3 * C, C), dtype=jnp.float32) * (1.0 / C ** 0.5)
    w_cproj = jax.random.normal(kc, (C, C), dtype=jnp.float32) * (1.0 / C ** 0.5)

    out = word_attention(x, w_attn, w_cproj, n_heads=H)
    out = jax.block_until_ready(out)
    assert out.shape == (B, W, C)

    # Reference uses the same bf16-quantized inputs/weights, so the check
    # isolates kernel-specific rounding (approx reciprocal, bf16 o_heads cast,
    # accumulation order).
    wqkv, wc_t = pack_weights(w_attn, w_cproj, H)
    ref = _reference_packed(x.astype(jnp.bfloat16).astype(jnp.float32),
                            wqkv, wc_t, H)
    max_err = float(jnp.max(jnp.abs(out - ref)))
    assert jnp.allclose(out, ref, atol=3e-2, rtol=3e-2), \
        f"mismatch vs reference: {max_err}"

    print("KERNEL_OK")
</pallas_src>

<mosaic_0001>
module attributes {stable_mosaic.version = 11 : i64} {
  func.func @_word_attention_kernel(%arg0: i32, %arg1: memref<8x16x128xbf16, #tpu.memory_space<vmem>>, %arg2: memref<128x384xbf16, #tpu.memory_space<vmem>>, %arg3: memref<128x128xbf16, #tpu.memory_space<vmem>>, %arg4: memref<128x128xf32, #tpu.memory_space<vmem>>, %arg5: memref<8x16x128xf32, #tpu.memory_space<vmem>>) attributes {dimension_semantics = [#tpu.dimension_semantics<parallel>], iteration_bounds = array<i64: 1>, scalar_prefetch = 0 : i64, scratch_operands = 0 : i64, tpu.core_type = #tpu.core_type<tc>, window_params = [{transform_indices = @transform_0, window_bounds = array<i64: 8, 16, 128>}, {pipeline_mode = #tpu.pipeline_mode<synchronous>, transform_indices = @transform_1, window_bounds = array<i64: 128, 384>}, {pipeline_mode = #tpu.pipeline_mode<synchronous>, transform_indices = @transform_2, window_bounds = array<i64: 128, 128>}, {pipeline_mode = #tpu.pipeline_mode<synchronous>, transform_indices = @transform_3, window_bounds = array<i64: 128, 128>}, {transform_indices = @transform_4, window_bounds = array<i64: 8, 16, 128>}]} {
    %c0 = arith.constant 0 : index
    %c0_0 = arith.constant 0 : index
    %c0_1 = arith.constant 0 : index
    %0 = vector.load %arg1[%c0, %c0_0, %c0_1] : memref<8x16x128xbf16, #tpu.memory_space<vmem>>, vector<8x16x128xbf16>
    %1 = vector.shape_cast %0 : vector<8x16x128xbf16> to vector<128x128xbf16>
    %c0_2 = arith.constant 0 : index
    %c0_3 = arith.constant 0 : index
    %2 = vector.load %arg2[%c0_2, %c0_3] : memref<128x384xbf16, #tpu.memory_space<vmem>>, vector<128x384xbf16>
    %cst = arith.constant dense<0.000000e+00> : vector<128x384xf32>
    %3 = tpu.matmul %1, %2, %cst {dimension_numbers = #tpu.dot_dimension_numbers<[1], [0], [0], [1], [0, 0, 1, 1], [], []>} : vector<128x128xbf16>, vector<128x384xbf16>, vector<128x384xf32> -> vector<128x384xf32>
    %c0_4 = arith.constant 0 : index
    %c0_5 = arith.constant 0 : index
    %4 = vector.load %arg4[%c0_4, %c0_5] : memref<128x128xf32, #tpu.memory_space<vmem>>, vector<128x128xf32>
    %5 = vector.extract_strided_slice %3 {offsets = [0, 0], sizes = [128, 32], strides = [1, 1]} : vector<128x384xf32> to vector<128x32xf32>
    %6 = vector.extract_strided_slice %3 {offsets = [0, 128], sizes = [128, 32], strides = [1, 1]} : vector<128x384xf32> to vector<128x32xf32>
    %7 = vector.extract_strided_slice %3 {offsets = [0, 256], sizes = [128, 32], strides = [1, 1]} : vector<128x384xf32> to vector<128x32xf32>
    %cst_6 = arith.constant dense<0.000000e+00> : vector<128x128xf32>
    %8 = tpu.matmul %5, %6, %cst_6 {dimension_numbers = #tpu.dot_dimension_numbers<[1], [1], [0], [0], [0, 0, 1, 0], [], []>} : vector<128x32xf32>, vector<128x32xf32>, vector<128x128xf32> -> vector<128x128xf32>
    %9 = arith.addf %8, %4 : vector<128x128xf32>
    %cst_7 = arith.constant dense<0xFF800000> : vector<128xf32>
    %10 = vector.multi_reduction <maximumf>, %9, %cst_7 [1] : vector<128x128xf32> to vector<128xf32>
    %11 = vector.shape_cast %10 : vector<128xf32> to vector<128x1xf32>
    %12 = vector.broadcast %11 : vector<128x1xf32> to vector<128x128xf32>
    %13 = arith.subf %9, %12 : vector<128x128xf32>
    %14 = math.exp %13 : vector<128x128xf32>
    %cst_8 = arith.constant dense<0.000000e+00> : vector<128xf32>
    %15 = vector.multi_reduction <add>, %14, %cst_8 [1] : vector<128x128xf32> to vector<128xf32>
    %16 = vector.shape_cast %15 : vector<128xf32> to vector<128x1xf32>
    %cst_9 = arith.constant dense<0.000000e+00> : vector<128x32xf32>
    %17 = tpu.matmul %14, %7, %cst_9 {dimension_numbers = #tpu.dot_dimension_numbers<[1], [0], [0], [1], [0, 0, 1, 1], [], []>} : vector<128x128xf32>, vector<128x32xf32>, vector<128x32xf32> -> vector<128x32xf32>
    %18 = tpu.reciprocal %16 {approx = true} : vector<128x1xf32> -> vector<128x1xf32>
    %19 = vector.broadcast %18 : vector<128x1xf32> to vector<128x32xf32>
    %20 = arith.mulf %17, %19 : vector<128x32xf32>
    %21 = vector.extract_strided_slice %3 {offsets = [0, 32], sizes = [128, 32], strides = [1, 1]} : vector<128x384xf32> to vector<128x32xf32>
    %22 = vector.extract_strided_slice %3 {offsets = [0, 160], sizes = [128, 32], strides = [1, 1]} : vector<128x384xf32> to vector<128x32xf32>
    %23 = vector.extract_strided_slice %3 {offsets = [0, 288], sizes = [128, 32], strides = [1, 1]} : vector<128x384xf32> to vector<128x32xf32>
    %cst_10 = arith.constant dense<0.000000e+00> : vector<128x128xf32>
    %24 = tpu.matmul %21, %22, %cst_10 {dimension_numbers = #tpu.dot_dimension_numbers<[1], [1], [0], [0], [0, 0, 1, 0], [], []>} : vector<128x32xf32>, vector<128x32xf32>, vector<128x128xf32> -> vector<128x128xf32>
    %25 = arith.addf %24, %4 : vector<128x128xf32>
    %cst_11 = arith.constant dense<0xFF800000> : vector<128xf32>
    %26 = vector.multi_reduction <maximumf>, %25, %cst_11 [1] : vector<128x128xf32> to vector<128xf32>
    %27 = vector.shape_cast %26 : vector<128xf32> to vector<128x1xf32>
    %28 = vector.broadcast %27 : vector<128x1xf32> to vector<128x128xf32>
    %29 = arith.subf %25, %28 : vector<128x128xf32>
    %30 = math.exp %29 : vector<128x128xf32>
    %cst_12 = arith.constant dense<0.000000e+00> : vector<128xf32>
    %31 = vector.multi_reduction <add>, %30, %cst_12 [1] : vector<128x128xf32> to vector<128xf32>
    %32 = vector.shape_cast %31 : vector<128xf32> to vector<128x1xf32>
    %cst_13 = arith.constant dense<0.000000e+00> : vector<128x32xf32>
    %33 = tpu.matmul %30, %23, %cst_13 {dimension_numbers = #tpu.dot_dimension_numbers<[1], [0], [0], [1], [0, 0, 1, 1], [], []>} : vector<128x128xf32>, vector<128x32xf32>, vector<128x32xf32> -> vector<128x32xf32>
    %34 = tpu.reciprocal %32 {approx = true} : vector<128x1xf32> -> vector<128x1xf32>
    %35 = vector.broadcast %34 : vector<128x1xf32> to vector<128x32xf32>
    %36 = arith.mulf %33, %35 : vector<128x32xf32>
    %37 = vector.extract_strided_slice %3 {offsets = [0, 64], sizes = [128, 32], strides = [1, 1]} : vector<128x384xf32> to vector<128x32xf32>
    %38 = vector.extract_strided_slice %3 {offsets = [0, 192], sizes = [128, 32], strides = [1, 1]} : vector<128x384xf32> to vector<128x32xf32>
    %39 = vector.extract_strided_slice %3 {offsets = [0, 320], sizes = [128, 32], strides = [1, 1]} : vector<128x384xf32> to vector<128x32xf32>
    %cst_14 = arith.constant dense<0.000000e+00> : vector<128x128xf32>
    %40 = tpu.matmul %37, %38, %cst_14 {dimension_numbers = #tpu.dot_dimension_numbers<[1], [1], [0], [0], [0, 0, 1, 0], [], []>} : vector<128x32xf32>, vector<128x32xf32>, vector<128x128xf32> -> vector<128x128xf32>
    %41 = arith.addf %40, %4 : vector<128x128xf32>
    %cst_15 = arith.constant dense<0xFF800000> : vector<128xf32>
    %42 = vector.multi_reduction <maximumf>, %41, %cst_15 [1] : vector<128x128xf32> to vector<128xf32>
    %43 = vector.shape_cast %42 : vector<128xf32> to vector<128x1xf32>
    %44 = vector.broadcast %43 : vector<128x1xf32> to vector<128x128xf32>
    %45 = arith.subf %41, %44 : vector<128x128xf32>
    %46 = math.exp %45 : vector<128x128xf32>
    %cst_16 = arith.constant dense<0.000000e+00> : vector<128xf32>
    %47 = vector.multi_reduction <add>, %46, %cst_16 [1] : vector<128x128xf32> to vector<128xf32>
    %48 = vector.shape_cast %47 : vector<128xf32> to vector<128x1xf32>
    %cst_17 = arith.constant dense<0.000000e+00> : vector<128x32xf32>
    %49 = tpu.matmul %46, %39, %cst_17 {dimension_numbers = #tpu.dot_dimension_numbers<[1], [0], [0], [1], [0, 0, 1, 1], [], []>} : vector<128x128xf32>, vector<128x32xf32>, vector<128x32xf32> -> vector<128x32xf32>
    %50 = tpu.reciprocal %48 {approx = true} : vector<128x1xf32> -> vector<128x1xf32>
    %51 = vector.broadcast %50 : vector<128x1xf32> to vector<128x32xf32>
    %52 = arith.mulf %49, %51 : vector<128x32xf32>
    %53 = vector.extract_strided_slice %3 {offsets = [0, 96], sizes = [128, 32], strides = [1, 1]} : vector<128x384xf32> to vector<128x32xf32>
    %54 = vector.extract_strided_slice %3 {offsets = [0, 224], sizes = [128, 32], strides = [1, 1]} : vector<128x384xf32> to vector<128x32xf32>
    %55 = vector.extract_strided_slice %3 {offsets = [0, 352], sizes = [128, 32], strides = [1, 1]} : vector<128x384xf32> to vector<128x32xf32>
    %cst_18 = arith.constant dense<0.000000e+00> : vector<128x128xf32>
    %56 = tpu.matmul %53, %54, %cst_18 {dimension_numbers = #tpu.dot_dimension_numbers<[1], [1], [0], [0], [0, 0, 1, 0], [], []>} : vector<128x32xf32>, vector<128x32xf32>, vector<128x128xf32> -> vector<128x128xf32>
    %57 = arith.addf %56, %4 : vector<128x128xf32>
    %cst_19 = arith.constant dense<0xFF800000> : vector<128xf32>
    %58 = vector.multi_reduction <maximumf>, %57, %cst_19 [1] : vector<128x128xf32> to vector<128xf32>
    %59 = vector.shape_cast %58 : vector<128xf32> to vector<128x1xf32>
    %60 = vector.broadcast %59 : vector<128x1xf32> to vector<128x128xf32>
    %61 = arith.subf %57, %60 : vector<128x128xf32>
    %62 = math.exp %61 : vector<128x128xf32>
    %cst_20 = arith.constant dense<0.000000e+00> : vector<128xf32>
    %63 = vector.multi_reduction <add>, %62, %cst_20 [1] : vector<128x128xf32> to vector<128xf32>
    %64 = vector.shape_cast %63 : vector<128xf32> to vector<128x1xf32>
    %cst_21 = arith.constant dense<0.000000e+00> : vector<128x32xf32>
    %65 = tpu.matmul %62, %55, %cst_21 {dimension_numbers = #tpu.dot_dimension_numbers<[1], [0], [0], [1], [0, 0, 1, 1], [], []>} : vector<128x128xf32>, vector<128x32xf32>, vector<128x32xf32> -> vector<128x32xf32>
    %66 = tpu.reciprocal %64 {approx = true} : vector<128x1xf32> -> vector<128x1xf32>
    %67 = vector.broadcast %66 : vector<128x1xf32> to vector<128x32xf32>
    %68 = arith.mulf %65, %67 : vector<128x32xf32>
    %69 = tpu.concatenate %20, %36, %52, %68 in 1 : vector<128x32xf32>, vector<128x32xf32>, vector<128x32xf32>, vector<128x32xf32> -> vector<128x128xf32>
    %70 = arith.truncf %69 : vector<128x128xf32> to vector<128x128xbf16>
    %c0_22 = arith.constant 0 : index
    %c0_23 = arith.constant 0 : index
    %71 = vector.load %arg3[%c0_22, %c0_23] : memref<128x128xbf16, #tpu.memory_space<vmem>>, vector<128x128xbf16>
    %cst_24 = arith.constant dense<0.000000e+00> : vector<128x128xf32>
    %72 = tpu.matmul %70, %71, %cst_24 {dimension_numbers = #tpu.dot_dimension_numbers<[1], [0], [0], [1], [0, 0, 1, 1], [], []>} : vector<128x128xbf16>, vector<128x128xbf16>, vector<128x128xf32> -> vector<128x128xf32>
    %73 = vector.shape_cast %72 : vector<128x128xf32> to vector<8x16x128xf32>
    %c0_25 = arith.constant 0 : index
    %c0_26 = arith.constant 0 : index
    %c0_27 = arith.constant 0 : index
    %74 = vector.load %arg5[%c0_25, %c0_26, %c0_27] : memref<8x16x128xf32, #tpu.memory_space<vmem>>, vector<8x16x128xf32>
    tpu.vector_store %arg5[%c0_25, %c0_26, %c0_27], %73 {strides = array<i32>} : memref<8x16x128xf32, #tpu.memory_space<vmem>>, vector<8x16x128xf32>,
    return
  }
  func.func @transform_0(%arg0: i32) -> (i32, i32, i32) {
    %c0_i32 = arith.constant 0 : i32
    %c0_i32_0 = arith.constant 0 : i32
    %c0_i32_1 = arith.constant 0 : i32
    return %arg0, %c0_i32, %c0_i32_0 : i32, i32, i32
  }
  func.func @transform_1(%arg0: i32) -> (i32, i32) {
    %c0_i32 = arith.constant 0 : i32
    %c0_i32_0 = arith.constant 0 : i32
    %c0_i32_1 = arith.constant 0 : i32
    return %c0_i32, %c0_i32_0 : i32, i32
  }
  func.func @transform_2(%arg0: i32) -> (i32, i32) {
    %c0_i32 = arith.constant 0 : i32
    %c0_i32_0 = arith.constant 0 : i32
    %c0_i32_1 = arith.constant 0 : i32
    return %c0_i32, %c0_i32_0 : i32, i32
  }
  func.func @transform_3(%arg0: i32) -> (i32, i32) {
    %c0_i32 = arith.constant 0 : i32
    %c0_i32_0 = arith.constant 0 : i32
    %c0_i32_1 = arith.constant 0 : i32
    return %c0_i32, %c0_i32_0 : i32, i32
  }
  func.func @transform_4(%arg0: i32) -> (i32, i32, i32) {
    %c0_i32 = arith.constant 0 : i32
    %c0_i32_0 = arith.constant 0 : i32
    %c0_i32_1 = arith.constant 0 : i32
    return %arg0, %c0_i32, %c0_i32_0 : i32, i32, i32
  }
}

</mosaic_0001>

<bundles_post_ra>
// kernel: word_attention.1
= control target key start
LH: loop header
LB: loop body
LE: loop exit
PB: predicated region body
PF: predicated region fallthrough
CT: control target
= control target key end

     0   :  { %s5348_s0 = inlined_call_operand.vmem [shape: bf16[8,16,128], index: 0, kind: input, shape index: {}]   ;;  %s5349_s1 = inlined_call_operand.vmem [shape: bf16[128,384], index: 1, kind: input, shape index: {}]   ;;  %s5350_s2 = inlined_call_operand.vmem [shape: bf16[128,128], index: 2, kind: input, shape index: {}]   ;;  %s5351_s3 = inlined_call_operand.vmem [shape: f32[128,128], index: 3, kind: input, shape index: {}]   ;;  %s5352_s4 = inlined_call_operand.hbm [shape: f32[8,16,128], index: 4, kind: output, shape index: {}]  }
   0x1   :  { %v2657_v0 = vld [vmem:[%s5349_s1 + $0xa8] sm:$0xf]  ;;  %v2857_v1 = vld [vmem:[%s5349_s1 + $0xb0] sm:$0xf0]  ;;  %v2856_v2 = vld [vmem:[%s5349_s1 + $0xac] sm:$0xf] }
   0x2   :  { %v2658_v3 = vor.u32 %v2857_v1, %v2657_v0  ;;  %v2659_v4 = vld [vmem:[%s5349_s1 + $0xb4] sm:$0xf0]  ;;  %v2665_v5 = vld [vmem:[%s5349_s1 + $0xb0] sm:$0xf]  ;;  %v2858_v6 = vld [vmem:[%s5349_s1 + $0xb8] sm:$0xf0] }
   0x3   :  { %v2662_v7 = vor.u32 %v2856_v2, %v2659_v4  ;;  %v2666_v8 = vor.u32 %v2858_v6, %v2665_v5  ;;  %v2645_v9 = vld [vmem:[%s5349_s1 + $0x90] sm:$0xf]  ;;  %v2854_v10 = vld [vmem:[%s5349_s1 + $0x98] sm:$0xf0]  ;;  %v2853_v11 = vld [vmem:[%s5349_s1 + $0x94] sm:$0xf] }
   0x4   :  { %242 = vmatpush.bf16.msra.mxu0 %v2658_v3  ;;  %v2646_v12 = vor.u32 %v2854_v10, %v2645_v9  ;;  %v2647_v13 = vld [vmem:[%s5349_s1 + $0x9c] sm:$0xf0]  ;;  %v2653_v14 = vld [vmem:[%s5349_s1 + $0x98] sm:$0xf]  ;;  %v2855_v15 = vld [vmem:[%s5349_s1 + $0xa0] sm:$0xf0] }
   0x5   :  { %291 = vmatpush.bf16.msra.mxu1 %v2662_v7  ;;  %340 = vmatpush.bf16.msra.mxu2 %v2666_v8  ;;  %v2650_v16 = vor.u32 %v2853_v11, %v2647_v13  ;;  %v2654_v17 = vor.u32 %v2855_v15, %v2653_v14  ;;  %v2633_v18 = vld [vmem:[%s5349_s1 + $0x78] sm:$0xf]  ;;  %v2851_v19 = vld [vmem:[%s5349_s1 + $0x80] sm:$0xf0]  ;;  %v2850_v20 = vld [vmem:[%s5349_s1 + $0x7c] sm:$0xf] }
   0x6   :  { %v2635_v21 = vld [vmem:[%s5349_s1 + $0x84] sm:$0xf0]  ;;  %v2641_v22 = vld [vmem:[%s5349_s1 + $0x80] sm:$0xf]  ;;  %v2852_v23 = vld [vmem:[%s5349_s1 + $0x88] sm:$0xf0]  ;;  %v2634_v24 = vor.u32 %v2851_v19, %v2633_v18 }
   0x7   :  { %v2638_v25 = vor.u32 %v2850_v20, %v2635_v21  ;;  %v2642_v26 = vor.u32 %v2852_v23, %v2641_v22  ;;  %v2621_v27 = vld [vmem:[%s5349_s1 + $0x60] sm:$0xf]  ;;  %v2848_v28 = vld [vmem:[%s5349_s1 + $0x68] sm:$0xf0]  ;;  %v2847_v29 = vld [vmem:[%s5349_s1 + $0x64] sm:$0xf] }
   0x8   :  { %243 = vmatpush.bf16.msra.mxu0 %v2646_v12  ;;  %v2623_v30 = vld [vmem:[%s5349_s1 + $0x6c] sm:$0xf0]  ;;  %v2629_v31 = vld [vmem:[%s5349_s1 + $0x68] sm:$0xf]  ;;  %v2849_v32 = vld [vmem:[%s5349_s1 + $0x70] sm:$0xf0]  ;;  %v2622_v33 = vor.u32 %v2848_v28, %v2621_v27 }
   0x9   :  { %292 = vmatpush.bf16.msra.mxu1 %v2650_v16  ;;  %341 = vmatpush.bf16.msra.mxu2 %v2654_v17  ;;  %v2626_v34 = vor.u32 %v2847_v29, %v2623_v30  ;;  %v2630_v35 = vor.u32 %v2849_v32, %v2629_v31  ;;  %v2609_v36 = vld [vmem:[%s5349_s1 + $0x48] sm:$0xf]  ;;  %v2845_v37 = vld [vmem:[%s5349_s1 + $0x50] sm:$0xf0]  ;;  %v2844_v38 = vld [vmem:[%s5349_s1 + $0x4c] sm:$0xf] }
   0xa   :  { %v2611_v39 = vld [vmem:[%s5349_s1 + $0x54] sm:$0xf0]  ;;  %v2617_v40 = vld [vmem:[%s5349_s1 + $0x50] sm:$0xf]  ;;  %v2846_v41 = vld [vmem:[%s5349_s1 + $0x58] sm:$0xf0]  ;;  %v2610_v42 = vor.u32 %v2845_v37, %v2609_v36 }
   0xb   :  { %v2597_v43 = vld [vmem:[%s5349_s1 + $0x30] sm:$0xf]  ;;  %v2614_v44 = vor.u32 %v2844_v38, %v2611_v39  ;;  %v2618_v45 = vor.u32 %v2846_v41, %v2617_v40  ;;  %v2842_v46 = vld [vmem:[%s5349_s1 + $0x38] sm:$0xf0]  ;;  %v2841_v47 = vld [vmem:[%s5349_s1 + $0x34] sm:$0xf] }
   0xc   :  { %244 = vmatpush.bf16.msra.mxu0 %v2634_v24 }
   0xd   :  { %293 = vmatpush.bf16.msra.mxu1 %v2638_v25  ;;  %342 = vmatpush.bf16.msra.mxu2 %v2642_v26 }
  0x10   :  { %245 = vmatpush.bf16.msra.mxu0 %v2622_v33 }
  0x11   :  { %294 = vmatpush.bf16.msra.mxu1 %v2626_v34  ;;  %343 = vmatpush.bf16.msra.mxu2 %v2630_v35 }
  0x12   :  { %9 = vsyncpa [#allocation3], 0  ;;  %v2599_v48 = vld [vmem:[%s5349_s1 + $0x3c] sm:$0xf0]  ;;  %v2605_v49 = vld [vmem:[%s5349_s1 + $0x38] sm:$0xf]  ;;  %v2598_v51 = vor.u32 %v2842_v46, %v2597_v43 }
  0x13   :  { %v2843_v50 = vld [vmem:[%s5349_s1 + $0x40] sm:$0xf0]  ;;  %v2602_v52 = vor.u32 %v2841_v47, %v2599_v48  ;;  %v2585_v54 = vld [vmem:[%s5349_s1 + $0x18] sm:$0xf]  ;;  %v2838_v56 = vld [vmem:[%s5349_s1 + $0x1c] sm:$0xf] }
  0x14   :  { %246 = vmatpush.bf16.msra.mxu0 %v2610_v42  ;;  %v2606_v53 = vor.u32 %v2843_v50, %v2605_v49  ;;  %v2839_v55 = vld [vmem:[%s5349_s1 + $0x20] sm:$0xf0]  ;;  %v2587_v57 = vld [vmem:[%s5349_s1 + $0x24] sm:$0xf0]  ;;  %v2593_v58 = vld [vmem:[%s5349_s1 + $0x20] sm:$0xf] }
  0x15   :  { %295 = vmatpush.bf16.msra.mxu1 %v2614_v44  ;;  %344 = vmatpush.bf16.msra.mxu2 %v2618_v45  ;;  %v2840_v59 = vld [vmem:[%s5349_s1 + $0x28] sm:$0xf0]  ;;  %v2586_v60 = vor.u32 %v2839_v55, %v2585_v54  ;;  %v2590_v61 = vor.u32 %v2838_v56, %v2587_v57  ;;  %v2573_v63 = vld [vmem:[%s5349_s1] sm:$0xf]  ;;  %v2835_v1 = vld [vmem:[%s5349_s1 + $0x4] sm:$0xf] }
  0x16   :  { %v2594_v62 = vor.u32 %v2840_v59, %v2593_v58  ;;  %v2836_v0 = vld [vmem:[%s5349_s1 + $0x8] sm:$0xf0]  ;;  %v2575_v2 = vld [vmem:[%s5349_s1 + $0xc] sm:$0xf0]  ;;  %v2581_v3 = vld [vmem:[%s5349_s1 + $0x8] sm:$0xf] }
  0x17   :  { %v2837_v4 = vld [vmem:[%s5349_s1 + $0x10] sm:$0xf0]  ;;  %v2574_v5 = vor.u32 %v2836_v0, %v2573_v63  ;;  %v2578_v6 = vor.u32 %v2835_v1, %v2575_v2  ;;  %v2827_v8 = vld [vmem:[%s5348_s0] sm:$0xff]  ;;  %v2828_v9 = vld [vmem:[%s5348_s0 + $0x8] sm:$0xff]  ;;  %s3413_s22 = smov 96   ;;  %s3414_s23 = smov 32  }
  0x18   :  { %247 = vmatpush.bf16.msra.mxu0 %v2598_v51  ;;  %v2582_v7 = vor.u32 %v2837_v4, %v2581_v3  ;;  %v2829_v10 = vld [vmem:[%s5348_s0 + $0x10] sm:$0xff]  ;;  %v2830_v11 = vld [vmem:[%s5348_s0 + $0x18] sm:$0xff]  ;;  %v2831_v12 = vld [vmem:[%s5348_s0 + $0x20] sm:$0xff]  ;;  %vm405_vm0 = vcmask 261120   ;;  %vm2350_vm1 = vcmask 523264   ;;  %vm2367_vm2 = vcmask 785408  }
  0x19   :  { %296 = vmatpush.bf16.msra.mxu1 %v2602_v52  ;;  %345 = vmatpush.bf16.msra.mxu2 %v2606_v53  ;;  %v2832_v13 = vld [vmem:[%s5348_s0 + $0x28] sm:$0xff]  ;;  %v2833_v14 = vld [vmem:[%s5348_s0 + $0x30] sm:$0xff]  ;;  %v2834_v15 = vld [vmem:[%s5348_s0 + $0x38] sm:$0xff]  ;;  %s3415_s0 = smov 64   ;;  %s2527_s14 = sshll.u32 %s5352_s4, 4  ;;  %s2528_s14 = int_to_ptr.hbm [resolvable:$true] %s2527_s14 }
  0x1a   :  { %s3417_s15 = smov 128   ;;  %s3418_s16 = smov 8  }
  0x1c   :  { %248 = vmatpush.bf16.msra.mxu0 %v2586_v60 }
  0x1d   :  { %297 = vmatpush.bf16.msra.mxu1 %v2590_v61  ;;  %346 = vmatpush.bf16.msra.mxu2 %v2594_v62 }
  0x20   :  { %249 = vmatpush.bf16.msra.mxu0 %v2574_v5 }
  0x21   :  { %298 = vmatpush.bf16.msra.mxu1 %v2578_v6  ;;  %347 = vmatpush.bf16.msra.mxu2 %v2582_v7 }
  0x23   :  { %250 = vmatmul.bf16.vlgmr.msra.gmra.mxu0 %v2827_v8 }
  0x24   :  { %299 = vmatmul.bf16.vlgmr.msra.gmra.mxu1 %v2827_v8  ;;  %348 = vmatmul.bf16.vlgmr.msra.gmra.mxu2 %v2827_v8 }
  0x33   :  { %255 = vmatmul.bf16.gmra.mxu0 %v2828_v9 }
  0x34   :  { %304 = vmatmul.bf16.gmra.mxu1 %v2828_v9  ;;  %353 = vmatmul.bf16.gmra.mxu2 %v2828_v9 }
  0x43   :  { %260 = vmatmul.bf16.gmra.mxu0 %v2829_v10 }
  0x44   :  { %309 = vmatmul.bf16.gmra.mxu1 %v2829_v10  ;;  %358 = vmatmul.bf16.gmra.mxu2 %v2829_v10 }
  0x53   :  { %265 = vmatmul.bf16.gmra.mxu0 %v2830_v11 }
  0x54   :  { %314 = vmatmul.bf16.gmra.mxu1 %v2830_v11  ;;  %363 = vmatmul.bf16.gmra.mxu2 %v2830_v11 }
  0x63   :  { %270 = vmatmul.bf16.gmra.mxu0 %v2831_v12 }
  0x64   :  { %319 = vmatmul.bf16.gmra.mxu1 %v2831_v12  ;;  %368 = vmatmul.bf16.gmra.mxu2 %v2831_v12 }
  0x73   :  { %275 = vmatmul.bf16.gmra.mxu0 %v2832_v13 }
  0x74   :  { %324 = vmatmul.bf16.gmra.mxu1 %v2832_v13  ;;  %373 = vmatmul.bf16.gmra.mxu2 %v2832_v13 }
  0x83   :  { %280 = vmatmul.bf16.gmra.mxu0 %v2833_v14 }
  0x84   :  { %329 = vmatmul.bf16.gmra.mxu1 %v2833_v14  ;;  %378 = vmatmul.bf16.gmra.mxu2 %v2833_v14 }
  0x93   :  { %285 = vmatmul.bf16.gmra.mxu0 %v2834_v15 }
  0x94   :  { %334 = vmatmul.bf16.gmra.mxu1 %v2834_v15  ;;  %383 = vmatmul.bf16.gmra.mxu2 %v2834_v15 }
  0xa0   :  { %v3612_v16 = vpop.f32.mrf.mxu0 }
  0xa1   :  { %v3614_v17 = vpop.f32.mrf.mxu1  ;;  %776 = vrot.lane.b32.xlu2 %v3612_v16, %s3413_s22 }
  0xa2   :  { %1724 = vrot.lane.b32.xlu1 %v3614_v17, %s3414_s23  ;;  %808 = vrot.lane.b32.xlu0 %v3614_v17, %s3413_s22 }
  0xa7   :  { %v3622_v18 = vpop.f32.mrf.mxu2 }
  0xa8   :  { %v3634_v21 = vpop.f32.mrf.mxu0 }
  0xa9   :  { %v3624_v19 = vpop.f32.mrf.mxu1  ;;  %1242 = vrot.lane.b32.xlu2 %v3612_v16, %s3415_s0 }
  0xaa   :  { %1274 = vrot.lane.b32.xlu0 %v3614_v17, %s3415_s0  ;;  %1276 = vrot.lane.b32.xlu1 %v3624_v19, %s3415_s0 }
  0xaf   :  { %v3632_v20 = vpop.f32.mrf.mxu2 }
  0xb0   :  { %v3648_v24 = vpack.i.bf16 %v3622_v18, %v3632_v20  ;;  %v3660_v27 = vpop.f32.mrf.mxu0 }
  0xb1   :  { %v3636_v22 = vpop.f32.mrf.mxu1  ;;  %810 = vrot.lane.b32.xlu2 %v3624_v19, %s3413_s22 }
  0xb2   :  { %1692 = vrot.lane.b32.xlu0 %v3612_v16, %s3414_s23  ;;  %1244 = vrot.lane.b32.xlu1 %v3634_v21, %s3415_s0 }
  0xb7   :  { %v3644_v23 = vpop.f32.mrf.mxu2 }
  0xb8   :  { %v3682_v32 = vpop.f32.mrf.mxu0 }
  0xb9   :  { %v3650_v25 = vpop.f32.mrf.mxu1  ;;  %1726 = vrot.lane.b32.xlu2 %v3624_v19, %s3414_s23 }
  0xba   :  { %2882 = vrot.lane.b32.xlu1 %v3648_v24, %s3413_s22  ;;  %778 = vrot.lane.b32.xlu0 %v3634_v21, %s3413_s22 }
  0xbf   :  { %v3658_v26 = vpop.f32.mrf.mxu2 }
  0xc0   :  { %v3704_v36 = vpack.i.bf16 %v3644_v23, %v3658_v26  ;;  %v3716_v39 = vpop.f32.mrf.mxu0 }
  0xc1   :  { %v3662_v28 = vpop.f32.mrf.mxu1  ;;  %1694 = vrot.lane.b32.xlu2 %v3634_v21, %s3414_s23 }
  0xc2   :  { %1728 = vrot.lane.b32.xlu0 %v3636_v22, %s3414_s23  ;;  %780 = vrot.lane.b32.xlu1 %v3660_v27, %s3413_s22 }
  0xc7   :  { %v3670_v29 = vpop.f32.mrf.mxu2 }
  0xc8   :  { %v3728_v42 = vpop.f32.mrf.mxu0 }
  0xc9   :  { %v3672_v30 = vpop.f32.mrf.mxu1  ;;  %1278 = vrot.lane.b32.xlu2 %v3636_v22, %s3415_s0 }
  0xca   :  { %1246 = vrot.lane.b32.xlu0 %v3660_v27, %s3415_s0  ;;  %812 = vrot.lane.b32.xlu1 %v3636_v22, %s3413_s22 }
  0xcf   :  { %v3680_v31 = vpop.f32.mrf.mxu2 }
  0xd0   :  { %v3742_v46 = vpop.f32.mrf.mxu0  ;;  %v3768_v52 = vpack.i.bf16 %v3670_v29, %v3680_v31 }
  0xd1   :  { %v3684_v33 = vpop.f32.mrf.mxu1  ;;  %782 = vrot.lane.b32.xlu2 %v3682_v32, %s3413_s22 }
  0xd2   :  { %814 = vrot.lane.b32.xlu0 %v3650_v25, %s3413_s22  ;;  %1696 = vrot.lane.b32.xlu1 %v3660_v27, %s3414_s23 }
  0xd7   :  { %v3692_v34 = vpop.f32.mrf.mxu2 }
  0xd8   :  { %v3800_v62 = vpop.f32.mrf.mxu0 }
  0xd9   :  { %v3694_v35 = vpop.f32.mrf.mxu1  ;;  %1698 = vrot.lane.b32.xlu2 %v3682_v32, %s3414_s23 }
  0xda   :  { %1280 = vrot.lane.b32.xlu0 %v3650_v25, %s3415_s0  ;;  %1730 = vrot.lane.b32.xlu1 %v3650_v25, %s3414_s23 }
  0xdf   :  { %v3706_v37 = vpop.f32.mrf.mxu2 }
  0xe0   :  { %v3822_v4 = vpop.f32.mrf.mxu0  ;;  %v3829_v5 = vpack.i.bf16 %v3692_v34, %v3706_v37 }
  0xe1   :  { %v3708_v38 = vpop.f32.mrf.mxu1  ;;  %2887 = vrot.lane.b32.xlu2 %v3704_v36, %s3413_s22 }
  0xe2   :  { %1282 = vrot.lane.b32.xlu1 %v3662_v28, %s3415_s0  ;;  %1248 = vrot.lane.b32.xlu0 %v3682_v32, %s3415_s0 }
  0xe7   :  { %v3718_v40 = vpop.f32.mrf.mxu2 }
  0xe8   :  { %v3851_v9 = vpop.f32.mrf.mxu0 }
  0xe9   :  { %v3720_v41 = vpop.f32.mrf.mxu1  ;;  %816 = vrot.lane.b32.xlu2 %v3662_v28, %s3413_s22 }
  0xea   :  { %1250 = vrot.lane.b32.xlu1 %v3716_v39, %s3415_s0  ;;  %784 = vrot.lane.b32.xlu0 %v3716_v39, %s3413_s22 }
  0xef   :  { %v3730_v43 = vpop.f32.mrf.mxu2 }
  0xf1   :  { %v3732_v44 = vpop.f32.mrf.mxu1  ;;  %1732 = vrot.lane.b32.xlu2 %v3662_v28, %s3414_s23 }
  0xf2   :  { %1700 = vrot.lane.b32.xlu0 %v3716_v39, %s3414_s23  ;;  %1702 = vrot.lane.b32.xlu1 %v3728_v42, %s3414_s23 }
  0xf7   :  { %v3740_v45 = vpop.f32.mrf.mxu2 }
  0xf9   :  { %v3744_v47 = vpop.f32.mrf.mxu1  ;;  %786 = vrot.lane.b32.xlu2 %v3728_v42, %s3413_s22 }
  0xfa   :  { %818 = vrot.lane.b32.xlu0 %v3672_v30, %s3413_s22  ;;  %788 = vrot.lane.b32.xlu1 %v3742_v46, %s3413_s22 }
  0xfb   :  { %v3752_v48 = vpop.permute.xlu2 %776 }
  0xff   :  { %v3754_v49 = vpop.f32.mrf.mxu2 }
 0x101   :  { %v3756_v50 = vpop.f32.mrf.mxu1  ;;  %1284 = vrot.lane.b32.xlu2 %v3672_v30, %s3415_s0 }
 0x102   :  { %1734 = vrot.lane.b32.xlu0 %v3672_v30, %s3414_s23  ;;  %1736 = vrot.lane.b32.xlu1 %v3684_v33, %s3414_s23 }
 0x103   :  { %v3764_v51 = vpop.permute.xlu2 %1242 }
 0x107   :  { %v3770_v53 = vpop.f32.mrf.mxu2 }
 0x109   :  { %v3772_v54 = vpop.f32.mrf.mxu1  ;;  %1252 = vrot.lane.b32.xlu2 %v3728_v42, %s3415_s0 }
 0x10a   :  { %2892 = vrot.lane.b32.xlu0 %v3768_v52, %s3413_s22  ;;  %822 = vrot.lane.b32.xlu1 %v3694_v35, %s3413_s22 }
 0x10b   :  { %v3780_v55 = vpop.permute.xlu2 %810 }
 0x10f   :  { %v3782_v56 = vpop.f32.mrf.mxu2 }
 0x111   :  { %v3784_v57 = vpop.f32.mrf.mxu1  ;;  %820 = vrot.lane.b32.xlu2 %v3684_v33, %s3413_s22 }
 0x112   :  { %1286 = vrot.lane.b32.xlu0 %v3684_v33, %s3415_s0  ;;  %1288 = vrot.lane.b32.xlu1 %v3694_v35, %s3415_s0 }
 0x113   :  { %v3792_v58 = vpop.permute.xlu2 %1726 }
 0x114   :  { %5353 = vst [vmem:[#allocation5_spill] sm:$0xff] %v3792_v58  ;;  %v3794_v59 = vpop.permute.xlu1 %1724  ;;  %v3796_v60 = vpop.permute.xlu0 %808 }
 0x115   :  { %5354 = vst [vmem:[#allocation6_spill] sm:$0xff] %v3794_v59 }
 0x117   :  { %v3798_v61 = vpop.f32.mrf.mxu2 }
 0x119   :  { %v3802_v63 = vpop.f32.mrf.mxu1  ;;  %1704 = vrot.lane.b32.xlu2 %v3742_v46, %s3414_s23 }
 0x11a   :  { %2667 = vmatpush.xpose.msk.msra.mxu3 %vm405_vm0, %v3802_v63  ;;  %1254 = vrot.lane.b32.xlu0 %v3742_v46, %s3415_s0 }
 0x11b   :  { %1706 = vrot.lane.b32.xlu1 %v3800_v62, %s3414_s23  ;;  %v3812_v0 = vpop.permute.xlu2 %1694 }
 0x11c   :  { %5355 = vst [vmem:[#allocation7_spill] sm:$0xff] %v3812_v0  ;;  %v3814_v1 = vpop.permute.xlu0 %1274  ;;  %v3816_v2 = vpop.permute.xlu1 %1276 }
 0x11e   :  { %2668 = vmatpush.xpose.msk.msra.mxu3 %vm405_vm0, %v3784_v57 }
 0x11f   :  { %v3820_v3 = vpop.f32.mrf.mxu2 }
 0x120   :  { %679 = vmatpush.msrb.mxu0 %v3820_v3  ;;  %v2916_v59 = vpack.i.bf16 %v3798_v61, %v3820_v3 }
 0x121   :  { %1738 = vrot.lane.b32.xlu2 %v3694_v35, %s3414_s23 }
 0x122   :  { %2669 = vmatpush.xpose.msk.msra.mxu3 %vm405_vm0, %v3772_v54  ;;  %680 = vmatpush.msrb.mxu0 %v3798_v61 }
 0x123   :  { %2897 = vrot.lane.b32.xlu1 %v3829_v5, %s3413_s22  ;;  %790 = vrot.lane.b32.xlu0 %v3800_v62, %s3413_s22  ;;  %v3838_v6 = vpop.permute.xlu2 %1278 }
 0x124   :  { %681 = vmatpush.msrb.mxu0 %v3782_v56  ;;  %v3841_v7 = vpop.permute.xlu0 %1692  ;;  %v3843_v8 = vpop.permute.xlu1 %1244 }
 0x125   :  { %5356 = vst [vmem:[#allocation8_spill] sm:$0xff] %v3841_v7 }
 0x126   :  { %2670 = vmatpush.xpose.msk.msra.mxu3 %vm405_vm0, %v3756_v50  ;;  %682 = vmatpush.msrb.mxu0 %v3770_v53 }
 0x128   :  { %683 = vmatpush.msrb.mxu0 %v3754_v49 }
 0x129   :  { %792 = vrot.lane.b32.xlu2 %v3822_v4, %s3413_s22 }
 0x12a   :  { %2671 = vmatpush.xpose.msk.msra.mxu3 %vm405_vm0, %v3744_v47  ;;  %684 = vmatpush.msrb.mxu0 %v3740_v45 }
 0x12b   :  { %1256 = vrot.lane.b32.xlu0 %v3800_v62, %s3415_s0  ;;  %794 = vrot.lane.b32.xlu1 %v3851_v9, %s3413_s22  ;;  %v3860_v10 = vpop.permute.xlu2 %782 }
 0x12c   :  { %685 = vmatpush.msrb.mxu0 %v3730_v43  ;;  %v3863_v11 = vpop.permute.xlu1 %2882  ;;  %v3865_v12 = vpop.permute.xlu0 %778 }
 0x12e   :  { %2672 = vmatpush.xpose.msk.msra.mxu3 %vm405_vm0, %v3732_v44  ;;  %686 = vmatpush.msrb.mxu0 %v3718_v40 }
 0x130   :  { %687 = vmatpush.msrb.mxu0 %v3706_v37 }
 0x131   :  { %1290 = vrot.lane.b32.xlu2 %v3708_v38, %s3415_s0 }
 0x132   :  { %2673 = vmatpush.xpose.msk.msra.mxu3 %vm405_vm0, %v3720_v41  ;;  %688 = vmatpush.msrb.mxu0 %v3692_v34  ;;  %v3907_v34 = vpop.f32.mrf.mxu0 }
 0x133   :  { %824 = vrot.lane.b32.xlu0 %v3708_v38, %s3413_s22  ;;  %1742 = vrot.lane.b32.xlu1 %v3720_v41, %s3414_s23  ;;  %v3880_v13 = vpop.permute.xlu2 %1698 }
 0x134   :  { %5357 = vst [vmem:[#allocation9_spill] sm:$0xff] %v3880_v13  ;;  %689 = vmatpush.msrb.mxu0 %v3680_v31  ;;  %v3883_v14 = vpop.permute.xlu0 %1728  ;;  %v3885_v15 = vpop.permute.xlu1 %780 }
 0x135   :  { %5358 = vst [vmem:[#allocation10_spill] sm:$0xff] %v3883_v14 }
 0x136   :  { %2674 = vmatpush.xpose.msk.msra.mxu3 %vm405_vm0, %v3708_v38  ;;  %690 = vmatpush.msrb.mxu0 %v3670_v29 }
 0x138   :  { %691 = vmatpush.msrb.mxu0 %v3658_v26 }
 0x139   :  { %1258 = vrot.lane.b32.xlu2 %v3822_v4, %s3415_s0 }
 0x13a   :  { %2675 = vmatpush.xpose.msk.msra.mxu3 %vm405_vm0, %v3694_v35  ;;  %692 = vmatpush.msrb.mxu0 %v3644_v23 }
 0x13b   :  { %1740 = vrot.lane.b32.xlu0 %v3708_v38, %s3414_s23  ;;  %1260 = vrot.lane.b32.xlu1 %v3851_v9, %s3415_s0  ;;  %v3900_v31 = vpop.permute.xlu2 %2887 }
 0x13c   :  { %693 = vmatpush.msrb.mxu0 %v3632_v20  ;;  %v3903_v29 = vpop.permute.xlu0 %1246  ;;  %v3905_v26 = vpop.permute.xlu1 %812 }
 0x13e   :  { %2676 = vmatpush.xpose.msk.msra.mxu3 %vm405_vm0, %v3684_v33  ;;  %694 = vmatpush.msrb.mxu0 %v3622_v18  ;;  %v3928_v18 = vpop.f32.mrf.mxu0 }
 0x141   :  { %826 = vrot.lane.b32.xlu2 %v3720_v41, %s3413_s22 }
 0x142   :  { %2677 = vmatpush.xpose.msk.msra.mxu3 %vm405_vm0, %v3672_v30 }
 0x143   :  { %1708 = vrot.lane.b32.xlu0 %v3822_v4, %s3414_s23  ;;  %1294 = vrot.lane.b32.xlu1 %v3732_v44, %s3415_s0  ;;  %v3920_v20 = vpop.permute.xlu2 %816 }
 0x144   :  { %v3922_v23 = vpop.permute.xlu0 %814  ;;  %v3924_v35 = vpop.permute.xlu1 %1696 }
 0x145   :  { %5359 = vst [vmem:[#allocation11_spill] sm:$0xff] %v3924_v35 }
 0x146   :  { %2678 = vmatpush.xpose.msk.msra.mxu3 %vm405_vm0, %v3662_v28  ;;  %v3948_v28 = vpack.i.bf16 %v3718_v40, %v3730_v43 }
 0x149   :  { %1710 = vrot.lane.b32.xlu2 %v3851_v9, %s3414_s23 }
 0x14a   :  { %2679 = vmatpush.xpose.msk.msra.mxu3 %vm405_vm0, %v3650_v25  ;;  %v3952_v25 = vpop.f32.mrf.mxu0 }
 0x14b   :  { %1292 = vrot.lane.b32.xlu0 %v3720_v41, %s3415_s0  ;;  %830 = vrot.lane.b32.xlu1 %v3744_v47, %s3413_s22  ;;  %v3938_v30 = vpop.permute.xlu2 %1732 }
 0x14c   :  { %5360 = vst [vmem:[#allocation12_spill] sm:$0xff] %v3938_v30  ;;  %v3940_v33 = vpop.permute.xlu0 %1280  ;;  %v3942_v37 = vpop.permute.xlu1 %1730 }
 0x14d   :  { %5361 = vst [vmem:[#allocation13_spill] sm:$0xff] %v3942_v37 }
 0x14e   :  { %2680 = vmatpush.xpose.msk.msra.mxu3 %vm405_vm0, %v3636_v22 }
 0x151   :  { %2902 = vrot.lane.b32.xlu2 %v3948_v28, %s3413_s22 }
 0x152   :  { %2681 = vmatpush.xpose.msk.msra.mxu3 %vm405_vm0, %v3624_v19  ;;  %v3996_v13 = vpop.f32.mrf.mxu0 }
 0x153   :  { %796 = vrot.lane.b32.xlu0 %v3907_v34, %s3413_s22  ;;  %800 = vrot.lane.b32.xlu1 %v3952_v25, %s3413_s22  ;;  %v3960_v38 = vpop.permute.xlu2 %786 }
 0x154   :  { %5362 = vst [vmem:[#allocation14_spill] sm:$0xff] %v3960_v38  ;;  %v3962_v22 = vpop.permute.xlu1 %1282  ;;  %v3964_v40 = vpop.permute.xlu0 %1248 }
 0x155   :  { %5363 = vst [vmem:[#allocation15_spill] sm:$0xff] %v3964_v40 }
 0x156   :  { %2682 = vmatpush.xpose.msk.msra.mxu3 %vm405_vm0, %v3614_v17 }
 0x159   :  { %2683 = vmatmul.msk.f32.vlgmr.msra.gmra.mxu3 %vm405_vm0, %v3612_v16  ;;  %1744 = vrot.lane.b32.xlu2 %v3732_v44, %s3414_s23 }
 0x15b   :  { %828 = vrot.lane.b32.xlu0 %v3732_v44, %s3413_s22  ;;  %1748 = vrot.lane.b32.xlu1 %v3756_v50, %s3414_s23  ;;  %v3976_v19 = vpop.permute.xlu2 %1284 }
 0x15c   :  { %v3978_v41 = vpop.permute.xlu1 %1250  ;;  %v3980_v43 = vpop.permute.xlu0 %784 }
 0x15d   :  { %5364 = vst [vmem:[#allocation16_spill] sm:$0xff] %v3978_v41 }
 0x15e   :  { %5365 = vst [vmem:[#allocation17_spill] sm:$0xff] %v3980_v43 }
 0x161   :  { %2684 = vmatmul.msk.f32.gmra.mxu3 %vm405_vm0, %v3634_v21  ;;  %798 = vrot.lane.b32.xlu2 %v3928_v18, %s3413_s22 }
 0x163   :  { %1262 = vrot.lane.b32.xlu0 %v3907_v34, %s3415_s0  ;;  %834 = vrot.lane.b32.xlu1 %v3772_v54, %s3413_s22  ;;  %v3990_v16 = vpop.permute.xlu2 %1252 }
 0x164   :  { %5366 = vst [vmem:[#allocation18_spill] sm:$0xff] %v3990_v16  ;;  %v3992_v17 = vpop.permute.xlu0 %1700  ;;  %v3994_v44 = vpop.permute.xlu1 %1702 }
 0x165   :  { %5367 = vst [vmem:[#allocation19_spill] sm:$0xff] %v3992_v17 }
 0x166   :  { %5368 = vst [vmem:[#allocation20_spill] sm:$0xff] %v3994_v44  ;;  %v4012_v44 = vpop.f32.mrf.mxu0 }
 0x169   :  { %2685 = vmatmul.msk.f32.gmra.mxu3 %vm405_vm0, %v3660_v27  ;;  %1296 = vrot.lane.b32.xlu2 %v3744_v47, %s3415_s0  ;;  %v4018_v27 = vpack.i.bf16 %v3740_v45, %v3754_v49 }
 0x16b   :  { %1746 = vrot.lane.b32.xlu0 %v3744_v47, %s3414_s23  ;;  %1300 = vrot.lane.b32.xlu1 %v3772_v54, %s3415_s0  ;;  %v4006_v21 = vpop.permute.xlu2 %820  ;;  %v4024_v47 = vpack.i.bf16 %v3770_v53, %v3782_v56 }
 0x16c   :  { %v4008_v35 = vpop.permute.xlu0 %818  ;;  %v4010_v17 = vpop.permute.xlu1 %788 }
 0x16d   :  { %5369 = vst [vmem:[#allocation21_spill] sm:$0xff] %v4010_v17 }
 0x16e   :  { %v4040_v45 = vpop.f32.mrf.mxu0 }
 0x171   :  { %2686 = vmatmul.msk.f32.gmra.mxu3 %vm405_vm0, %v3682_v32  ;;  %1750 = vrot.lane.b32.xlu2 %v3772_v54, %s3414_s23 }
 0x173   :  { %2907 = vrot.lane.b32.xlu0 %v4018_v27, %s3413_s22  ;;  %2912 = vrot.lane.b32.xlu1 %v4024_v47, %s3413_s22  ;;  %v4030_v0 = vpop.permute.xlu2 %1704 }
 0x174   :  { %5370 = vst [vmem:[#allocation22_spill] sm:$0xff] %v4030_v0  ;;  %v4032_v32 = vpop.permute.xlu0 %1734  ;;  %v4034_v7 = vpop.permute.xlu1 %1736 }
 0x175   :  { %5371 = vst [vmem:[#allocation23_spill] sm:$0xff] %v4032_v32 }
 0x176   :  { %5372 = vst [vmem:[#allocation24_spill] sm:$0xff] %v4034_v7 }
 0x179   :  { %2687 = vmatmul.msk.f32.gmra.mxu3 %vm405_vm0, %v3716_v39  ;;  %804 = vrot.lane.b32.xlu2 %v4012_v44, %s3413_s22 }
 0x17b   :  { %832 = vrot.lane.b32.xlu0 %v3756_v50, %s3413_s22  ;;  %806 = vrot.lane.b32.xlu1 %v4040_v45, %s3413_s22  ;;  %v4046_v49 = vpop.permute.xlu2 %1738 }
 0x17c   :  { %5373 = vst [vmem:[#allocation25_spill] sm:$0xff] %v4046_v49  ;;  %v4048_v53 = vpop.permute.xlu0 %2892  ;;  %v4050_v54 = vpop.permute.xlu1 %822 }
 0x181   :  { %2688 = vmatmul.msk.f32.gmra.mxu3 %vm405_vm0, %v3728_v42  ;;  %836 = vrot.lane.b32.xlu2 %v3784_v57, %s3413_s22 }
 0x183   :  { %1298 = vrot.lane.b32.xlu0 %v3756_v50, %s3415_s0  ;;  %838 = vrot.lane.b32.xlu1 %v3802_v63, %s3413_s22  ;;  %v4060_v39 = vpop.permute.xlu2 %792 }
 0x184   :  { %5374 = vst [vmem:[#allocation26_spill] sm:$0xff] %v4060_v39  ;;  %v4062_v56 = vpop.permute.xlu0 %1286  ;;  %v4064_v0 = vpop.permute.xlu1 %1288 }
 0x189   :  { %2689 = vmatmul.msk.f32.gmra.mxu3 %vm405_vm0, %v3742_v46  ;;  %1302 = vrot.lane.b32.xlu2 %v3784_v57, %s3415_s0 }
 0x18b   :  { %802 = vrot.lane.b32.xlu0 %v3996_v13, %s3413_s22  ;;  %1304 = vrot.lane.b32.xlu1 %v3802_v63, %s3415_s0  ;;  %v4074_v42 = vpop.permute.xlu2 %1290 }
 0x18c   :  { %v4076_v50 = vpop.permute.xlu0 %1254 }
 0x18d   :  { %5375 = vst [vmem:[#allocation27_spill] sm:$0xff] %v4076_v50  ;;  %v4078_v39 = vpop.permute.xlu1 %1706 }
 0x18e   :  { %5376 = vst [vmem:[#allocation28_spill] sm:$0xff] %v4078_v39 }
 0x191   :  { %2690 = vmatmul.msk.f32.gmra.mxu3 %vm405_vm0, %v3800_v62  ;;  %2917 = vrot.lane.b32.xlu2 %v2916_v59, %s3413_s22 }
 0x193   :  { %1752 = vrot.lane.b32.xlu0 %v3784_v57, %s3414_s23  ;;  %1712 = vrot.lane.b32.xlu1 %v3907_v34, %s3414_s23  ;;  %v4089_v46 = vpop.permute.xlu2 %1258 }
 0x194   :  { %5377 = vst [vmem:[#allocation29_spill] sm:$0xff] %v4089_v46 }
 0x195   :  { %v4091_v58 = vpop.permute.xlu1 %2897  ;;  %v4093_v50 = vpop.permute.xlu0 %790 }
 0x196   :  { %5378 = vst [vmem:[#allocation30_spill] sm:$0xff] %v4093_v50 }
 0x199   :  { %2691 = vmatmul.msk.f32.gmra.mxu3 %vm405_vm0, %v3822_v4  ;;  %1264 = vrot.lane.b32.xlu2 %v3928_v18, %s3415_s0 }
 0x19b   :  { %1754 = vrot.lane.b32.xlu0 %v3802_v63, %s3414_s23  ;;  %1266 = vrot.lane.b32.xlu1 %v3952_v25, %s3415_s0  ;;  %v4103_v57 = vpop.permute.xlu2 %826 }
 0x19d   :  { %v4105_v61 = vpop.permute.xlu0 %1256  ;;  %v4107_v62 = vpop.permute.xlu1 %794 }
 0x19e   :  { %5379 = vst [vmem:[#allocation31_spill] sm:$0xff] %v4105_v61 }
 0x19f   :  { %5380 = vst [vmem:[#allocation32_spill] sm:$0xff] %v4107_v62 }
 0x1a1   :  { %2692 = vmatmul.msk.f32.gmra.mxu3 %vm405_vm0, %v3851_v9  ;;  %1716 = vrot.lane.b32.xlu2 %v3952_v25, %s3414_s23 }
 0x1a3   :  { %1714 = vrot.lane.b32.xlu0 %v3928_v18, %s3414_s23  ;;  %1718 = vrot.lane.b32.xlu1 %v3996_v13, %s3414_s23  ;;  %v4117_v63 = vpop.permute.xlu2 %1710 }
 0x1a4   :  { %5381 = vst [vmem:[#allocation33_spill] sm:$0xff] %v4117_v63 }
 0x1a5   :  { %v4119_v3 = vpop.permute.xlu0 %824  ;;  %v4121_v4 = vpop.permute.xlu1 %1742 }
 0x1a9   :  { %2693 = vmatmul.msk.f32.gmra.mxu3 %vm405_vm0, %v3907_v34  ;;  %1270 = vrot.lane.b32.xlu2 %v4012_v44, %s3415_s0 }
 0x1ab   :  { %1268 = vrot.lane.b32.xlu0 %v3996_v13, %s3415_s0  ;;  %1272 = vrot.lane.b32.xlu1 %v4040_v45, %s3415_s0  ;;  %v4131_v9 = vpop.permute.xlu2 %2902 }
 0x1ad   :  { %v4133_v39 = vpop.permute.xlu0 %1740  ;;  %v4135_v63 = vpop.permute.xlu1 %1260 }
 0x1ae   :  { %5382 = vst [vmem:[#allocation34_spill] sm:$0xff] %v4135_v63 }
 0x1b1   :  { %2694 = vmatmul.msk.f32.gmra.mxu3 %vm405_vm0, %v3928_v18  ;;  %1722 = vrot.lane.b32.xlu2 %v4040_v45, %s3414_s23 }
 0x1b3   :  { %1720 = vrot.lane.b32.xlu0 %v4012_v44, %s3414_s23  ;;  %2927 = vrot.lane.b32.xlu1 %v4024_v47, %s3414_s23  ;;  %v4145_v34 = vpop.permute.xlu2 %1744 }
 0x1b5   :  { %v4147_v46 = vpop.permute.xlu0 %1708  ;;  %v4149_v62 = vpop.permute.xlu1 %1294 }
 0x1b6   :  { %5383 = vst [vmem:[#allocation35_spill] sm:$0xff] %v4147_v46 }
 0x1b9   :  { %2695 = vmatmul.msk.f32.gmra.mxu3 %vm405_vm0, %v3952_v25  ;;  %2932 = vrot.lane.b32.xlu2 %v2916_v59, %s3415_s0 }
 0x1bb   :  { %2922 = vrot.lane.b32.xlu0 %v2916_v59, %s3414_s23  ;;  %2942 = vrot.lane.b32.xlu1 %v4024_v47, %s3415_s0  ;;  %v4157_v18 = vpop.permute.xlu2 %798 }
 0x1bc   :  { %5384 = vst [vmem:[#allocation36_spill] sm:$0xff] %v4157_v18 }
 0x1bd   :  { %v4159_v63 = vpop.permute.xlu0 %1292  ;;  %v4161_v61 = vpop.permute.xlu1 %830 }
 0x1c1   :  { %2696 = vmatmul.msk.f32.gmra.mxu3 %vm405_vm0, %v3996_v13  ;;  %2947 = vrot.lane.b32.xlu2 %v3948_v28, %s3414_s23 }
 0x1c3   :  { %2937 = vrot.lane.b32.xlu0 %v4018_v27, %s3414_s23  ;;  %2957 = vrot.lane.b32.xlu1 %v3829_v5, %s3414_s23  ;;  %v4171_v59 = vpop.permute.xlu2 %1296 }
 0x1c5   :  { %v4173_v25 = vpop.permute.xlu0 %796  ;;  %v4175_v47 = vpop.permute.xlu1 %800 }
 0x1c6   :  { %5385 = vst [vmem:[#allocation37_spill] sm:$0xff] %v4173_v25 }
 0x1c7   :  { %5386 = vst [vmem:[#allocation38_spill] sm:$0xff] %v4175_v47 }
 0x1c9   :  { %2697 = vmatmul.msk.f32.gmra.mxu3 %vm405_vm0, %v4012_v44  ;;  %2962 = vrot.lane.b32.xlu2 %v3948_v28, %s3415_s0 }
 0x1cb   :  { %2952 = vrot.lane.b32.xlu0 %v4018_v27, %s3415_s0  ;;  %2967 = vrot.lane.b32.xlu1 %v3768_v52, %s3414_s23  ;;  %v4185_v13 = vpop.permute.xlu2 %1750 }
 0x1cd   :  { %v4187_v46 = vpop.permute.xlu0 %828  ;;  %v4189_v18 = vpop.permute.xlu1 %1748 }
 0x1d1   :  { %2698 = vmatmul.msk.f32.gmra.mxu3 %vm405_vm0, %v4040_v45  ;;  %2972 = vrot.lane.b32.xlu2 %v3829_v5, %s3415_s0 }
 0x1d3   :  { %2987 = vrot.lane.b32.xlu0 %v3648_v24, %s3414_s23  ;;  %2992 = vrot.lane.b32.xlu1 %v3704_v36, %s3415_s0  ;;  %v4199_v28 = vpop.permute.xlu2 %804 }
 0x1d4   :  { %5387 = vst [vmem:[#allocation39_spill] sm:$0xff] %v4199_v28 }
 0x1d5   :  { %v4201_v44 = vpop.permute.xlu0 %1262  ;;  %v835_v27 = vpop.permute.xlu1 %834 }
 0x1d6   :  { %5388 = vst [vmem:[#allocation40_spill] sm:$0xff] %v4201_v44 }
 0x1d9   :  { %2977 = vrot.lane.b32.xlu2 %v3704_v36, %s3414_s23 }
 0x1db   :  { %v837_v47 = vpop.permute.xlu2 %836 }
 0x1dc   :  { %v519_v25 = vpop.f32.mrf.mxu3 }
 0x1dd   :  { %v4205_v45 = vpop.permute.xlu0 %1746  ;;  %v4207_v50 = vpop.permute.xlu1 %1300 }
 0x1e1   :  { %2982 = vrot.lane.b32.xlu2 %v3768_v52, %s3415_s0 }
 0x1e3   :  { %v1303_v5 = vpop.permute.xlu2 %1302 }
 0x1e4   :  { %v522_v14 = vpop.f32.mrf.mxu3 }
 0x1e5   :  { %v2908_v16 = vpop.permute.xlu0 %2907  ;;  %v2913_v17 = vpop.permute.xlu1 %2912 }
 0x1e6   :  { %v2914_v38 = vunpack.i.l.bf16 %v2913_v17  ;;  %v2915_v32 = vunpack.i.h.bf16 %v2913_v17  ;;  %v2909_v40 = vunpack.i.l.bf16 %v2908_v16  ;;  %v2905_v17 = vunpack.i.h.bf16 %v4131_v9 }
 0x1e9   :  { %2997 = vrot.lane.b32.xlu2 %v3648_v24, %s3415_s0  ;;  %v2910_v24 = vunpack.i.h.bf16 %v2908_v16 }
 0x1eb   :  { %v2918_v28 = vpop.permute.xlu2 %2917 }
 0x1ec   :  { %v525_v44 = vpop.f32.mrf.mxu3  ;;  %v2919_v37 = vunpack.i.l.bf16 %v2918_v28  ;;  %v2920_v36 = vunpack.i.h.bf16 %v2918_v28  ;;  %v2904_v28 = vunpack.i.l.bf16 %v4131_v9  ;;  %v2900_v9 = vunpack.i.h.bf16 %v4091_v58 }
 0x1ed   :  { %v833_v30 = vpop.permute.xlu0 %832  ;;  %v4213_v41 = vpop.permute.xlu1 %806 }
 0x1ee   :  { %1145 = vmatpush.msrb.mxu2 %v2919_v37  ;;  %v4222_v37 = vld [vmem:[%s5351_s3] sm:$0xff] }
 0x1f0   :  { %1146 = vmatpush.msrb.mxu2 %v2920_v36 }
 0x1f2   :  { %1147 = vmatpush.msrb.mxu2 %v2914_v38  ;;  %v4227_v38 = vld [vmem:[%s5351_s3 + $0x10] sm:$0xff] }
 0x1f3   :  { %v4215_v52 = vpop.permute.xlu2 %1264 }
 0x1f4   :  { %v528_v7 = vpop.f32.mrf.mxu3  ;;  %1148 = vmatpush.msrb.mxu2 %v2915_v32  ;;  %v4237_v32 = vadd.f32 %v525_v44, %v4227_v38  ;;  %v4255_v44 = vld [vmem:[%s5351_s3 + $0x18] sm:$0xff] }
 0x1f5   :  { %v1299_v43 = vpop.permute.xlu0 %1298  ;;  %v839_v49 = vpop.permute.xlu1 %838 }
 0x1f6   :  { %2699 = vmatpush.xpose.msk.msrb.mxu1 %vm405_vm0, %v839_v49  ;;  %1149 = vmatpush.msrb.mxu2 %v2909_v40  ;;  %v4232_v40 = vadd.f32 %v519_v25, %v4222_v37  ;;  %v4250_v25 = vld [vmem:[%s5351_s3 + $0x8] sm:$0xff] }
 0x1f8   :  { %1150 = vmatpush.msrb.mxu2 %v2910_v24  ;;  %v2899_v24 = vunpack.i.l.bf16 %v4091_v58  ;;  %v4261_v58 = vadd.f32 %v522_v14, %v4250_v25  ;;  %v2889_v14 = vunpack.i.l.bf16 %v3900_v31 }
 0x1fa   :  { %2700 = vmatpush.xpose.msk.msrb.mxu1 %vm405_vm0, %v837_v47  ;;  %1151 = vmatpush.msrb.mxu2 %v2904_v28  ;;  %v2894_v28 = vunpack.i.l.bf16 %v4048_v53 }
 0x1fb   :  { %v4234_v16 = vpop.permute.xlu2 %1716 }
 0x1fc   :  { %5389 = vst [vmem:[#allocation41_spill] sm:$0xff] %v4234_v16  ;;  %v531_v49 = vpop.f32.mrf.mxu3  ;;  %1152 = vmatpush.msrb.mxu2 %v2905_v17  ;;  %v4266_v17 = vadd.f32 %v528_v7, %v4255_v44  ;;  %v2890_v7 = vunpack.i.h.bf16 %v3900_v31 }
 0x1fd   :  { %v4239_v36 = vpop.permute.xlu0 %802  ;;  %567 = vmax.xlane.f32.xlu0 %v4232_v40  ;;  %571 = vmax.xlane.f32.xlu1 %v4237_v32  ;;  %v1305_v47 = vpop.permute.xlu1 %1304 }
 0x1fe   :  { %2701 = vmatpush.xpose.msk.msrb.mxu1 %vm405_vm0, %v835_v27  ;;  %2731 = vmatpush.xpose.msk.msrb.mxu3 %vm405_vm0, %v1305_v47 }
 0x1ff   :  { %1153 = vmatpush.msrb.mxu2 %v2899_v24  ;;  %v2895_v24 = vunpack.i.h.bf16 %v4048_v53  ;;  %v2884_v53 = vunpack.i.l.bf16 %v3863_v11 }
 0x201   :  { %1154 = vmatpush.msrb.mxu2 %v2900_v9  ;;  %v2885_v9 = vunpack.i.h.bf16 %v3863_v11 }
 0x202   :  { %2702 = vmatpush.xpose.msk.msrb.mxu1 %vm405_vm0, %v833_v30  ;;  %2732 = vmatpush.xpose.msk.msrb.mxu3 %vm405_vm0, %v1303_v5  ;;  %v4287_v5 = vld [vmem:[%s5351_s3 + $0x30] sm:$0xff] }
 0x203   :  { %1155 = vmatpush.msrb.mxu2 %v2894_v28  ;;  %v4263_v27 = vpop.permute.xlu2 %1270 }
 0x204   :  { %v534_v47 = vpop.f32.mrf.mxu3 }
 0x205   :  { %v4269_v16 = vpop.permute.xlu0 %1752  ;;  %569 = vmax.xlane.f32.xlu0 %v4261_v58  ;;  %573 = vmax.xlane.f32.xlu1 %v4266_v17  ;;  %v4273_v30 = vpop.permute.xlu1 %1712 }
 0x206   :  { %2703 = vmatpush.xpose.msk.msrb.mxu1 %vm405_vm0, %v4161_v61  ;;  %1156 = vmatpush.msrb.mxu2 %v2895_v24  ;;  %v4303_v24 = vld [vmem:[%s5351_s3 + $0x20] sm:$0xff] }
 0x207   :  { %2733 = vmatpush.xpose.msk.msrb.mxu3 %vm405_vm0, %v4207_v50  ;;  %v4311_v11 = vadd.f32 %v531_v49, %v4303_v24 }
 0x208   :  { %1157 = vmatpush.msrb.mxu2 %v2889_v14 }
 0x20a   :  { %2704 = vmatpush.xpose.msk.msrb.mxu1 %vm405_vm0, %v4187_v46  ;;  %1158 = vmatpush.msrb.mxu2 %v2890_v7 }
 0x20b   :  { %2734 = vmatpush.xpose.msk.msrb.mxu3 %vm405_vm0, %v1299_v43  ;;  %v4290_v61 = vpop.permute.xlu2 %1722  ;;  %v4319_v43 = vld [vmem:[%s5351_s3 + $0x38] sm:$0xff] }
 0x20c   :  { %5390 = vst [vmem:[#allocation42_spill] sm:$0xff] %v4290_v61  ;;  %1159 = vmatpush.msrb.mxu2 %v2884_v53  ;;  %v537_v50 = vpop.f32.mrf.mxu3 }
 0x20d   :  { %v4293_v31 = vpop.permute.xlu0 %1754  ;;  %v4295_v28 = vpop.permute.xlu1 %1266  ;;  %v4298_v46 = vadd.f32 %v537_v50, %v4287_v5  ;;  %v4333_v50 = vld [vmem:[%s5351_s3 + $0x28] sm:$0xff] }
 0x20e   :  { %2705 = vmatpush.xpose.msk.msrb.mxu1 %vm405_vm0, %v4103_v57  ;;  %1160 = vmatpush.msrb.mxu2 %v2885_v9 }
 0x20f   :  { %2735 = vmatpush.xpose.msk.msrb.mxu3 %vm405_vm0, %v4171_v59  ;;  %579 = vmax.xlane.f32.xlu0 %v4298_v46 }
 0x212   :  { %2706 = vmatpush.xpose.msk.msrb.mxu1 %vm405_vm0, %v4119_v3  ;;  %575 = vmax.xlane.f32.xlu2 %v4311_v11 }
 0x213   :  { %2736 = vmatpush.xpose.msk.msrb.mxu3 %vm405_vm0, %v4149_v62  ;;  %v2933_v57 = vpop.permute.xlu2 %2932  ;;  %v4341_v62 = vadd.f32 %v534_v47, %v4333_v50 }
 0x214   :  { %v540_v59 = vpop.f32.mrf.mxu3  ;;  %v2935_v14 = vunpack.i.h.bf16 %v2933_v57  ;;  %v2934_v7 = vunpack.i.l.bf16 %v2933_v57 }
 0x215   :  { %v4323_v53 = vpop.permute.xlu0 %1714  ;;  %v4325_v49 = vpop.permute.xlu1 %1718  ;;  %v4328_v3 = vadd.f32 %v540_v59, %v4319_v43 }
 0x216   :  { %2707 = vmatpush.xpose.msk.msrb.mxu1 %vm405_vm0, %v4050_v54  ;;  %1595 = vmatpush.msra.mxu0 %v2934_v7 }
 0x217   :  { %2737 = vmatpush.xpose.msk.msrb.mxu3 %vm405_vm0, %v4159_v63  ;;  %581 = vmax.xlane.f32.xlu1 %v4328_v3  ;;  %v4353_v63 = vld [vmem:[%s5351_s3 + $0x40] sm:$0xff] }
 0x218   :  { %1596 = vmatpush.msra.mxu0 %v2935_v14 }
 0x21a   :  { %2708 = vmatpush.xpose.msk.msrb.mxu1 %vm405_vm0, %v4006_v21  ;;  %577 = vmax.xlane.f32.xlu2 %v4341_v62 }
 0x21b   :  { %2738 = vmatpush.xpose.msk.msrb.mxu3 %vm405_vm0, %v4074_v42  ;;  %v4348_v54 = vpop.permute.xlu2 %2947  ;;  %v4372_v42 = vld [vmem:[%s5351_s3 + $0x48] sm:$0xff] }
 0x21c   :  { %v543_v9 = vpop.f32.mrf.mxu3 }
 0x21d   :  { %v4355_v57 = vpop.permute.xlu0 %1268  ;;  %v4357_v47 = vpop.permute.xlu1 %1272  ;;  %v4364_v21 = vadd.f32 %v543_v9, %v4353_v63 }
 0x21e   :  { %2709 = vmatpush.xpose.msk.msrb.mxu1 %vm405_vm0, %v4008_v35 }
 0x21f   :  { %2739 = vmatpush.xpose.msk.msrb.mxu3 %vm405_vm0, %v4064_v0 }
 0x222   :  { %2710 = vmatpush.xpose.msk.msrb.mxu1 %vm405_vm0, %v3920_v20  ;;  %583 = vmax.xlane.f32.xlu2 %v4364_v21 }
 0x223   :  { %2740 = vmatpush.xpose.msk.msrb.mxu3 %vm405_vm0, %v4062_v56  ;;  %v4383_v20 = vpop.permute.xlu2 %2962  ;;  %v4393_v56 = vld [vmem:[%s5351_s3 + $0x50] sm:$0xff] }
 0x224   :  { %v546_v35 = vpop.f32.mrf.mxu3 }
 0x225   :  { %v4376_v59 = vpop.permute.xlu0 %1720  ;;  %v2928_v0 = vpop.permute.xlu1 %2927  ;;  %v4379_v14 = vadd.f32 %v546_v35, %v4372_v42 }
 0x226   :  { %5391 = vst [vmem:[#allocation43_spill] sm:$0xff] %v4376_v59  ;;  %2711 = vmatpush.xpose.msk.msrb.mxu1 %vm405_vm0, %v3922_v23 }
 0x227   :  { %2741 = vmatpush.xpose.msk.msrb.mxu3 %vm405_vm0, %v3976_v19  ;;  %585 = vmax.xlane.f32.xlu0 %v4379_v14 }
 0x22a   :  { %2712 = vmatpush.xpose.msk.msrb.mxu1 %vm405_vm0, %v3905_v26 }
 0x22b   :  { %2742 = vmatpush.xpose.msk.msrb.mxu3 %vm405_vm0, %v3962_v22  ;;  %v4405_v22 = vpop.permute.xlu2 %2972 }
 0x22c   :  { %v549_v7 = vpop.f32.mrf.mxu3 }
 0x22d   :  { %v4398_v23 = vadd.f32 %v549_v7, %v4393_v56  ;;  %v2923_v9 = vpop.permute.xlu0 %2922  ;;  %v2943_v35 = vpop.permute.xlu1 %2942  ;;  %v4412_v7 = vld [vmem:[%s5351_s3 + $0x58] sm:$0xff] }
 0x22e   :  { %v2924_v19 = vunpack.i.l.bf16 %v2923_v9  ;;  %v2944_v61 = vunpack.i.l.bf16 %v2943_v35  ;;  %2713 = vmatpush.xpose.msk.msrb.mxu1 %vm405_vm0, %v3780_v55  ;;  %v2925_v26 = vunpack.i.h.bf16 %v2923_v9  ;;  %v2945_v59 = vunpack.i.h.bf16 %v2943_v35 }
 0x22f   :  { %2743 = vmatpush.xpose.msk.msrb.mxu3 %vm405_vm0, %v3940_v33  ;;  %587 = vmax.xlane.f32.xlu1 %v4398_v23  ;;  %v2929_v55 = vunpack.i.l.bf16 %v2928_v0 }
 0x230   :  { %2045 = vmatpush.msra.mxu2 %v2924_v19  ;;  %1597 = vmatpush.msra.mxu0 %v2944_v61  ;;  %v2930_v61 = vunpack.i.h.bf16 %v2928_v0 }
 0x232   :  { %2714 = vmatpush.xpose.msk.msrb.mxu1 %vm405_vm0, %v3796_v60  ;;  %1598 = vmatpush.msra.mxu0 %v2945_v59 }
 0x233   :  { %2744 = vmatpush.xpose.msk.msrb.mxu3 %vm405_vm0, %v3838_v6  ;;  %2046 = vmatpush.msra.mxu2 %v2925_v26  ;;  %v2978_v0 = vpop.permute.xlu2 %2977 }
 0x234   :  { %v552_v33 = vpop.f32.mrf.mxu3 }
 0x235   :  { %2047 = vmatpush.msra.mxu2 %v2929_v55  ;;  %v2938_v9 = vpop.permute.xlu0 %2937  ;;  %2715 = vmatmul.msk.f32.vlgmr.msrb.gmra.mxu1 %vm405_vm0, %v3752_v48  ;;  %v4421_v60 = vadd.f32 %v552_v33, %v4412_v7  ;;  %v2958_v35 = vpop.permute.xlu1 %2957  ;;  %v4431_v48 = vld [vmem:[%s5351_s3 + $0x60] sm:$0xff] }
 0x236   :  { %2763 = vmatpush.xpose.msk.msra.mxu1 %vm405_vm0, %v4293_v31  ;;  %v2939_v59 = vunpack.i.l.bf16 %v2938_v9  ;;  %v2940_v6 = vunpack.i.h.bf16 %v2938_v9  ;;  %v2949_v31 = vunpack.i.l.bf16 %v4348_v54  ;;  %v2965_v9 = vunpack.i.h.bf16 %v4383_v20 }
 0x237   :  { %2745 = vmatpush.xpose.msk.msrb.mxu3 %vm405_vm0, %v3816_v2  ;;  %2048 = vmatpush.msra.mxu2 %v2930_v61  ;;  %v2964_v61 = vunpack.i.l.bf16 %v4383_v20  ;;  %v2979_v20 = vunpack.i.l.bf16 %v2978_v0 }
 0x238   :  { %589 = vmax.xlane.f32.xlu2 %v4421_v60 }
 0x239   :  { %2049 = vmatpush.msra.mxu2 %v2939_v59 }
 0x23a   :  { %2764 = vmatpush.xpose.msk.msra.mxu1 %vm405_vm0, %v4269_v16  ;;  %v2950_v16 = vunpack.i.h.bf16 %v4348_v54  ;;  %v2960_v54 = vunpack.i.h.bf16 %v2958_v35 }
 0x23b   :  { %2746 = vmatpush.xpose.msk.msrb.mxu3 %vm405_vm0, %v3814_v1  ;;  %2050 = vmatpush.msra.mxu2 %v2940_v6  ;;  %v2959_v1 = vunpack.i.l.bf16 %v2958_v35  ;;  %v2983_v59 = vpop.permute.xlu2 %2982 }
 0x23c   :  { %v555_v2 = vpop.f32.mrf.mxu3 }
 0x23d   :  { %2051 = vmatpush.msra.mxu2 %v2949_v31  ;;  %v4440_v19 = vadd.f32 %v555_v2, %v4431_v48  ;;  %v2953_v26 = vpop.permute.xlu0 %2952  ;;  %2716 = vmatmul.msk.f32.gmra.mxu1 %vm405_vm0, %v3865_v12  ;;  %v2968_v33 = vpop.permute.xlu1 %2967  ;;  %v4453_v12 = vld [vmem:[%s5351_s3 + $0x68] sm:$0xff]  ;;  %v2974_v31 = vunpack.i.l.bf16 %v4405_v22 }
 0x23e   :  { %2765 = vmatpush.xpose.msk.msra.mxu1 %vm405_vm0, %v4185_v13  ;;  %v2954_v55 = vunpack.i.l.bf16 %v2953_v26  ;;  %2747 = vmatmul.msk.f32.vlgmr.msrb.gmra.mxu3 %vm405_vm0, %v3764_v51  ;;  %v2955_v13 = vunpack.i.h.bf16 %v2953_v26  ;;  %v2969_v51 = vunpack.i.l.bf16 %v2968_v33  ;;  %v2970_v35 = vunpack.i.h.bf16 %v2968_v33  ;;  %v4483_v33 = vld [vmem:[%s5351_s3 + $0x78] sm:$0xff] }
 0x23f   :  { %2052 = vmatpush.msra.mxu2 %v2950_v16  ;;  %591 = vmax.xlane.f32.xlu0 %v4440_v19  ;;  %v2984_v16 = vunpack.i.l.bf16 %v2983_v59 }
 0x240   :  { %1599 = vmatpush.msra.mxu0 %v2954_v55 }
 0x241   :  { %2053 = vmatpush.msra.mxu2 %v2959_v1 }
 0x242   :  { %2766 = vmatpush.xpose.msk.msra.mxu1 %vm405_vm0, %v4189_v18  ;;  %1600 = vmatpush.msra.mxu0 %v2955_v13 }
 0x243   :  { %2054 = vmatpush.msra.mxu2 %v2960_v54  ;;  %v5392_v54 = vld [vmem:[#allocation25_spill] sm:$0xff] }
 0x244   :  { %1601 = vmatpush.msra.mxu0 %v2964_v61  ;;  %v558_v18 = vpop.f32.mrf.mxu3  ;;  %v5393_v61 = vld [vmem:[#allocation17_spill] sm:$0xff] }
 0x245   :  { %2055 = vmatpush.msra.mxu2 %v2969_v51  ;;  %2717 = vmatmul.msk.f32.gmra.mxu1 %vm405_vm0, %v3885_v15  ;;  %v4461_v6 = vadd.f32 %v558_v18, %v4453_v12  ;;  %v2988_v2 = vpop.permute.xlu0 %2987  ;;  %v2980_v15 = vunpack.i.h.bf16 %v2978_v0  ;;  %v2993_v55 = vpop.permute.xlu1 %2992  ;;  %v5396_v18 = vld [vmem:[#allocation23_spill] sm:$0xff] }
 0x246   :  { %2767 = vmatpush.xpose.msk.msra.mxu1 %vm405_vm0, %v4205_v45  ;;  %2748 = vmatmul.msk.f32.gmra.mxu3 %vm405_vm0, %v3843_v8  ;;  %v2975_v45 = vunpack.i.h.bf16 %v4405_v22  ;;  %v2989_v26 = vunpack.i.l.bf16 %v2988_v2  ;;  %v2985_v8 = vunpack.i.h.bf16 %v2983_v59  ;;  %v2990_v22 = vunpack.i.h.bf16 %v2988_v2  ;;  %v2998_v0 = vpop.permute.xlu2 %2997  ;;  %v5397_v59 = vld [vmem:[#allocation14_spill] sm:$0xff] }
 0x247   :  { %1602 = vmatpush.msra.mxu0 %v2965_v9  ;;  %2056 = vmatpush.msra.mxu2 %v2970_v35  ;;  %v2995_v13 = vunpack.i.h.bf16 %v2993_v55  ;;  %v5395_v9 = vld [vmem:[#allocation24_spill] sm:$0xff]  ;;  %v5402_v2 = vld [vmem:[#allocation18_spill] sm:$0xff] }
 0x248   :  { %593 = vmax.xlane.f32.xlu1 %v4461_v6  ;;  %v5398_v35 = vld [vmem:[#allocation16_spill] sm:$0xff] }
 0x249   :  { %1603 = vmatpush.msra.mxu0 %v2974_v31  ;;  %2057 = vmatpush.msra.mxu2 %v2979_v20  ;;  %v5399_v31 = vld [vmem:[#allocation12_spill] sm:$0xff]  ;;  %v5400_v20 = vld [vmem:[#allocation13_spill] sm:$0xff] }
 0x24a   :  { %2768 = vmatpush.xpose.msk.msra.mxu1 %vm405_vm0, %v4145_v34  ;;  %v2994_v34 = vunpack.i.l.bf16 %v2993_v55  ;;  %v5406_v55 = vld [vmem:[#allocation27_spill] sm:$0xff] }
 0x24b   :  { %1604 = vmatpush.msra.mxu0 %v2975_v45  ;;  %2058 = vmatpush.msra.mxu2 %v2980_v15  ;;  %v5401_v45 = vld [vmem:[#allocation21_spill] sm:$0xff]  ;;  %v5403_v15 = vld [vmem:[#allocation10_spill] sm:$0xff] }
 0x24c   :  { %v4472_v1 = vpop.f32.mrf.mxu3 }
 0x24d   :  { %1605 = vmatpush.msra.mxu0 %v2984_v16  ;;  %2059 = vmatpush.msra.mxu2 %v2989_v26  ;;  %v5404_v16 = vld [vmem:[#allocation5_spill] sm:$0xff]  ;;  %v5405_v26 = vld [vmem:[#allocation30_spill] sm:$0xff] }
 0x24e   :  { %2769 = vmatpush.xpose.msk.msra.mxu1 %vm405_vm0, %v4121_v4  ;;  %2749 = vmatmul.msk.f32.gmra.mxu3 %vm405_vm0, %v3903_v29  ;;  %v2999_v4 = vunpack.i.l.bf16 %v2998_v0 }
 0x24f   :  { %2718 = vmatmul.msk.f32.gmra.mxu1 %vm405_vm0, %v3860_v10  ;;  %1606 = vmatpush.msra.mxu0 %v2985_v8  ;;  %v3000_v10 = vunpack.i.h.bf16 %v2998_v0  ;;  %v5407_v8 = vld [vmem:[#allocation6_spill] sm:$0xff] }
 0x250   :  { %2060 = vmatpush.msra.mxu2 %v2990_v22 }
 0x251   :  { %1607 = vmatpush.msra.mxu0 %v2994_v34 }
 0x252   :  { %2770 = vmatpush.xpose.msk.msra.mxu1 %vm405_vm0, %v4133_v39  ;;  %v5394_v39 = vld [vmem:[#allocation15_spill] sm:$0xff] }
 0x253   :  { %1608 = vmatpush.msra.mxu0 %v2995_v13  ;;  %v5408_v13 = vld [vmem:[#allocation26_spill] sm:$0xff] }
 0x254   :  { %v564_v29 = vpop.f32.mrf.mxu3 }
 0x255   :  { %1609 = vmatpush.msra.mxu0 %v2999_v4  ;;  %v4490_v51 = vadd.f32 %v564_v29, %v4483_v33  ;;  %v5409_v4 = vld [vmem:[#allocation31_spill] sm:$0xff] }
 0x256   :  { %2771 = vmatpush.xpose.msk.msra.mxu1 %vm405_vm0, %v5392_v54  ;;  %2750 = vmatmul.msk.f32.gmra.mxu3 %vm405_vm0, %v5394_v39 }
 0x257   :  { %2719 = vmatmul.msk.f32.gmra.mxu1 %vm405_vm0, %v5393_v61  ;;  %1610 = vmatpush.msra.mxu0 %v3000_v10 }
 0x258   :  { %597 = vmax.xlane.f32.xlu0 %v4490_v51 }
 0x25a   :  { %2772 = vmatpush.xpose.msk.msra.mxu1 %vm405_vm0, %v5395_v9 }
 0x25e   :  { %2773 = vmatpush.xpose.msk.msra.mxu1 %vm405_vm0, %v5396_v18  ;;  %2751 = vmatmul.msk.f32.gmra.mxu3 %vm405_vm0, %v5398_v35  ;;  %v5411_v18 = vld [vmem:[#allocation29_spill] sm:$0xff] }
 0x25f   :  { %2720 = vmatmul.msk.f32.gmra.mxu1 %vm405_vm0, %v5397_v59 }
 0x262   :  { %2774 = vmatpush.xpose.msk.msra.mxu1 %vm405_vm0, %v5399_v31 }
 0x266   :  { %2775 = vmatpush.xpose.msk.msra.mxu1 %vm405_vm0, %v5400_v20  ;;  %2752 = vmatmul.msk.f32.gmra.mxu3 %vm405_vm0, %v5402_v2  ;;  %v5412_v20 = vld [vmem:[#allocation37_spill] sm:$0xff] }
 0x267   :  { %2721 = vmatmul.msk.f32.gmra.mxu1 %vm405_vm0, %v5401_v45 }
 0x26a   :  { %2776 = vmatpush.xpose.msk.msra.mxu1 %vm405_vm0, %v5403_v15 }
 0x26e   :  { %2777 = vmatpush.xpose.msk.msra.mxu1 %vm405_vm0, %v5404_v16  ;;  %2753 = vmatmul.msk.f32.gmra.mxu3 %vm405_vm0, %v5406_v55  ;;  %v5415_v55 = vld [vmem:[#allocation40_spill] sm:$0xff] }
 0x26f   :  { %2722 = vmatmul.msk.f32.gmra.mxu1 %vm405_vm0, %v5405_v26  ;;  %v5414_v26 = vld [vmem:[#allocation36_spill] sm:$0xff] }
 0x270   :  { %v568_v22 = vpop.xlane.xlu0 %567  ;;  %v572_v10 = vpop.xlane.xlu1 %571 }
 0x271   :  { %v599_v34 = vsub.f32 %v4232_v40, %v568_v22  ;;  %v601_v9 = vsub.f32 %v4237_v32, %v572_v10  ;;  %v5410_v40 = vld [vmem:[#allocation32_spill] sm:$0xff]  ;;  %v5413_v32 = vld [vmem:[#allocation34_spill] sm:$0xff] }
 0x272   :  { %2778 = vmatpush.xpose.msk.msra.mxu1 %vm405_vm0, %v5407_v8 }
 0x273   :  { %v615_v0 = vmul.f32 1.442695, %v599_v34  ;;  %v619_v59 = vmul.f32 1.442695, %v601_v9 }
 0x275   :  { %3121 = vpow2.f32 %v615_v0  ;;  %v5416_v0 = vld [vmem:[#allocation38_spill] sm:$0xff] }
 0x276   :  { %2754 = vmatmul.msk.f32.gmra.mxu3 %vm405_vm0, %v5409_v4 }
 0x277   :  { %2723 = vmatmul.msk.f32.gmra.mxu1 %vm405_vm0, %v5408_v13 }
 0x278   :  { %v570_v54 = vpop.xlane.xlu0 %569  ;;  %v574_v35 = vpop.xlane.xlu1 %573 }
 0x279   :  { %v600_v29 = vsub.f32 %v4261_v58, %v570_v54  ;;  %v602_v58 = vsub.f32 %v4266_v17, %v574_v35 }
 0x27b   :  { %v4527_v61 = vpop.eup %3121  ;;  %v617_v39 = vmul.f32 1.442695, %v600_v29  ;;  %v621_v2 = vmul.f32 1.442695, %v602_v58 }
 0x27c   :  { %695 = vmatmul.f32.vlgmr.msrb.gmra.mxu0 %v4527_v61 }
 0x27d   :  { %3123 = vpow2.f32 %v617_v39  ;;  %v5417_v39 = vld [vmem:[#allocation39_spill] sm:$0xff] }
 0x27e   :  { %2755 = vmatmul.msk.f32.gmra.mxu3 %vm405_vm0, %v5411_v18  ;;  %3125 = vpow2.f32 %v619_v59 }
 0x27f   :  { %2724 = vmatmul.msk.f32.gmra.mxu1 %vm405_vm0, %v5410_v40  ;;  %3127 = vpow2.f32 %v621_v2  ;;  %v5419_v2 = vld [vmem:[#allocation7_spill] sm:$0xff] }
 0x282   :  { %v580_v13 = vpop.xlane.xlu0 %579 }
 0x283   :  { %v4535_v31 = vpop.eup %3123  ;;  %v605_v10 = vsub.f32 %v4298_v46, %v580_v13 }
 0x284   :  { %698 = vmatmul.f32.gmra.mxu0 %v4535_v31  ;;  %v4543_v15 = vpop.eup %3125 }
 0x285   :  { %v576_v45 = vpop.xlane.xlu2 %575  ;;  %v4551_v22 = vpop.eup %3127 }
 0x286   :  { %2756 = vmatmul.msk.f32.gmra.mxu3 %vm405_vm0, %v5413_v32  ;;  %v603_v16 = vsub.f32 %v4311_v11, %v576_v45 }
 0x287   :  { %2725 = vmatmul.msk.f32.gmra.mxu1 %vm405_vm0, %v5412_v20 }
 0x288   :  { %v623_v17 = vmul.f32 1.442695, %v603_v16 }
 0x28a   :  { %3129 = vpow2.f32 %v623_v17  ;;  %v582_v54 = vpop.xlane.xlu1 %581 }
 0x28c   :  { %701 = vmatmul.f32.gmra.mxu0 %v4543_v15 }
 0x28d   :  { %v578_v8 = vpop.xlane.xlu2 %577 }
 0x28e   :  { %2757 = vmatmul.msk.f32.gmra.mxu3 %vm405_vm0, %v5415_v55  ;;  %v604_v34 = vsub.f32 %v4341_v62, %v578_v8  ;;  %v627_v62 = vmul.f32 1.442695, %v605_v10 }
 0x28f   :  { %2726 = vmatmul.msk.f32.gmra.mxu1 %vm405_vm0, %v5414_v26 }
 0x290   :  { %v625_v11 = vmul.f32 1.442695, %v604_v34  ;;  %v4559_v4 = vpop.eup %3129  ;;  %v5420_v34 = vld [vmem:[#allocation11_spill] sm:$0xff] }
 0x292   :  { %3131 = vpow2.f32 %v625_v11 }
 0x293   :  { %3133 = vpow2.f32 %v627_v62 }
 0x294   :  { %704 = vmatmul.f32.gmra.mxu0 %v4551_v22 }
 0x296   :  { %2758 = vmatmul.msk.f32.gmra.mxu3 %vm405_vm0, %v4215_v52  ;;  %v606_v52 = vsub.f32 %v4328_v3, %v582_v54 }
 0x297   :  { %2727 = vmatmul.msk.f32.gmra.mxu1 %vm405_vm0, %v5416_v0 }
 0x298   :  { %v4567_v29 = vpop.eup %3131  ;;  %v629_v46 = vmul.f32 1.442695, %v606_v52 }
 0x299   :  { %v4575_v9 = vpop.eup %3133 }
 0x29a   :  { %3135 = vpow2.f32 %v629_v46  ;;  %v586_v40 = vpop.xlane.xlu0 %585 }
 0x29b   :  { %v608_v35 = vsub.f32 %v4379_v14, %v586_v40 }
 0x29c   :  { %707 = vmatmul.f32.gmra.mxu0 %v4559_v4 }
 0x29e   :  { %2759 = vmatmul.msk.f32.gmra.mxu3 %vm405_vm0, %v4295_v28 }
 0x29f   :  { %2728 = vmatmul.msk.f32.gmra.mxu1 %vm405_vm0, %v4239_v36  ;;  %v584_v36 = vpop.xlane.xlu2 %583 }
 0x2a0   :  { %v607_v28 = vsub.f32 %v4364_v21, %v584_v36  ;;  %v4583_v59 = vpop.eup %3135  ;;  %v5418_v21 = vld [vmem:[#allocation8_spill] sm:$0xff] }
 0x2a2   :  { %v631_v3 = vmul.f32 1.442695, %v607_v28  ;;  %v588_v58 = vpop.xlane.xlu1 %587 }
 0x2a4   :  { %710 = vmatmul.f32.gmra.mxu0 %v4567_v29  ;;  %3137 = vpow2.f32 %v631_v3 }
 0x2a6   :  { %2760 = vmatmul.msk.f32.gmra.mxu3 %vm405_vm0, %v4355_v57 }
 0x2a7   :  { %2729 = vmatmul.msk.f32.gmra.mxu1 %vm405_vm0, %v5417_v39  ;;  %v5421_v39 = vld [vmem:[#allocation9_spill] sm:$0xff] }
 0x2aa   :  { %v4600_v32 = vpop.eup %3137 }
 0x2ab   :  { %v590_v55 = vpop.xlane.xlu2 %589 }
 0x2ac   :  { %713 = vmatmul.f32.gmra.mxu0 %v4575_v9 }
 0x2ae   :  { %2761 = vmatmul.msk.f32.gmra.mxu3 %vm405_vm0, %v4263_v27  ;;  %v633_v27 = vmul.f32 1.442695, %v608_v35  ;;  %v5422_v35 = vld [vmem:[#allocation19_spill] sm:$0xff] }
 0x2af   :  { %2730 = vmatmul.msk.f32.gmra.mxu1 %vm405_vm0, %v4213_v41  ;;  %v4598_v41 = vld [vmem:[%s5351_s3 + $0x70] sm:$0xff] }
 0x2b0   :  { %v4607_v45 = vadd.f32 %v4472_v1, %v4598_v41  ;;  %3139 = vpow2.f32 %v633_v27 }
 0x2b2   :  { %v921_v18 = vpop.f32.mrf.mxu1  ;;  %v592_v13 = vpop.xlane.xlu0 %591 }
 0x2b3   :  { %v4586_v57 = vadd.f32 %v921_v18, %v4222_v37 }
 0x2b4   :  { %716 = vmatmul.f32.gmra.mxu0 %v4583_v59 }
 0x2b5   :  { %969 = vmax.xlane.f32.xlu2 %v4586_v57 }
 0x2b6   :  { %2762 = vmatmul.msk.f32.gmra.mxu3 %vm405_vm0, %v4357_v47  ;;  %v609_v47 = vsub.f32 %v4398_v23, %v588_v58  ;;  %v4615_v8 = vpop.eup %3139  ;;  %v610_v23 = vsub.f32 %v4421_v60, %v590_v55 }
 0x2b7   :  { %2779 = vmatmul.msk.f32.vlgmr.msra.gmra.mxu1 %vm405_vm0, %v5418_v21 }
 0x2b8   :  { %v635_v16 = vmul.f32 1.442695, %v609_v47  ;;  %v637_v0 = vmul.f32 1.442695, %v610_v23 }
 0x2ba   :  { %v924_v20 = vpop.f32.mrf.mxu1  ;;  %3141 = vpow2.f32 %v635_v16 }
 0x2bb   :  { %v4603_v14 = vadd.f32 %v924_v20, %v4250_v25  ;;  %3143 = vpow2.f32 %v637_v0  ;;  %v594_v28 = vpop.xlane.xlu1 %593 }
 0x2bc   :  { %719 = vmatmul.f32.gmra.mxu0 %v4600_v32 }
 0x2bd   :  { %971 = vmax.xlane.f32.xlu1 %v4603_v14  ;;  %595 = vmax.xlane.f32.xlu2 %v4607_v45 }
 0x2bf   :  { %2780 = vmatmul.msk.f32.gmra.mxu1 %vm405_vm0, %v5419_v2 }
 0x2c0   :  { %v4626_v62 = vpop.eup %3141 }
 0x2c1   :  { %v1387_v26 = vpop.f32.mrf.mxu3  ;;  %v4644_v40 = vpop.eup %3143 }
 0x2c2   :  { %v927_v17 = vpop.f32.mrf.mxu1  ;;  %v4632_v52 = vadd.f32 %v1387_v26, %v4222_v37 }
 0x2c3   :  { %v4618_v1 = vadd.f32 %v927_v17, %v4227_v38  ;;  %v5424_v17 = vld [vmem:[#allocation22_spill] sm:$0xff] }
 0x2c4   :  { %722 = vmatmul.f32.gmra.mxu0 %v4615_v8 }
 0x2c5   :  { %647 = vadd.xlane.f32.xlu1 %v4527_v61  ;;  %973 = vmax.xlane.f32.xlu0 %v4618_v1  ;;  %v611_v61 = vsub.f32 %v4440_v19, %v592_v13  ;;  %v612_v19 = vsub.f32 %v4461_v6, %v594_v28  ;;  %v5423_v6 = vld [vmem:[#allocation20_spill] sm:$0xff]  ;;  %v5427_v28 = vld [vmem:[#allocation33_spill] sm:$0xff] }
 0x2c7   :  { %2781 = vmatmul.msk.f32.gmra.mxu1 %vm405_vm0, %v5420_v34  ;;  %v639_v46 = vmul.f32 1.442695, %v611_v61  ;;  %v641_v21 = vmul.f32 1.442695, %v612_v19 }
 0x2c9   :  { %v1390_v11 = vpop.f32.mrf.mxu3  ;;  %3145 = vpow2.f32 %v639_v46 }
 0x2ca   :  { %v4636_v60 = vadd.f32 %v1390_v11, %v4250_v25  ;;  %3147 = vpow2.f32 %v641_v21  ;;  %v5425_v11 = vld [vmem:[#allocation28_spill] sm:$0xff] }
 0x2cc   :  { %v930_v10 = vpop.f32.mrf.mxu1  ;;  %725 = vmatmul.f32.gmra.mxu0 %v4626_v62 }
 0x2cd   :  { %v4629_v54 = vadd.f32 %v930_v10, %v4255_v44  ;;  %1435 = vmax.xlane.f32.xlu1 %v4632_v52  ;;  %1437 = vmax.xlane.f32.xlu0 %v4636_v60  ;;  %v5426_v10 = vld [vmem:[#allocation35_spill] sm:$0xff] }
 0x2cf   :  { %2782 = vmatmul.msk.f32.gmra.mxu1 %vm405_vm0, %v5421_v39  ;;  %975 = vmax.xlane.f32.xlu2 %v4629_v54  ;;  %v4656_v20 = vpop.eup %3145 }
 0x2d0   :  { %v4670_v16 = vpop.eup %3147 }
 0x2d1   :  { %v1393_v36 = vpop.f32.mrf.mxu3 }
 0x2d2   :  { %v4659_v47 = vadd.f32 %v1393_v36, %v4227_v38 }
 0x2d4   :  { %v933_v3 = vpop.f32.mrf.mxu1  ;;  %728 = vmatmul.f32.gmra.mxu0 %v4644_v40 }
 0x2d5   :  { %v4647_v18 = vadd.f32 %v933_v3, %v4303_v24  ;;  %651 = vadd.xlane.f32.xlu0 %v4543_v15 }
 0x2d7   :  { %2783 = vmatmul.msk.f32.gmra.mxu1 %vm405_vm0, %v5422_v35  ;;  %649 = vadd.xlane.f32.xlu2 %v4535_v31 }
 0x2d8   :  { %977 = vmax.xlane.f32.xlu1 %v4647_v18 }
 0x2d9   :  { %v1396_v27 = vpop.f32.mrf.mxu3 }
 0x2da   :  { %v4676_v55 = vadd.f32 %v1396_v27, %v4255_v44 }
 0x2dc   :  { %v936_v58 = vpop.f32.mrf.mxu1  ;;  %731 = vmatmul.f32.gmra.mxu0 %v4656_v20 }
 0x2dd   :  { %v4662_v2 = vadd.f32 %v936_v58, %v4333_v50 }
 0x2df   :  { %2784 = vmatmul.msk.f32.gmra.mxu1 %vm405_vm0, %v5423_v6  ;;  %1439 = vmax.xlane.f32.xlu2 %v4659_v47  ;;  %v5428_v6 = vld [vmem:[#allocation41_spill] sm:$0xff] }
 0x2e0   :  { %653 = vadd.xlane.f32.xlu1 %v4551_v22  ;;  %979 = vmax.xlane.f32.xlu0 %v4662_v2 }
 0x2e1   :  { %v1399_v31 = vpop.f32.mrf.mxu3 }
 0x2e2   :  { %v4687_v0 = vadd.f32 %v1399_v31, %v4303_v24 }
 0x2e4   :  { %v939_v15 = vpop.f32.mrf.mxu1  ;;  %734 = vmatmul.f32.gmra.mxu0 %v4670_v16 }
 0x2e5   :  { %v4673_v26 = vadd.f32 %v939_v15, %v4287_v5 }
 0x2e7   :  { %2785 = vmatmul.msk.f32.gmra.mxu1 %vm405_vm0, %v5424_v17  ;;  %981 = vmax.xlane.f32.xlu2 %v4673_v26 }
 0x2e8   :  { %1441 = vmax.xlane.f32.xlu0 %v4676_v55 }
 0x2e9   :  { %v1402_v22 = vpop.f32.mrf.mxu3 }
 0x2ec   :  { %v942_v23 = vpop.f32.mrf.mxu1 }
 0x2ed   :  { %v4684_v34 = vadd.f32 %v942_v23, %v4319_v43 }
 0x2ef   :  { %2786 = vmatmul.msk.f32.gmra.mxu1 %vm405_vm0, %v5425_v11  ;;  %655 = vadd.xlane.f32.xlu2 %v4559_v4  ;;  %v4702_v4 = vadd.f32 %v1402_v22, %v4333_v50  ;;  %v5429_v22 = vld [vmem:[#allocation43_spill] sm:$0xff] }
 0x2f0   :  { %983 = vmax.xlane.f32.xlu1 %v4684_v34  ;;  %1443 = vmax.xlane.f32.xlu0 %v4687_v0 }
 0x2f1   :  { %v1405_v44 = vpop.f32.mrf.mxu3 }
 0x2f2   :  { %v4727_v27 = vadd.f32 %v1405_v44, %v4287_v5 }
 0x2f4   :  { %v945_v13 = vpop.f32.mrf.mxu1 }
 0x2f5   :  { %v4716_v19 = vadd.f32 %v945_v13, %v4353_v63  ;;  %v598_v13 = vpop.xlane.xlu0 %597 }
 0x2f7   :  { %2787 = vmatmul.msk.f32.gmra.mxu1 %vm405_vm0, %v5426_v10 }
 0x2f8   :  { %659 = vadd.xlane.f32.xlu1 %v4575_v9  ;;  %657 = vadd.xlane.f32.xlu0 %v4567_v29 }
 0x2f9   :  { %v1408_v61 = vpop.f32.mrf.mxu3 }
 0x2fa   :  { %v4705_v36 = vadd.f32 %v1408_v61, %v4319_v43  ;;  %v5431_v61 = vld [vmem:[#allocation42_spill] sm:$0xff] }
 0x2fc   :  { %v948_v39 = vpop.f32.mrf.mxu1 }
 0x2fd   :  { %v4699_v46 = vadd.f32 %v948_v39, %v4372_v42 }
 0x2ff   :  { %2788 = vmatmul.msk.f32.gmra.mxu1 %vm405_vm0, %v5427_v28  ;;  %987 = vmax.xlane.f32.xlu2 %v4699_v46 }
 0x300   :  { %1449 = vmax.xlane.f32.xlu1 %v4705_v36  ;;  %1445 = vmax.xlane.f32.xlu0 %v4702_v4 }
 0x301   :  { %v1411_v29 = vpop.f32.mrf.mxu3 }
 0x302   :  { %v4724_v21 = vadd.f32 %v1411_v29, %v4353_v63 }
 0x304   :  { %v951_v9 = vpop.f32.mrf.mxu1 }
 0x305   :  { %v4713_v3 = vadd.f32 %v951_v9, %v4393_v56 }
 0x307   :  { %2789 = vmatmul.msk.f32.gmra.mxu1 %vm405_vm0, %v4273_v30  ;;  %661 = vadd.xlane.f32.xlu2 %v4583_v59 }
 0x308   :  { %989 = vmax.xlane.f32.xlu1 %v4713_v3  ;;  %985 = vmax.xlane.f32.xlu0 %v4716_v19 }
 0x309   :  { %v1414_v43 = vpop.f32.mrf.mxu3 }
 0x30a   :  { %v4760_v17 = vadd.f32 %v1414_v43, %v4372_v42 }
 0x30c   :  { %v954_v35 = vpop.f32.mrf.mxu1 }
 0x30d   :  { %v4749_v31 = vadd.f32 %v954_v35, %v4412_v7 }
 0x30f   :  { %2790 = vmatmul.msk.f32.gmra.mxu1 %vm405_vm0, %v4323_v53  ;;  %1451 = vmax.xlane.f32.xlu2 %v4724_v21 }
 0x310   :  { %665 = vadd.xlane.f32.xlu1 %v4615_v8  ;;  %1447 = vmax.xlane.f32.xlu0 %v4727_v27 }
 0x311   :  { %v1417_v30 = vpop.f32.mrf.mxu3 }
 0x312   :  { %v4738_v63 = vadd.f32 %v1417_v30, %v4393_v56 }
 0x314   :  { %v957_v59 = vpop.f32.mrf.mxu1 }
 0x315   :  { %v4735_v58 = vadd.f32 %v957_v59, %v4431_v48 }
 0x317   :  { %2791 = vmatmul.msk.f32.gmra.mxu1 %vm405_vm0, %v5428_v6  ;;  %993 = vmax.xlane.f32.xlu2 %v4735_v58 }
 0x318   :  { %1455 = vmax.xlane.f32.xlu1 %v4738_v63  ;;  %663 = vadd.xlane.f32.xlu0 %v4600_v32 }
 0x319   :  { %v1420_v5 = vpop.f32.mrf.mxu3 }
 0x31a   :  { %v4757_v32 = vadd.f32 %v1420_v5, %v4412_v7 }
 0x31c   :  { %v960_v53 = vpop.f32.mrf.mxu1 }
 0x31d   :  { %v4746_v8 = vadd.f32 %v960_v53, %v4453_v12 }
 0x31f   :  { %2792 = vmatmul.msk.f32.gmra.mxu1 %vm405_vm0, %v4325_v49  ;;  %667 = vadd.xlane.f32.xlu2 %v4626_v62  ;;  %v4767_v49 = vpop.f32.mrf.mxu0 }
 0x320   :  { %995 = vmax.xlane.f32.xlu1 %v4746_v8  ;;  %991 = vmax.xlane.f32.xlu0 %v4749_v31  ;;  %5430 = vst [vmem:[#allocation25_spill] sm:$0xff] %v4767_v49 }
 0x321   :  { %v1423_v56 = vpop.f32.mrf.mxu3 }
 0x324   :  { %v963_v15 = vpop.f32.mrf.mxu1 }
 0x325   :  { %v4787_v59 = vadd.f32 %v963_v15, %v4598_v41 }
 0x327   :  { %2793 = vmatmul.msk.f32.gmra.mxu1 %vm405_vm0, %v5429_v22  ;;  %1457 = vmax.xlane.f32.xlu2 %v4757_v32  ;;  %v4783_v29 = vpop.f32.mrf.mxu0 }
 0x328   :  { %671 = vadd.xlane.f32.xlu1 %v4656_v20  ;;  %1453 = vmax.xlane.f32.xlu0 %v4760_v17  ;;  %v970_v62 = vpop.xlane.xlu2 %969  ;;  %5432 = vst [vmem:[#allocation17_spill] sm:$0xff] %v4783_v29 }
 0x329   :  { %v1001_v23 = vsub.f32 %v4586_v57, %v970_v62  ;;  %v1426_v11 = vpop.f32.mrf.mxu3  ;;  %v614_v57 = vsub.f32 %v4490_v51, %v598_v13 }
 0x32a   :  { %v4774_v10 = vadd.f32 %v1426_v11, %v4453_v12 }
 0x32b   :  { %v1017_v44 = vmul.f32 1.442695, %v1001_v23  ;;  %v645_v35 = vmul.f32 1.442695, %v614_v57 }
 0x32c   :  { %v966_v7 = vpop.f32.mrf.mxu1 }
 0x32d   :  { %v4771_v42 = vadd.f32 %v966_v7, %v4483_v33  ;;  %3149 = vpow2.f32 %v1017_v44 }
 0x32f   :  { %2794 = vmatmul.msk.f32.gmra.mxu1 %vm405_vm0, %v5431_v61  ;;  %999 = vmax.xlane.f32.xlu2 %v4771_v42  ;;  %v4799_v62 = vpop.f32.mrf.mxu0 }
 0x330   :  { %1461 = vmax.xlane.f32.xlu1 %v4774_v10  ;;  %669 = vadd.xlane.f32.xlu0 %v4644_v40  ;;  %v972_v20 = vpop.xlane.xlu1 %971  ;;  %v596_v39 = vpop.xlane.xlu2 %595 }
 0x331   :  { %v1002_v28 = vsub.f32 %v4603_v14, %v972_v20  ;;  %v613_v12 = vsub.f32 %v4607_v45, %v596_v39  ;;  %v1429_v51 = vpop.f32.mrf.mxu3 }
 0x332   :  { %v4797_v15 = vadd.f32 %v1429_v51, %v4598_v41 }
 0x333   :  { %v3150_v43 = vpop.eup %3149  ;;  %v1019_v30 = vmul.f32 1.442695, %v1002_v28  ;;  %v643_v6 = vmul.f32 1.442695, %v613_v12 }
 0x334   :  { %v1837_v9 = vpop.f32.mrf.mxu1  ;;  %1161 = vmatmul.f32.vlgmr.msrb.gmra.mxu2 %v3150_v43 }
 0x335   :  { %3151 = vpow2.f32 %v1019_v30  ;;  %v4813_v39 = vadd.f32 %v1837_v9, %v4222_v37 }
 0x336   :  { %3153 = vpow2.f32 %v643_v6 }
 0x337   :  { %673 = vadd.xlane.f32.xlu2 %v4670_v16  ;;  %3155 = vpow2.f32 %v645_v35  ;;  %v4802_v16 = vadd.f32 %v1423_v56, %v4431_v48 }
 0x338   :  { %1049 = vadd.xlane.f32.xlu1 %v3150_v43  ;;  %997 = vmax.xlane.f32.xlu0 %v4787_v59  ;;  %v4791_v14 = vpop.xlane.xlu1 %647  ;;  %v974_v45 = vpop.xlane.xlu0 %973 }
 0x339   :  { %5433 = vst [vmem:[#allocation15_spill] sm:$0xff] %v4791_v14  ;;  %v1003_v40 = vsub.f32 %v4618_v1, %v974_v45  ;;  %v4819_v43 = vpop.f32.mrf.mxu0 }
 0x33b   :  { %v4794_v53 = vpop.eup %3151  ;;  %v1021_v23 = vmul.f32 1.442695, %v1003_v40 }
 0x33c   :  { %v1840_v5 = vpop.f32.mrf.mxu1  ;;  %v3154_v22 = vpop.eup %3153  ;;  %1164 = vmatmul.f32.gmra.mxu2 %v4794_v53 }
 0x33d   :  { %v3156_v11 = vpop.eup %3155  ;;  %737 = vmatmul.f32.gmra.mxu0 %v3154_v22  ;;  %3157 = vpow2.f32 %v1021_v23  ;;  %v4816_v28 = vadd.f32 %v1840_v5, %v4250_v25 }
 0x33f   :  { %1463 = vmax.xlane.f32.xlu2 %v4797_v15 }
 0x340   :  { %1459 = vmax.xlane.f32.xlu0 %v4802_v16  ;;  %677 = vadd.xlane.f32.xlu1 %v3156_v11  ;;  %v1436_v44 = vpop.xlane.xlu1 %1435  ;;  %v1438_v13 = vpop.xlane.xlu0 %1437 }
 0x341   :  { %v1467_v61 = vsub.f32 %v4632_v52, %v1436_v44  ;;  %v4832_v51 = vpop.f32.mrf.mxu0 }
 0x342   :  { %v976_v1 = vpop.xlane.xlu2 %975 }
 0x343   :  { %v1004_v7 = vsub.f32 %v4629_v54, %v976_v1  ;;  %v3158_v20 = vpop.eup %3157  ;;  %v1483_v12 = vmul.f32 1.442695, %v1467_v61  ;;  %v1468_v54 = vsub.f32 %v4636_v60, %v1438_v13 }
 0x344   :  { %v1843_v48 = vpop.f32.mrf.mxu1  ;;  %1167 = vmatmul.f32.gmra.mxu2 %v3158_v20 }
 0x345   :  { %v1023_v56 = vmul.f32 1.442695, %v1004_v7  ;;  %v4810_v57 = vadd.f32 %v1843_v48, %v4227_v38  ;;  %740 = vmatmul.f32.gmra.mxu0 %v3156_v11  ;;  %v1485_v38 = vmul.f32 1.442695, %v1468_v54 }
 0x347   :  { %3159 = vpow2.f32 %v1023_v56  ;;  %1887 = vmax.xlane.f32.xlu2 %v4816_v28 }
 0x348   :  { %3161 = vpow2.f32 %v1483_v12  ;;  %1885 = vmax.xlane.f32.xlu0 %v4813_v39  ;;  %1889 = vmax.xlane.f32.xlu1 %v4810_v57  ;;  %v4826_v52 = vpop.xlane.xlu0 %651 }
 0x349   :  { %3163 = vpow2.f32 %v1485_v38 }
 0x34a   :  { %v4824_v37 = vpop.xlane.xlu2 %649 }
 0x34b   :  { %5434 = vst [vmem:[#allocation24_spill] sm:$0xff] %v4824_v37  ;;  %v978_v25 = vpop.xlane.xlu1 %977 }
 0x34c   :  { %v1005_v9 = vsub.f32 %v4647_v18, %v978_v25  ;;  %v1846_v60 = vpop.f32.mrf.mxu1 }
 0x34d   :  { %v3160_v35 = vpop.eup %3159 }
 0x34e   :  { %v4829_v30 = vpop.eup %3161  ;;  %v1025_v6 = vmul.f32 1.442695, %v1005_v9  ;;  %1170 = vmatmul.f32.gmra.mxu2 %v3160_v35 }
 0x34f   :  { %1611 = vmatmul.f32.vlgmr.msra.gmra.mxu0 %v4829_v30  ;;  %1053 = vadd.xlane.f32.xlu2 %v3158_v20  ;;  %v4836_v11 = vpop.eup %3163 }
 0x350   :  { %3165 = vpow2.f32 %v1025_v6  ;;  %675 = vadd.xlane.f32.xlu0 %v3154_v22  ;;  %1055 = vadd.xlane.f32.xlu1 %v3160_v35 }
 0x352   :  { %v1440_v45 = vpop.xlane.xlu2 %1439 }
 0x353   :  { %v1469_v40 = vsub.f32 %v4659_v47, %v1440_v45  ;;  %v980_v5 = vpop.xlane.xlu0 %979  ;;  %v1432_v47 = vpop.f32.mrf.mxu3 }
 0x354   :  { %v1006_v18 = vsub.f32 %v4662_v2, %v980_v5  ;;  %v1849_v23 = vpop.f32.mrf.mxu1  ;;  %v4844_v22 = vpop.xlane.xlu1 %653  ;;  %v4854_v25 = vadd.f32 %v1432_v47, %v4483_v33  ;;  %v3377_v5 = vld [vmem:[%s5351_s3 + $0x18] sm:$0xff] }
 0x355   :  { %v1487_v1 = vmul.f32 1.442695, %v1469_v40  ;;  %v4839_v7 = vadd.f32 %v1849_v23, %v4303_v24  ;;  %v4847_v24 = vpop.f32.mrf.mxu0 }
 0x356   :  { %v3166_v44 = vpop.eup %3165  ;;  %v1027_v13 = vmul.f32 1.442695, %v1006_v18  ;;  %v4865_v18 = vadd.f32 %v3377_v5, %v1846_v60  ;;  %v3378_v60 = vld [vmem:[%s5351_s3 + $0x38] sm:$0xff] }
 0x357   :  { %3167 = vpow2.f32 %v1487_v1  ;;  %1173 = vmatmul.f32.gmra.mxu2 %v3166_v44  ;;  %1614 = vmatmul.f32.gmra.mxu0 %v4836_v11 }
 0x358   :  { %3169 = vpow2.f32 %v1027_v13  ;;  %1051 = vadd.xlane.f32.xlu0 %v4794_v53  ;;  %1893 = vmax.xlane.f32.xlu1 %v4839_v7 }
 0x35a   :  { %v982_v2 = vpop.xlane.xlu2 %981 }
 0x35b   :  { %v1007_v61 = vsub.f32 %v4673_v26, %v982_v2  ;;  %v1442_v48 = vpop.xlane.xlu0 %1441 }
 0x35c   :  { %v1470_v56 = vsub.f32 %v4676_v55, %v1442_v48  ;;  %v1852_v20 = vpop.f32.mrf.mxu1 }
 0x35d   :  { %v3168_v12 = vpop.eup %3167  ;;  %v1029_v54 = vmul.f32 1.442695, %v1007_v61  ;;  %v4851_v38 = vadd.f32 %v1852_v20, %v4333_v50  ;;  %v4860_v40 = vpop.f32.mrf.mxu0 }
 0x35e   :  { %v3170_v53 = vpop.eup %3169  ;;  %v1489_v9 = vmul.f32 1.442695, %v1470_v56  ;;  %1519 = vadd.xlane.f32.xlu2 %v3168_v12 }
 0x35f   :  { %3171 = vpow2.f32 %v1029_v54  ;;  %1176 = vmatmul.f32.gmra.mxu2 %v3170_v53  ;;  %1617 = vmatmul.f32.gmra.mxu0 %v3168_v12 }
 0x360   :  { %3173 = vpow2.f32 %v1489_v9  ;;  %1465 = vmax.xlane.f32.xlu0 %v4854_v25  ;;  %1895 = vmax.xlane.f32.xlu1 %v4851_v38 }
 0x363   :  { %v984_v26 = vpop.xlane.xlu1 %983  ;;  %v1444_v55 = vpop.xlane.xlu0 %1443 }
 0x364   :  { %v1008_v35 = vsub.f32 %v4684_v34, %v984_v26  ;;  %v1471_v50 = vsub.f32 %v4687_v0, %v1444_v55  ;;  %v1855_v6 = vpop.f32.mrf.mxu1  ;;  %v4868_v34 = vpop.xlane.xlu2 %655  ;;  %v3379_v26 = vld [vmem:[%s5351_s3 + $0x30] sm:$0xff] }
 0x365   :  { %v3172_v45 = vpop.eup %3171  ;;  %v4880_v56 = vpop.f32.mrf.mxu0  ;;  %v4886_v55 = vadd.f32 %v3379_v26, %v1855_v6 }
 0x366   :  { %v3174_v33 = vpop.eup %3173  ;;  %v1031_v23 = vmul.f32 1.442695, %v1008_v35  ;;  %v1491_v1 = vmul.f32 1.442695, %v1471_v50  ;;  %1059 = vadd.xlane.f32.xlu2 %v3170_v53 }
 0x367   :  { %1179 = vmatmul.f32.gmra.mxu2 %v3172_v45  ;;  %1620 = vmatmul.f32.gmra.mxu0 %v3174_v33 }
 0x368   :  { %3175 = vpow2.f32 %v1031_v23  ;;  %1891 = vmax.xlane.f32.xlu0 %v4865_v18  ;;  %1521 = vadd.xlane.f32.xlu1 %v3174_v33 }
 0x369   :  { %3177 = vpow2.f32 %v1491_v1 }
 0x36b   :  { %v4870_v0 = vpop.xlane.xlu1 %659  ;;  %v4872_v13 = vpop.xlane.xlu0 %657 }
 0x36c   :  { %v1858_v47 = vpop.f32.mrf.mxu1 }
 0x36d   :  { %v4877_v2 = vadd.f32 %v3378_v60, %v1858_v47  ;;  %v4889_v50 = vpop.f32.mrf.mxu0 }
 0x36e   :  { %v3176_v61 = vpop.eup %3175 }
 0x36f   :  { %v3178_v48 = vpop.eup %3177  ;;  %1182 = vmatmul.f32.gmra.mxu2 %v3176_v61  ;;  %1899 = vmax.xlane.f32.xlu2 %v4877_v2 }
 0x370   :  { %1623 = vmatmul.f32.gmra.mxu0 %v3178_v48  ;;  %1057 = vadd.xlane.f32.xlu0 %v3166_v44 }
 0x371   :  { %1061 = vadd.xlane.f32.xlu1 %v3172_v45 }
 0x372   :  { %v988_v20 = vpop.xlane.xlu2 %987 }
 0x373   :  { %v1450_v12 = vpop.xlane.xlu1 %1449  ;;  %v1446_v54 = vpop.xlane.xlu0 %1445  ;;  %v1010_v44 = vsub.f32 %v4699_v46, %v988_v20 }
 0x374   :  { %v1472_v53 = vsub.f32 %v4702_v4, %v1446_v54  ;;  %v1861_v35 = vpop.f32.mrf.mxu1  ;;  %v1474_v6 = vsub.f32 %v4705_v36, %v1450_v12 }
 0x375   :  { %v1035_v23 = vmul.f32 1.442695, %v1010_v44  ;;  %v4898_v20 = vpop.f32.mrf.mxu0  ;;  %v3380_v44 = vld [vmem:[%s5351_s3 + $0x40] sm:$0xff] }
 0x376   :  { %v1493_v9 = vmul.f32 1.442695, %v1472_v53  ;;  %v4904_v36 = vadd.f32 %v3380_v44, %v1861_v35 }
 0x378   :  { %1063 = vadd.xlane.f32.xlu0 %v3176_v61  ;;  %3179 = vpow2.f32 %v1493_v9 }
 0x379   :  { %1897 = vmax.xlane.f32.xlu1 %v4886_v55 }
 0x37a   :  { %v4892_v45 = vpop.xlane.xlu2 %661 }
 0x37b   :  { %v990_v33 = vpop.xlane.xlu1 %989  ;;  %v986_v4 = vpop.xlane.xlu0 %985 }
 0x37c   :  { %v1009_v5 = vsub.f32 %v4716_v19, %v986_v4  ;;  %v1864_v60 = vpop.f32.mrf.mxu1  ;;  %v1497_v19 = vmul.f32 1.442695, %v1474_v6  ;;  %v1011_v12 = vsub.f32 %v4713_v3, %v990_v33 }
 0x37d   :  { %v4910_v6 = vpop.f32.mrf.mxu0 }
 0x37e   :  { %v1033_v1 = vmul.f32 1.442695, %v1009_v5  ;;  %v3180_v47 = vpop.eup %3179  ;;  %5435 = vst [vmem:[#allocation23_spill] sm:$0xff] %v4910_v6 }
 0x37f   :  { %1626 = vmatmul.f32.gmra.mxu0 %v3180_v47 }
 0x380   :  { %1525 = vadd.xlane.f32.xlu0 %v3180_v47  ;;  %3181 = vpow2.f32 %v1033_v1  ;;  %v1037_v1 = vmul.f32 1.442695, %v1011_v12 }
 0x381   :  { %1523 = vadd.xlane.f32.xlu1 %v3178_v48  ;;  %3183 = vpow2.f32 %v1035_v23 }
 0x382   :  { %v1452_v61 = vpop.xlane.xlu2 %1451 }
 0x383   :  { %v4896_v54 = vpop.xlane.xlu1 %665  ;;  %v1448_v46 = vpop.xlane.xlu0 %1447  ;;  %v1475_v3 = vsub.f32 %v4724_v21, %v1452_v61 }
 0x384   :  { %v1473_v53 = vsub.f32 %v4727_v27, %v1448_v46  ;;  %v1867_v23 = vpop.f32.mrf.mxu1  ;;  %v3381_v46 = vld [vmem:[%s5351_s3 + $0x48] sm:$0xff] }
 0x386   :  { %v1495_v9 = vmul.f32 1.442695, %v1473_v53  ;;  %v3182_v26 = vpop.eup %3181  ;;  %v4915_v53 = vadd.f32 %v3381_v46, %v1864_v60  ;;  %v3382_v60 = vld [vmem:[%s5351_s3 + $0x50] sm:$0xff] }
 0x387   :  { %v3184_v48 = vpop.eup %3183  ;;  %1065 = vadd.xlane.f32.xlu2 %v3182_v26  ;;  %1185 = vmatmul.f32.gmra.mxu2 %v3182_v26  ;;  %v1499_v26 = vmul.f32 1.442695, %v1475_v3  ;;  %v4925_v12 = vadd.f32 %v3382_v60, %v1867_v23 }
 0x388   :  { %3185 = vpow2.f32 %v1495_v9  ;;  %1901 = vmax.xlane.f32.xlu0 %v4904_v36 }
 0x389   :  { %3187 = vpow2.f32 %v1497_v19  ;;  %1067 = vadd.xlane.f32.xlu1 %v3184_v48 }
 0x38a   :  { %v994_v27 = vpop.xlane.xlu2 %993  ;;  %3189 = vpow2.f32 %v1037_v1  ;;  %v4927_v1 = vpop.f32.mrf.mxu0 }
 0x38b   :  { %v1456_v4 = vpop.xlane.xlu1 %1455  ;;  %v4908_v5 = vpop.xlane.xlu0 %663  ;;  %5437 = vst [vmem:[#allocation16_spill] sm:$0xff] %v4927_v1  ;;  %3191 = vpow2.f32 %v1499_v26  ;;  %v3383_v26 = vld [vmem:[%s5351_s3 + $0x58] sm:$0xff] }
 0x38c   :  { %v1870_v21 = vpop.f32.mrf.mxu1 }
 0x38d   :  { %v4935_v29 = vadd.f32 %v3383_v26, %v1870_v21 }
 0x38e   :  { %v3186_v47 = vpop.eup %3185 }
 0x38f   :  { %v3188_v35 = vpop.eup %3187  ;;  %1629 = vmatmul.f32.gmra.mxu0 %v3186_v47  ;;  %1188 = vmatmul.f32.gmra.mxu2 %v3184_v48 }
 0x390   :  { %1529 = vadd.xlane.f32.xlu2 %v3188_v35  ;;  %1527 = vadd.xlane.f32.xlu0 %v3186_v47  ;;  %v3190_v48 = vpop.eup %3189  ;;  %v1013_v47 = vsub.f32 %v4735_v58, %v994_v27  ;;  %v1477_v58 = vsub.f32 %v4738_v63, %v1456_v4 }
 0x391   :  { %1903 = vmax.xlane.f32.xlu1 %v4915_v53 }
 0x392   :  { %v4919_v33 = vpop.xlane.xlu2 %667 }
 0x393   :  { %5436 = vst [vmem:[#allocation14_spill] sm:$0xff] %v4919_v33  ;;  %v996_v19 = vpop.xlane.xlu1 %995  ;;  %v992_v9 = vpop.xlane.xlu0 %991 }
 0x394   :  { %v1012_v44 = vsub.f32 %v4749_v31, %v992_v9  ;;  %v1041_v9 = vmul.f32 1.442695, %v1013_v47  ;;  %v1873_v27 = vpop.f32.mrf.mxu1 }
 0x396   :  { %v1039_v61 = vmul.f32 1.442695, %v1012_v44  ;;  %v3192_v44 = vpop.eup %3191 }
 0x397   :  { %1632 = vmatmul.f32.gmra.mxu0 %v3188_v35  ;;  %1191 = vmatmul.f32.gmra.mxu2 %v3190_v48 }
 0x398   :  { %1905 = vmax.xlane.f32.xlu2 %v4925_v12  ;;  %3193 = vpow2.f32 %v1039_v61  ;;  %1069 = vadd.xlane.f32.xlu0 %v3190_v48  ;;  %v732_v48 = vpop.f32.mrf.mxu0 }
 0x39a   :  { %v1458_v31 = vpop.xlane.xlu2 %1457 }
 0x39b   :  { %v672_v46 = vpop.xlane.xlu1 %671  ;;  %v1454_v3 = vpop.xlane.xlu0 %1453 }
 0x39c   :  { %3195 = vrcp.f32 %v672_v46  ;;  %v1476_v23 = vsub.f32 %v4760_v17, %v1454_v3  ;;  %v1014_v17 = vsub.f32 %v4746_v8, %v996_v19  ;;  %v1876_v8 = vpop.f32.mrf.mxu1 }
 0x39e   :  { %v1501_v60 = vmul.f32 1.442695, %v1476_v23  ;;  %v3194_v35 = vpop.eup %3193  ;;  %v1503_v23 = vmul.f32 1.442695, %v1477_v58  ;;  %v1043_v26 = vmul.f32 1.442695, %v1014_v17 }
 0x39f   :  { %1635 = vmatmul.f32.gmra.mxu0 %v3192_v44  ;;  %1194 = vmatmul.f32.gmra.mxu2 %v3194_v35 }
 0x3a0   :  { %3197 = vpow2.f32 %v1501_v60  ;;  %1531 = vadd.xlane.f32.xlu2 %v3192_v44  ;;  %1907 = vmax.xlane.f32.xlu0 %v4935_v29  ;;  %v1478_v44 = vsub.f32 %v4757_v32, %v1458_v31  ;;  %v3384_v32 = vld [vmem:[%s5351_s3 + $0x60] sm:$0xff] }
 0x3a1   :  { %3199 = vpow2.f32 %v1041_v9  ;;  %v4951_v31 = vadd.f32 %v3384_v32, %v1873_v27  ;;  %v735_v27 = vpop.f32.mrf.mxu0 }
 0x3a2   :  { %v3196_v61 = vpop.eup %3195  ;;  %v1000_v47 = vpop.xlane.xlu2 %999  ;;  %3201 = vpow2.f32 %v1503_v23  ;;  %v1505_v9 = vmul.f32 1.442695, %v1478_v44 }
 0x3a3   :  { %v4940_v46 = vmul.f32 %v3196_v61, %v732_v48  ;;  %v1462_v3 = vpop.xlane.xlu1 %1461  ;;  %v4942_v21 = vpop.xlane.xlu0 %669  ;;  %3203 = vpow2.f32 %v1043_v26 }
 0x3a4   :  { %5439 = vst [vmem:[#allocation13_spill] sm:$0xff] %v4942_v21 }
 0x3a5   :  { %5438 = vst [vmem:[#allocation12_spill] sm:$0xff] %v4940_v46 }
 0x3a6   :  { %v3198_v63 = vpop.eup %3197 }
 0x3a7   :  { %v3200_v4 = vpop.eup %3199  ;;  %1533 = vadd.xlane.f32.xlu1 %v3198_v63  ;;  %1638 = vmatmul.f32.gmra.mxu0 %v3198_v63  ;;  %v1016_v63 = vsub.f32 %v4771_v42, %v1000_v47 }
 0x3a8   :  { %1071 = vadd.xlane.f32.xlu2 %v3194_v35  ;;  %1197 = vmatmul.f32.gmra.mxu2 %v3200_v4  ;;  %v3202_v17 = vpop.eup %3201  ;;  %v3385_v35 = vld [vmem:[%s5351_s3 + $0x68] sm:$0xff] }
 0x3a9   :  { %1073 = vadd.xlane.f32.xlu0 %v3200_v4  ;;  %v4956_v48 = vadd.f32 %v3385_v35, %v1876_v8  ;;  %v3204_v26 = vpop.eup %3203  ;;  %v1480_v4 = vsub.f32 %v4774_v10, %v1462_v3  ;;  %v1047_v8 = vmul.f32 1.442695, %v1016_v63 }
 0x3aa   :  { %v674_v19 = vpop.xlane.xlu2 %673 }
 0x3ab   :  { %3205 = vrcp.f32 %v674_v19  ;;  %v4945_v60 = vpop.xlane.xlu1 %1049  ;;  %v998_v61 = vpop.xlane.xlu0 %997 }
 0x3ac   :  { %v1015_v58 = vsub.f32 %v4787_v59, %v998_v61  ;;  %3207 = vpow2.f32 %v1505_v9  ;;  %v1879_v9 = vpop.f32.mrf.mxu1 }
 0x3ad   :  { %v4968_v49 = vadd.f32 %v1879_v9, %v4598_v41 }
 0x3ae   :  { %v1045_v23 = vmul.f32 1.442695, %v1015_v58  ;;  %v1509_v58 = vmul.f32 1.442695, %v1480_v4 }
 0x3af   :  { %1909 = vmax.xlane.f32.xlu1 %v4951_v31  ;;  %1641 = vmatmul.f32.gmra.mxu0 %v3202_v17 }
 0x3b0   :  { %3209 = vpow2.f32 %v1045_v23  ;;  %1911 = vmax.xlane.f32.xlu2 %v4956_v48  ;;  %1200 = vmatmul.f32.gmra.mxu2 %v3204_v26 }
 0x3b1   :  { %v3206_v59 = vpop.eup %3205  ;;  %1535 = vadd.xlane.f32.xlu0 %v3202_v17  ;;  %3211 = vpow2.f32 %v1047_v8 }
 0x3b2   :  { %v4962_v44 = vmul.f32 %v3206_v59, %v735_v27  ;;  %v3208_v47 = vpop.eup %3207  ;;  %v1464_v32 = vpop.xlane.xlu2 %1463 }
 0x3b3   :  { %v678_v19 = vpop.xlane.xlu1 %677  ;;  %v1460_v61 = vpop.xlane.xlu0 %1459  ;;  %v1481_v9 = vsub.f32 %v4797_v15, %v1464_v32 }
 0x3b4   :  { %5440 = vst [vmem:[#allocation21_spill] sm:$0xff] %v4962_v44  ;;  %v1479_v42 = vsub.f32 %v4802_v16, %v1460_v61 }
 0x3b6   :  { %v4965_v35 = vpop.eup %3209  ;;  %v1507_v23 = vmul.f32 1.442695, %v1479_v42  ;;  %v1882_v42 = vpop.f32.mrf.mxu1 }
 0x3b7   :  { %1075 = vadd.xlane.f32.xlu1 %v3204_v26  ;;  %1644 = vmatmul.f32.gmra.mxu0 %v3208_v47  ;;  %v1162_v10 = vpop.f32.mrf.mxu2  ;;  %v4973_v59 = vpop.eup %3211 }
 0x3b8   :  { %3213 = vpow2.f32 %v1507_v23  ;;  %1537 = vadd.xlane.f32.xlu2 %v3208_v47  ;;  %1203 = vmatmul.f32.gmra.mxu2 %v4965_v35 }
 0x3b9   :  { %3215 = vpow2.f32 %v1509_v58  ;;  %1913 = vmax.xlane.f32.xlu0 %v4968_v49 }
 0x3ba   :  { %v738_v63 = vpop.f32.mrf.mxu0  ;;  %3217 = vrcp.f32 %v678_v19  ;;  %v1888_v8 = vpop.xlane.xlu2 %1887  ;;  %v1511_v19 = vmul.f32 1.442695, %v1481_v9 }
 0x3bb   :  { %v1886_v16 = vpop.xlane.xlu0 %1885  ;;  %v1890_v3 = vpop.xlane.xlu1 %1889  ;;  %v1918_v47 = vsub.f32 %v4816_v28, %v1888_v8 }
 0x3bc   :  { %v1917_v17 = vsub.f32 %v4813_v39, %v1886_v16  ;;  %v1919_v41 = vsub.f32 %v4810_v57, %v1890_v3  ;;  %v3386_v3 = vld [vmem:[%s5351_s3 + $0x78] sm:$0xff] }
 0x3bd   :  { %v1935_v32 = vmul.f32 1.442695, %v1918_v47 }
 0x3be   :  { %v3214_v27 = vpop.eup %3213  ;;  %v1933_v26 = vmul.f32 1.442695, %v1917_v17  ;;  %v1937_v61 = vmul.f32 1.442695, %v1919_v41  ;;  %v4982_v17 = vadd.f32 %v3386_v3, %v1882_v42 }
 0x3bf   :  { %v3216_v4 = vpop.eup %3215  ;;  %1539 = vadd.xlane.f32.xlu1 %v3214_v27  ;;  %1647 = vmatmul.f32.gmra.mxu0 %v3214_v27  ;;  %v1165_v39 = vpop.f32.mrf.mxu2 }
 0x3c0   :  { %1541 = vadd.xlane.f32.xlu2 %v3216_v4  ;;  %1206 = vmatmul.f32.gmra.mxu2 %v4973_v59  ;;  %3219 = vpow2.f32 %v1937_v61  ;;  %v3218_v58 = vpop.eup %3217 }
 0x3c1   :  { %3221 = vpow2.f32 %v1933_v26 }
 0x3c2   :  { %v741_v16 = vpop.f32.mrf.mxu0  ;;  %v1054_v26 = vpop.xlane.xlu2 %1053 }
 0x3c3   :  { %v676_v57 = vpop.xlane.xlu0 %675  ;;  %v1056_v23 = vpop.xlane.xlu1 %1055  ;;  %v4984_v15 = vmul.f32 %v3218_v58, %v741_v16 }
 0x3c4   :  { %3223 = vrcp.f32 %v676_v57 }
 0x3c5   :  { %5441 = vst [vmem:[#allocation18_spill] sm:$0xff] %v4984_v15  ;;  %3225 = vpow2.f32 %v1511_v19 }
 0x3c6   :  { %v3220_v41 = vpop.eup %3219  ;;  %3227 = vpow2.f32 %v1935_v32 }
 0x3c7   :  { %1915 = vmax.xlane.f32.xlu1 %v4982_v17  ;;  %1650 = vmatmul.f32.gmra.mxu0 %v3216_v4  ;;  %v4987_v28 = vpop.eup %3221  ;;  %v1168_v27 = vpop.f32.mrf.mxu2  ;;  %3229 = vrcp.f32 %v4945_v60 }
 0x3c8   :  { %1969 = vadd.xlane.f32.xlu0 %v3220_v41  ;;  %2061 = vmatmul.f32.vlgmr.msra.gmra.mxu2 %v4987_v28 }
 0x3ca   :  { %v3224_v61 = vpop.eup %3223 }
 0x3cb   :  { %v1052_v8 = vpop.xlane.xlu0 %1051  ;;  %v1894_v9 = vpop.xlane.xlu1 %1893  ;;  %v4991_v42 = vmul.f32 %v3224_v61, %v738_v63 }
 0x3cc   :  { %3231 = vrcp.f32 %v1052_v8  ;;  %v4993_v47 = vpop.eup %3225  ;;  %v4999_v60 = vpop.f32.mrf.mxu0 }
 0x3cd   :  { %5442 = vst [vmem:[#allocation10_spill] sm:$0xff] %v4991_v42  ;;  %3233 = vrcp.f32 %v1054_v26  ;;  %v4996_v4 = vpop.eup %3227 }
 0x3ce   :  { %3235 = vrcp.f32 %v1056_v23  ;;  %v3230_v57 = vpop.eup %3229  ;;  %5443 = vst [vmem:[#allocation5_spill] sm:$0xff] %v4999_v60 }
 0x3cf   :  { %1653 = vmatmul.f32.gmra.mxu0 %v4993_v47  ;;  %v5001_v19 = vmul.f32 %v3230_v57, %v1162_v10 }
 0x3d0   :  { %2064 = vmatmul.f32.gmra.mxu2 %v4996_v4 }
 0x3d1   :  { %v1171_v63 = vpop.f32.mrf.mxu2 }
 0x3d2   :  { %v3232_v58 = vpop.eup %3231 }
 0x3d3   :  { %v5003_v16 = vmul.f32 %v3232_v58, %v1165_v39  ;;  %v1466_v3 = vpop.xlane.xlu0 %1465  ;;  %v3234_v32 = vpop.eup %3233 }
 0x3d4   :  { %v1896_v8 = vpop.xlane.xlu1 %1895  ;;  %v1482_v23 = vsub.f32 %v4854_v25, %v1466_v3  ;;  %v3236_v26 = vpop.eup %3235  ;;  %v1228_v46 = vmul.f32 %v3234_v32, %v1168_v27  ;;  %v1921_v27 = vsub.f32 %v4839_v7, %v1894_v9 }
 0x3d5   :  { %v1922_v61 = vsub.f32 %v4851_v38, %v1896_v8  ;;  %v1229_v14 = vmul.f32 %v3236_v26, %v1171_v63  ;;  %v5011_v58 = vpop.f32.mrf.mxu0  ;;  %v1520_v63 = vpop.xlane.xlu2 %1519 }
 0x3d6   :  { %v1513_v42 = vmul.f32 1.442695, %v1482_v23  ;;  %5444 = vst [vmem:[#allocation30_spill] sm:$0xff] %v5011_v58 }
 0x3d7   :  { %v1943_v15 = vmul.f32 1.442695, %v1922_v61  ;;  %v3001_v10 = vpack.i.bf16 %v1229_v14, %v1228_v46  ;;  %v1941_v46 = vmul.f32 1.442695, %v1921_v27 }
 0x3d8   :  { %3237 = vpow2.f32 %v1513_v42  ;;  %2067 = vmatmul.f32.gmra.mxu2 %v3220_v41 }
 0x3d9   :  { %3239 = vpow2.f32 %v1943_v15 }
 0x3da   :  { %v1174_v41 = vpop.f32.mrf.mxu2 }
 0x3db   :  { %v1892_v39 = vpop.xlane.xlu0 %1891 }
 0x3dc   :  { %v1522_v57 = vpop.xlane.xlu1 %1521  ;;  %3002 = vrot.lane.b32.xlu0 %v3001_v10, %s3414_s23  ;;  %v1920_v25 = vsub.f32 %v4865_v18, %v1892_v39 }
 0x3dd   :  { %v1618_v18 = vpop.f32.mrf.mxu0  ;;  %v1060_v32 = vpop.xlane.xlu2 %1059 }
 0x3de   :  { %v5013_v38 = vpop.eup %3237  ;;  %v1939_v3 = vmul.f32 1.442695, %v1920_v25 }
 0x3df   :  { %v3240_v8 = vpop.eup %3239  ;;  %1656 = vmatmul.f32.gmra.mxu0 %v5013_v38 }
 0x3e0   :  { %3241 = vpow2.f32 %v1939_v3  ;;  %1975 = vadd.xlane.f32.xlu1 %v3240_v8 }
 0x3e1   :  { %3243 = vpow2.f32 %v1941_v46 }
 0x3e2   :  { %v1177_v7 = vpop.f32.mrf.mxu2 }
 0x3e3   :  { %v1058_v14 = vpop.xlane.xlu0 %1057 }
 0x3e4   :  { %v5017_v15 = vpop.xlane.xlu1 %1061  ;;  %3245 = vrcp.f32 %v1058_v14 }
 0x3e5   :  { %3247 = vrcp.f32 %v1060_v32  ;;  %v1621_v39 = vpop.f32.mrf.mxu0  ;;  %v1900_v3 = vpop.xlane.xlu2 %1899 }
 0x3e6   :  { %v3242_v42 = vpop.eup %3241  ;;  %v1924_v14 = vsub.f32 %v4877_v2, %v1900_v3 }
 0x3e7   :  { %1971 = vadd.xlane.f32.xlu2 %v3242_v42  ;;  %2070 = vmatmul.f32.gmra.mxu2 %v3242_v42  ;;  %v3244_v61 = vpop.eup %3243 }
 0x3ea   :  { %v3246_v9 = vpop.eup %3245  ;;  %v5023_v1 = vpop.f32.mrf.mxu2 }
 0x3eb   :  { %v5019_v23 = vpop.xlane.xlu0 %1063  ;;  %v3248_v25 = vpop.eup %3247  ;;  %v1230_v27 = vmul.f32 %v3246_v9, %v1174_v41 }
 0x3ec   :  { %v1898_v26 = vpop.xlane.xlu1 %1897  ;;  %v1231_v44 = vmul.f32 %v3248_v25, %v1177_v7 }
 0x3ed   :  { %v1923_v10 = vsub.f32 %v4886_v55, %v1898_v26  ;;  %v1624_v55 = vpop.f32.mrf.mxu0 }
 0x3ee   :  { %v3011_v32 = vpack.i.bf16 %v1231_v44, %v1230_v27 }
 0x3ef   :  { %1973 = vadd.xlane.f32.xlu2 %v3244_v61  ;;  %2073 = vmatmul.f32.gmra.mxu2 %v3244_v61  ;;  %v1945_v42 = vmul.f32 1.442695, %v1923_v10  ;;  %v1947_v61 = vmul.f32 1.442695, %v1924_v14 }
 0x3f1   :  { %3249 = vpow2.f32 %v1945_v42 }
 0x3f2   :  { %3251 = vrcp.f32 %v1522_v57  ;;  %v5030_v25 = vpop.f32.mrf.mxu2 }
 0x3f3   :  { %v1526_v37 = vpop.xlane.xlu0 %1525  ;;  %3253 = vrcp.f32 %v1520_v63 }
 0x3f4   :  { %v1524_v46 = vpop.xlane.xlu1 %1523  ;;  %3255 = vpow2.f32 %v1947_v61 }
 0x3f7   :  { %2076 = vmatmul.f32.gmra.mxu2 %v3240_v8  ;;  %v5026_v9 = vpop.eup %3249 }
 0x3f8   :  { %v3252_v2 = vpop.eup %3251 }
 0x3f9   :  { %3012 = vrot.lane.b32.xlu1 %v3011_v32, %s3414_s23  ;;  %v1679_v8 = vmul.f32 %v3252_v2, %v1621_v39  ;;  %v3254_v7 = vpop.eup %3253 }
 0x3fa   :  { %v1066_v26 = vpop.xlane.xlu2 %1065  ;;  %v1678_v10 = vmul.f32 %v3254_v7, %v1618_v18  ;;  %v3256_v42 = vpop.eup %3255 }
 0x3fb   :  { %v1902_v41 = vpop.xlane.xlu0 %1901  ;;  %3257 = vrcp.f32 %v1066_v26 }
 0x3fc   :  { %v1068_v6 = vpop.xlane.xlu1 %1067  ;;  %v1925_v44 = vsub.f32 %v4904_v36, %v1902_v41  ;;  %v1627_v27 = vpop.f32.mrf.mxu0  ;;  %v3006_v14 = vpack.i.bf16 %v1679_v8, %v1678_v10 }
 0x3fe   :  { %v1949_v3 = vmul.f32 1.442695, %v1925_v44 }
 0x3ff   :  { %2079 = vmatmul.f32.gmra.mxu2 %v5026_v9 }
 0x400   :  { %3259 = vpow2.f32 %v1949_v3 }
 0x401   :  { %v3258_v18 = vpop.eup %3257  ;;  %3261 = vrcp.f32 %v1526_v37 }
 0x402   :  { %3263 = vrcp.f32 %v1524_v46 }
 0x403   :  { %v5032_v57 = vpop.xlane.xlu2 %1529  ;;  %v5034_v63 = vpop.xlane.xlu0 %1527  ;;  %3265 = vrcp.f32 %v1068_v6 }
 0x404   :  { %v1904_v32 = vpop.xlane.xlu1 %1903 }
 0x405   :  { %v1926_v36 = vsub.f32 %v4915_v53, %v1904_v32 }
 0x406   :  { %1979 = vadd.xlane.f32.xlu0 %v3256_v42  ;;  %v5042_v26 = vpop.eup %3259 }
 0x407   :  { %3007 = vrot.lane.b32.xlu2 %v3006_v14, %s3415_s0  ;;  %2082 = vmatmul.f32.gmra.mxu2 %v3256_v42  ;;  %v1951_v41 = vmul.f32 1.442695, %v1926_v36  ;;  %v3262_v53 = vpop.eup %3261 }
 0x408   :  { %v3264_v10 = vpop.eup %3263  ;;  %v1681_v42 = vmul.f32 %v3262_v53, %v1627_v27 }
 0x409   :  { %3267 = vpow2.f32 %v1951_v41  ;;  %v3266_v37 = vpop.eup %3265 }
 0x40a   :  { %v1186_v61 = vpop.f32.mrf.mxu2 }
 0x40b   :  { %v1906_v39 = vpop.xlane.xlu2 %1905  ;;  %v5038_v2 = vmul.f32 %v3258_v18, %v1186_v61  ;;  %v1070_v44 = vpop.xlane.xlu0 %1069  ;;  %v1680_v61 = vmul.f32 %v3264_v10, %v1624_v55 }
 0x40c   :  { %v5040_v7 = vpop.f32.mrf.mxu0  ;;  %v1927_v8 = vsub.f32 %v4925_v12, %v1906_v39  ;;  %3269 = vrcp.f32 %v1070_v44 }
 0x40d   :  { %v3016_v39 = vpack.i.bf16 %v1681_v42, %v1680_v61 }
 0x40e   :  { %v1953_v14 = vmul.f32 1.442695, %v1927_v8 }
 0x40f   :  { %2085 = vmatmul.f32.gmra.mxu2 %v5042_v26  ;;  %v5052_v6 = vpop.eup %3267 }
 0x410   :  { %3271 = vpow2.f32 %v1953_v14 }
 0x412   :  { %v1189_v46 = vpop.f32.mrf.mxu2  ;;  %v3270_v8 = vpop.eup %3269 }
 0x413   :  { %v5046_v3 = vpop.xlane.xlu2 %1531  ;;  %v5048_v32 = vmul.f32 %v3266_v37, %v1189_v46  ;;  %v1908_v36 = vpop.xlane.xlu0 %1907 }
 0x414   :  { %v5050_v18 = vpop.f32.mrf.mxu0  ;;  %v1928_v41 = vsub.f32 %v4935_v29, %v1908_v36 }
 0x416   :  { %v1955_v44 = vmul.f32 1.442695, %v1928_v41  ;;  %v5065_v12 = vpop.eup %3271 }
 0x417   :  { %2088 = vmatmul.f32.gmra.mxu2 %v5052_v6 }
 0x41a   :  { %3017 = vrot.lane.b32.xlu0 %v3016_v39, %s3415_s0  ;;  %v5059_v27 = vpop.xlane.xlu1 %1533  ;;  %v1192_v53 = vpop.f32.mrf.mxu2 }
 0x41b   :  { %v1072_v37 = vpop.xlane.xlu2 %1071  ;;  %v5061_v46 = vmul.f32 %v3270_v8, %v1192_v53 }
 0x41c   :  { %3273 = vrcp.f32 %v1072_v37  ;;  %v1074_v55 = vpop.xlane.xlu0 %1073  ;;  %v5063_v10 = vpop.f32.mrf.mxu0 }
 0x41d   :  { %3275 = vpow2.f32 %v1955_v44 }
 0x41e   :  { %3277 = vrcp.f32 %v1074_v55 }
 0x41f   :  { %2091 = vmatmul.f32.gmra.mxu2 %v5065_v12 }
 0x422   :  { %v3274_v29 = vpop.eup %3273  ;;  %v1910_v42 = vpop.xlane.xlu1 %1909 }
 0x423   :  { %v1912_v14 = vpop.xlane.xlu2 %1911  ;;  %v1195_v36 = vpop.f32.mrf.mxu2  ;;  %v1929_v61 = vsub.f32 %v4951_v31, %v1910_v42  ;;  %1977 = vadd.xlane.f32.xlu1 %v5026_v9 }
 0x424   :  { %v5070_v39 = vmul.f32 %v3274_v29, %v1195_v36  ;;  %v1536_v41 = vpop.xlane.xlu0 %1535  ;;  %v5072_v8 = vpop.f32.mrf.mxu0  ;;  %v1930_v21 = vsub.f32 %v4956_v48, %v1912_v14 }
 0x425   :  { %v1957_v53 = vmul.f32 1.442695, %v1929_v61  ;;  %v5074_v37 = vpop.eup %3275 }
 0x426   :  { %v3278_v42 = vpop.eup %3277  ;;  %v1959_v36 = vmul.f32 1.442695, %v1930_v21 }
 0x427   :  { %3279 = vpow2.f32 %v1957_v53  ;;  %2094 = vmatmul.f32.gmra.mxu2 %v5074_v37 }
 0x42a   :  { %v1076_v31 = vpop.xlane.xlu1 %1075 }
 0x42b   :  { %v1538_v9 = vpop.xlane.xlu2 %1537  ;;  %v1198_v29 = vpop.f32.mrf.mxu2  ;;  %3281 = vrcp.f32 %v1076_v31 }
 0x42c   :  { %3283 = vrcp.f32 %v5019_v23  ;;  %v5081_v55 = vmul.f32 %v3278_v42, %v1198_v29  ;;  %v1642_v61 = vpop.f32.mrf.mxu0  ;;  %v1914_v44 = vpop.xlane.xlu0 %1913 }
 0x42d   :  { %v5083_v33 = vpop.eup %3279  ;;  %3285 = vrcp.f32 %v1536_v41  ;;  %v1931_v48 = vsub.f32 %v4968_v49, %v1914_v44 }
 0x42e   :  { %3287 = vrcp.f32 %v1538_v9 }
 0x42f   :  { %3289 = vrcp.f32 %v5017_v15  ;;  %2097 = vmatmul.f32.gmra.mxu2 %v5083_v33  ;;  %v1961_v29 = vmul.f32 1.442695, %v1931_v48 }
 0x430   :  { %3291 = vpow2.f32 %v1959_v36  ;;  %1981 = vadd.xlane.f32.xlu2 %v5042_v26 }
 0x431   :  { %v3282_v14 = vpop.eup %3281  ;;  %3293 = vpow2.f32 %v1961_v29 }
 0x432   :  { %v3284_v23 = vpop.eup %3283  ;;  %v1540_v21 = vpop.xlane.xlu1 %1539  ;;  %3295 = vrcp.f32 %v5032_v57 }
 0x433   :  { %v3286_v53 = vpop.eup %3285  ;;  %v1201_v31 = vpop.f32.mrf.mxu2  ;;  %v1233_v49 = vmul.f32 %v3284_v23, %v5030_v25  ;;  %3297 = vrcp.f32 %v5034_v63 }
 0x434   :  { %v3288_v42 = vpop.eup %3287  ;;  %v5089_v58 = vmul.f32 %v3282_v14, %v1201_v31  ;;  %v1645_v41 = vpop.f32.mrf.mxu0  ;;  %v5091_v60 = vmul.f32 %v3286_v53, %v1642_v61  ;;  %3299 = vrcp.f32 %v1540_v21 }
 0x435   :  { %v3290_v9 = vpop.eup %3289  ;;  %v5093_v15 = vmul.f32 %v3288_v42, %v1645_v41  ;;  %v1542_v53 = vpop.xlane.xlu2 %1541 }
 0x436   :  { %v5095_v36 = vpop.eup %3291  ;;  %v3076_v26 = vpack.i.bf16 %v5089_v58, %v5081_v55  ;;  %v1232_v48 = vmul.f32 %v3290_v9, %v5023_v1  ;;  %3301 = vrcp.f32 %v1542_v53  ;;  %v2859_v55 = vld [vmem:[%s5350_s2] sm:$0xff] }
 0x437   :  { %v3066_v44 = vpack.i.bf16 %v5093_v15, %v5091_v60  ;;  %2100 = vmatmul.f32.gmra.mxu2 %v5095_v36  ;;  %v5110_v41 = vpop.eup %3293 }
 0x438   :  { %v3021_v14 = vpack.i.bf16 %v1233_v49, %v1232_v48  ;;  %v3296_v1 = vpop.eup %3295 }
 0x439   :  { %v3298_v57 = vpop.eup %3297  ;;  %v1683_v29 = vmul.f32 %v3296_v1, %v5050_v18 }
 0x43a   :  { %v1916_v61 = vpop.xlane.xlu1 %1915  ;;  %v3300_v9 = vpop.eup %3299  ;;  %v1682_v63 = vmul.f32 %v3298_v57, %v5040_v7 }
 0x43b   :  { %v5105_v31 = vpop.f32.mrf.mxu2  ;;  %v1932_v25 = vsub.f32 %v4982_v17, %v1916_v61  ;;  %v1970_v18 = vpop.xlane.xlu0 %1969 }
 0x43c   :  { %3022 = vrot.lane.b32.xlu1 %v3021_v14, %s3414_s23  ;;  %v1648_v23 = vpop.f32.mrf.mxu0  ;;  %v3302_v17 = vpop.eup %3301  ;;  %v3026_v53 = vpack.i.bf16 %v1683_v29, %v1682_v63 }
 0x43d   :  { %v1963_v42 = vmul.f32 1.442695, %v1932_v25  ;;  %v5119_v14 = vmul.f32 %v3300_v9, %v1648_v23 }
 0x43f   :  { %3303 = vpow2.f32 %v1963_v42  ;;  %2103 = vmatmul.f32.gmra.mxu2 %v5110_v41 }
 0x440   :  { %3305 = vrcp.f32 %v4826_v52 }
 0x441   :  { %3307 = vrcp.f32 %v4844_v22 }
 0x442   :  { %3309 = vrcp.f32 %v5059_v27 }
 0x443   :  { %v5114_v49 = vpop.f32.mrf.mxu2  ;;  %3311 = vrcp.f32 %v5046_v3 }
 0x444   :  { %1077 = vadd.xlane.f32.xlu0 %v4965_v35  ;;  %v1651_v21 = vpop.f32.mrf.mxu0  ;;  %3313 = vrcp.f32 %v1970_v18 }
 0x445   :  { %v3304_v48 = vpop.eup %3303  ;;  %v5121_v61 = vmul.f32 %v3302_v17, %v1651_v21  ;;  %3315 = vrcp.f32 %v4868_v34 }
 0x446   :  { %v3306_v7 = vpop.eup %3305  ;;  %3317 = vrcp.f32 %v4872_v13 }
 0x447   :  { %v3081_v25 = vpack.i.bf16 %v5121_v61, %v5119_v14  ;;  %2106 = vmatmul.f32.gmra.mxu2 %v3304_v48  ;;  %v3308_v35 = vpop.eup %3307  ;;  %v762_v23 = vmul.f32 %v3306_v7, %v4799_v62 }
 0x448   :  { %3027 = vrot.lane.b32.xlu2 %v3026_v53, %s3415_s0  ;;  %v763_v1 = vmul.f32 %v3308_v35, %v4819_v43  ;;  %v3310_v63 = vpop.eup %3309 }
 0x449   :  { %v3312_v62 = vpop.eup %3311 }
 0x44a   :  { %v3314_v53 = vpop.eup %3313  ;;  %v1684_v43 = vmul.f32 %v3312_v62, %v5063_v10 }
 0x44b   :  { %v5127_v42 = vpop.f32.mrf.mxu2 }
 0x44c   :  { %1987 = vadd.xlane.f32.xlu0 %v5074_v37  ;;  %v1685_v37 = vmul.f32 %v3310_v63, %v5072_v8  ;;  %v3316_v8 = vpop.eup %3315 }
 0x44d   :  { %v3318_v18 = vpop.eup %3317  ;;  %v764_v34 = vmul.f32 %v3316_v8, %v4832_v51 }
 0x44e   :  { %v3003_v52 = vpop.permute.xlu0 %3002  ;;  %v765_v62 = vmul.f32 %v3318_v18, %v4847_v24 }
 0x44f   :  { %v3005_v22 = vunpack.i.h.bf16 %v3003_v52  ;;  %v3004_v57 = vunpack.i.l.bf16 %v3003_v52  ;;  %v3036_v52 = vpack.i.bf16 %v1685_v37, %v1684_v43 }
 0x451   :  { %v2337_v29 = vsel %vm405_vm0, %v763_v1, %v3005_v22  ;;  %v2336_v9 = vsel %vm405_vm0, %v762_v23, %v3004_v57 }
 0x453   :  { %v5135_v17 = vpop.f32.mrf.mxu2  ;;  %v1976_v3 = vpop.xlane.xlu1 %1975 }
 0x45a   :  { %v1972_v21 = vpop.xlane.xlu2 %1971 }
 0x45b   :  { %v2068_v7 = vpop.f32.mrf.mxu2  ;;  %3319 = vrcp.f32 %v1972_v21 }
 0x45c   :  { %v5140_v35 = vmul.f32 %v3314_v53, %v2068_v7  ;;  %3321 = vrcp.f32 %v1976_v3 }
 0x460   :  { %3037 = vrot.lane.b32.xlu0 %v3036_v52, %s3415_s0 }
 0x461   :  { %v3320_v23 = vpop.eup %3319 }
 0x462   :  { %v1974_v27 = vpop.xlane.xlu2 %1973 }
 0x463   :  { %3323 = vrcp.f32 %v1974_v27 }
 0x466   :  { %1983 = vadd.xlane.f32.xlu1 %v5052_v6 }
 0x46a   :  { %v3008_v10 = vpop.permute.xlu2 %3007  ;;  %v2071_v1 = vpop.f32.mrf.mxu2 }
 0x46b   :  { %v3010_v22 = vunpack.i.h.bf16 %v3008_v10  ;;  %v3009_v57 = vunpack.i.l.bf16 %v3008_v10  ;;  %v5146_v63 = vmul.f32 %v3320_v23, %v2071_v1  ;;  %v3013_v37 = vpop.permute.xlu1 %3012 }
 0x46c   :  { %v3015_v13 = vunpack.i.h.bf16 %v3013_v37  ;;  %v3014_v53 = vunpack.i.l.bf16 %v3013_v37 }
 0x46d   :  { %v5151_v21 = vsel %vm2350_vm1, %v2336_v9, %v3009_v57  ;;  %v5154_v6 = vsel %vm2350_vm1, %v2337_v29, %v3010_v22  ;;  %v3041_v43 = vpack.i.bf16 %v5146_v63, %v5140_v35  ;;  %v3322_v9 = vpop.eup %3321 }
 0x46e   :  { %v2339_v7 = vsel %vm405_vm0, %v765_v62, %v3015_v13  ;;  %v2338_v52 = vsel %vm405_vm0, %v764_v34, %v3014_v53  ;;  %1543 = vadd.xlane.f32.xlu1 %v4993_v47  ;;  %v3324_v18 = vpop.eup %3323 }
 0x471   :  { %1079 = vadd.xlane.f32.xlu2 %v4973_v59 }
 0x472   :  { %v2074_v51 = vpop.f32.mrf.mxu2 }
 0x473   :  { %v2130_v10 = vmul.f32 %v3324_v18, %v2074_v51 }
 0x476   :  { %1545 = vadd.xlane.f32.xlu1 %v5013_v38 }
 0x479   :  { %1995 = vadd.xlane.f32.xlu2 %v3304_v48  ;;  %v1980_v24 = vpop.xlane.xlu0 %1979  ;;  %v5445_v48 = vpack.i.bf16 %v5048_v32, %v5038_v2 }
 0x47a   :  { %v2077_v29 = vpop.f32.mrf.mxu2 }
 0x47b   :  { %v2131_v8 = vmul.f32 %v3322_v9, %v2077_v29 }
 0x47d   :  { %v3046_v47 = vpack.i.bf16 %v2131_v8, %v2130_v10 }
 0x48a   :  { %1991 = vadd.xlane.f32.xlu0 %v5095_v36  ;;  %v2080_v36 = vpop.f32.mrf.mxu2 }
 0x48c   :  { %v3018_v23 = vpop.permute.xlu0 %3017 }
 0x48d   :  { %v3020_v1 = vunpack.i.h.bf16 %v3018_v23  ;;  %v3019_v22 = vunpack.i.l.bf16 %v3018_v23 }
 0x48f   :  { %v5165_v59 = vsel %vm2350_vm1, %v2339_v7, %v3020_v1  ;;  %v5168_v38 = vsel %vm2350_vm1, %v2338_v52, %v3019_v22  ;;  %3032 = vrot.lane.b32.xlu1 %v5445_v48, %s3414_s23 }
 0x491   :  { %3047 = vrot.lane.b32.xlu2 %v3046_v47, %s3413_s22 }
 0x492   :  { %1993 = vadd.xlane.f32.xlu0 %v5110_v41  ;;  %v2083_v57 = vpop.f32.mrf.mxu2 }
 0x496   :  { %v1978_v27 = vpop.xlane.xlu1 %1977 }
 0x497   :  { %3325 = vrcp.f32 %v1978_v27 }
 0x498   :  { %3327 = vrcp.f32 %v1980_v24 }
 0x499   :  { %3329 = vrcp.f32 %v4870_v0 }
 0x49a   :  { %3331 = vrcp.f32 %v4892_v45 }
 0x49d   :  { %v3326_v3 = vpop.eup %3325 }
 0x49e   :  { %v2132_v37 = vmul.f32 %v3326_v3, %v2080_v36  ;;  %v3328_v34 = vpop.eup %3327 }
 0x49f   :  { %v2133_v62 = vmul.f32 %v3328_v34, %v2083_v57  ;;  %v3330_v2 = vpop.eup %3329 }
 0x4a0   :  { %v3332_v32 = vpop.eup %3331  ;;  %v766_v52 = vmul.f32 %v3330_v2, %v4860_v40  ;;  %v2086_v40 = vpop.f32.mrf.mxu2 }
 0x4a1   :  { %v3051_v53 = vpack.i.bf16 %v2133_v62, %v2132_v37  ;;  %v767_v51 = vmul.f32 %v3332_v32, %v4880_v56 }
 0x4a3   :  { %v1982_v13 = vpop.xlane.xlu2 %1981 }
 0x4a4   :  { %3333 = vrcp.f32 %v1982_v13 }
 0x4a6   :  { %3052 = vrot.lane.b32.xlu0 %v3051_v53, %s3413_s22 }
 0x4a8   :  { %v2089_v22 = vpop.f32.mrf.mxu2 }
 0x4aa   :  { %v3334_v10 = vpop.eup %3333 }
 0x4ab   :  { %v3028_v41 = vpop.permute.xlu2 %3027  ;;  %v2134_v47 = vmul.f32 %v3334_v10, %v2086_v40  ;;  %v2863_v40 = vld [vmem:[%s5350_s2 + $0x20] sm:$0xff] }
 0x4ac   :  { %v3030_v9 = vunpack.i.h.bf16 %v3028_v41  ;;  %v3029_v8 = vunpack.i.l.bf16 %v3028_v41 }
 0x4ae   :  { %v3023_v7 = vpop.permute.xlu1 %3022 }
 0x4af   :  { %v3025_v24 = vunpack.i.h.bf16 %v3023_v7  ;;  %v3024_v29 = vunpack.i.l.bf16 %v3023_v7 }
 0x4b1   :  { %v2341_v18 = vsel %vm405_vm0, %v767_v51, %v3025_v24  ;;  %v2340_v0 = vsel %vm405_vm0, %v766_v52, %v3024_v29  ;;  %v2866_v29 = vld [vmem:[%s5350_s2 + $0x38] sm:$0xff] }
 0x4b2   :  { %v5184_v45 = vsel %vm2350_vm1, %v2340_v0, %v3029_v8  ;;  %v5187_v23 = vsel %vm2350_vm1, %v2341_v18, %v3030_v9  ;;  %2867 = vmatpush.bf16.msra.mxu3 %v2866_v29  ;;  %2456 = vmatpush.bf16.msrb.mxu0 %v2866_v29  ;;  %v2864_v0 = vld [vmem:[%s5350_s2 + $0x28] sm:$0xff] }
 0x4b9   :  { %1985 = vadd.xlane.f32.xlu1 %v5065_v12 }
 0x4c1   :  { %1989 = vadd.xlane.f32.xlu1 %v5083_v33  ;;  %v1078_v33 = vpop.xlane.xlu0 %1077 }
 0x4c9   :  { %1515 = vadd.xlane.f32.xlu1 %v4829_v30  ;;  %v1988_v57 = vpop.xlane.xlu0 %1987 }
 0x4d0   :  { %1517 = vadd.xlane.f32.xlu0 %v4836_v11 }
 0x4d9   :  { %v1984_v56 = vpop.xlane.xlu1 %1983 }
 0x4da   :  { %3335 = vrcp.f32 %v1984_v56  ;;  %v2862_v56 = vld [vmem:[%s5350_s2 + $0x18] sm:$0xff] }
 0x4e0   :  { %v3336_v1 = vpop.eup %3335 }
 0x4e1   :  { %v2135_v48 = vmul.f32 %v3336_v1, %v2089_v22  ;;  %v5209_v36 = vpop.xlane.xlu1 %1543  ;;  %v2861_v1 = vld [vmem:[%s5350_s2 + $0x10] sm:$0xff] }
 0x4e2   :  { %3042 = vrot.lane.b32.xlu1 %v3041_v43, %s3413_s22 }
 0x4e3   :  { %v3056_v12 = vpack.i.bf16 %v2135_v48, %v2134_v47  ;;  %v1654_v47 = vpop.f32.mrf.mxu0 }
 0x4e4   :  { %3067 = vrot.lane.b32.xlu0 %v3066_v44, %s3415_s0  ;;  %v1080_v30 = vpop.xlane.xlu2 %1079 }
 0x4e5   :  { %3057 = vrot.lane.b32.xlu2 %v3056_v12, %s3413_s22  ;;  %3337 = vrcp.f32 %v1080_v30 }
 0x4e6   :  { %3339 = vrcp.f32 %v1078_v33 }
 0x4e7   :  { %3341 = vrcp.f32 %v4896_v54 }
 0x4e8   :  { %3343 = vrcp.f32 %v4908_v5 }
 0x4e9   :  { %3345 = vrcp.f32 %v1988_v57 }
 0x4eb   :  { %v3338_v11 = vpop.eup %3337 }
 0x4ec   :  { %3082 = vrot.lane.b32.xlu0 %v3081_v25, %s3415_s0  ;;  %v5206_v35 = vpop.xlane.xlu2 %1995  ;;  %v3340_v63 = vpop.eup %3339  ;;  %v1241_v43 = vmul.f32 %v3338_v11, %v5114_v49  ;;  %v5446_v25 = vpack.i.bf16 %v5003_v16, %v5001_v19 }
 0x4ed   :  { %v1240_v60 = vmul.f32 %v3340_v63, %v5105_v31  ;;  %v1546_v49 = vpop.xlane.xlu1 %1545  ;;  %v3342_v37 = vpop.eup %3341 }
 0x4ee   :  { %v3344_v34 = vpop.eup %3343 }
 0x4ef   :  { %v3091_v15 = vpack.i.bf16 %v1241_v43, %v1240_v60  ;;  %v768_v13 = vmul.f32 %v3344_v34, %v4889_v50  ;;  %v3346_v22 = vpop.eup %3345  ;;  %v1657_v43 = vpop.f32.mrf.mxu0 }
 0x4f4   :  { %3092 = vrot.lane.b32.xlu0 %v3091_v15, %s3414_s23  ;;  %v3048_v44 = vpop.permute.xlu2 %3047 }
 0x4f5   :  { %v3050_v27 = vunpack.i.h.bf16 %v3048_v44  ;;  %v3049_v3 = vunpack.i.l.bf16 %v3048_v44 }
 0x4f7   :  { %v5215_v14 = vsel %vm2367_vm2, %v5168_v38, %v3049_v3  ;;  %v5219_v61 = vsel %vm2367_vm2, %v5165_v59, %v3050_v27  ;;  %v3038_v38 = vpop.permute.xlu0 %3037  ;;  %v769_v59 = vmul.f32 %v3342_v37, %v4898_v20  ;;  %v2092_v20 = vpop.f32.mrf.mxu2 }
 0x4f8   :  { %v2386_v31 = vpack.c.bf16 %v5219_v61, %v5215_v14  ;;  %v3040_v2 = vunpack.i.h.bf16 %v3038_v38  ;;  %v3039_v32 = vunpack.i.l.bf16 %v3038_v38  ;;  %v5450_v14 = vld [vmem:[#allocation14_spill] sm:$0xff]  ;;  %v5451_v61 = vld [vmem:[#allocation13_spill] sm:$0xff] }
 0x4fc   :  { %3107 = vrot.lane.b32.xlu0 %v5446_v25, %s3414_s23 }
 0x4ff   :  { %v1992_v16 = vpop.xlane.xlu0 %1991  ;;  %v2095_v9 = vpop.f32.mrf.mxu2 }
 0x500   :  { %v2137_v12 = vmul.f32 %v3346_v22, %v2095_v9 }
 0x501   :  { %v3033_v62 = vpop.permute.xlu1 %3032 }
 0x502   :  { %v3035_v54 = vunpack.i.h.bf16 %v3033_v62  ;;  %v3034_v53 = vunpack.i.l.bf16 %v3033_v62 }
 0x504   :  { %v2343_v5 = vsel %vm405_vm0, %v769_v59, %v3035_v54  ;;  %v2342_v41 = vsel %vm405_vm0, %v768_v13, %v3034_v53 }
 0x505   :  { %v5234_v7 = vsel %vm2350_vm1, %v2342_v41, %v3039_v32  ;;  %v5237_v19 = vsel %vm2350_vm1, %v2343_v5, %v3040_v2 }
 0x507   :  { %v1994_v50 = vpop.xlane.xlu0 %1993 }
 0x50c   :  { %1967 = vadd.xlane.f32.xlu1 %v4996_v4  ;;  %v2865_v4 = vld [vmem:[%s5350_s2 + $0x30] sm:$0xff] }
 0x50d   :  { %2868 = vmatpush.bf16.msra.mxu3 %v2865_v4  ;;  %2457 = vmatpush.bf16.msrb.mxu0 %v2865_v4 }
 0x50e   :  { %1965 = vadd.xlane.f32.xlu2 %v4987_v28 }
 0x511   :  { %2869 = vmatpush.bf16.msra.mxu3 %v2864_v0  ;;  %2458 = vmatpush.bf16.msrb.mxu0 %v2864_v0 }
 0x515   :  { %2870 = vmatpush.bf16.msra.mxu3 %v2863_v40  ;;  %2459 = vmatpush.bf16.msrb.mxu0 %v2863_v40 }
 0x518   :  { %v3053_v52 = vpop.permute.xlu0 %3052 }
 0x519   :  { %v3055_v51 = vunpack.i.h.bf16 %v3053_v52  ;;  %v3054_v24 = vunpack.i.l.bf16 %v3053_v52  ;;  %2871 = vmatpush.bf16.msra.mxu3 %v2862_v56  ;;  %2460 = vmatpush.bf16.msrb.mxu0 %v2862_v56 }
 0x51b   :  { %v5246_v8 = vsel %vm2367_vm2, %v5184_v45, %v3054_v24  ;;  %v5250_v18 = vsel %vm2367_vm2, %v5187_v23, %v3055_v51  ;;  %v2098_v45 = vpop.f32.mrf.mxu2  ;;  %v5447_v23 = vpack.i.bf16 %v5070_v39, %v5061_v46  ;;  %v2860_v39 = vld [vmem:[%s5350_s2 + $0x8] sm:$0xff]  ;;  %s3416_s2 = smov [#allocation2]  }
 0x51c   :  { %v2387_v28 = vpack.c.bf16 %v5250_v18, %v5246_v8  ;;  %v5449_v51 = vld [vmem:[#allocation30_spill] sm:$0xff] }
 0x51d   :  { %2872 = vmatpush.bf16.msra.mxu3 %v2861_v1  ;;  %2461 = vmatpush.bf16.msrb.mxu0 %v2861_v1 }
 0x521   :  { %2873 = vmatpush.bf16.msra.mxu3 %v2860_v39  ;;  %2462 = vmatpush.bf16.msrb.mxu0 %v2860_v39  ;;  %v5452_v39 = vld [vmem:[#allocation23_spill] sm:$0xff] }
 0x523   :  { %v2101_v46 = vpop.f32.mrf.mxu2 }
 0x525   :  { %3062 = vrot.lane.b32.xlu1 %v5447_v23, %s3414_s23  ;;  %2874 = vmatpush.bf16.msra.mxu3 %v2859_v55 }
 0x526   :  { %2463 = vmatpush.bf16.msrb.mxu0 %v2859_v55 }
 0x52c   :  { %v1986_v10 = vpop.xlane.xlu1 %1985 }
 0x52d   :  { %3347 = vrcp.f32 %v1986_v10  ;;  %3077 = vrot.lane.b32.xlu1 %v3076_v26, %s3414_s23 }
 0x52e   :  { %3349 = vrcp.f32 %v1546_v49 }
 0x52f   :  { %3351 = vrcp.f32 %v5209_v36  ;;  %v2104_v36 = vpop.f32.mrf.mxu2 }
 0x530   :  { %3353 = vrcp.f32 %v1992_v16 }
 0x533   :  { %v3348_v48 = vpop.eup %3347 }
 0x534   :  { %v2136_v33 = vmul.f32 %v3348_v48, %v2092_v20  ;;  %v1990_v30 = vpop.xlane.xlu1 %1989  ;;  %v3350_v26 = vpop.eup %3349  ;;  %v5448_v20 = vld [vmem:[#allocation5_spill] sm:$0xff] }
 0x535   :  { %3355 = vrcp.f32 %v1990_v30  ;;  %v3352_v11 = vpop.eup %3351  ;;  %v1691_v60 = vmul.f32 %v3350_v26, %v1657_v43 }
 0x536   :  { %v3071_v58 = vpack.i.bf16 %v2137_v12, %v2136_v33  ;;  %v3354_v63 = vpop.eup %3353  ;;  %3357 = vrcp.f32 %v1994_v50  ;;  %v1690_v44 = vmul.f32 %v3352_v11, %v1654_v47  ;;  %v5453_v47 = vld [vmem:[#allocation16_spill] sm:$0xff] }
 0x537   :  { %3359 = vrcp.f32 %v5206_v35  ;;  %v2139_v27 = vmul.f32 %v3354_v63, %v2101_v46  ;;  %v2107_v53 = vpop.f32.mrf.mxu2 }
 0x538   :  { %3072 = vrot.lane.b32.xlu2 %v3071_v58, %s3413_s22  ;;  %v3096_v57 = vpack.i.bf16 %v1691_v60, %v1690_v44 }
 0x53b   :  { %v3356_v15 = vpop.eup %3355 }
 0x53c   :  { %v2138_v3 = vmul.f32 %v3356_v15, %v2098_v45  ;;  %v3358_v25 = vpop.eup %3357  ;;  %v1516_v37 = vpop.xlane.xlu1 %1515 }
 0x53d   :  { %v3360_v59 = vpop.eup %3359  ;;  %v2140_v13 = vmul.f32 %v3358_v25, %v2104_v36  ;;  %3361 = vrcp.f32 %v1516_v37  ;;  %v5455_v25 = vld [vmem:[#allocation12_spill] sm:$0xff] }
 0x53e   :  { %v3086_v49 = vpack.i.bf16 %v2139_v27, %v2138_v3  ;;  %v2141_v5 = vmul.f32 %v3360_v59, %v2107_v53 }
 0x53f   :  { %v3058_v38 = vpop.permute.xlu2 %3057 }
 0x540   :  { %v3060_v34 = vunpack.i.h.bf16 %v3058_v38  ;;  %v3059_v62 = vunpack.i.l.bf16 %v3058_v38  ;;  %3097 = vrot.lane.b32.xlu2 %v3096_v57, %s3415_s0  ;;  %3087 = vrot.lane.b32.xlu1 %v3086_v49, %s3413_s22  ;;  %v3101_v41 = vpack.i.bf16 %v2141_v5, %v2140_v13  ;;  %v5454_v57 = vld [vmem:[#allocation21_spill] sm:$0xff] }
 0x542   :  { %v2376_v35 = vsel %vm2367_vm2, %v5234_v7, %v3059_v62  ;;  %v2377_v54 = vsel %vm2367_vm2, %v5237_v19, %v3060_v34 }
 0x543   :  { %v1518_v2 = vpop.xlane.xlu0 %1517  ;;  %v2388_v32 = vpack.c.bf16 %v2377_v54, %v2376_v35  ;;  %v3362_v16 = vpop.eup %3361 }
 0x544   :  { %3363 = vrcp.f32 %v1518_v2  ;;  %v1676_v52 = vmul.f32 %v3362_v16, %v5448_v20 }
 0x548   :  { %3102 = vrot.lane.b32.xlu1 %v3101_v41, %s3413_s22 }
 0x54a   :  { %v3364_v50 = vpop.eup %3363 }
 0x54b   :  { %v1677_v24 = vmul.f32 %v3364_v50, %v5449_v51 }
 0x54d   :  { %v3111_v29 = vpack.i.bf16 %v1677_v24, %v1676_v52  ;;  %v5456_v24 = vld [vmem:[#allocation18_spill] sm:$0xff] }
 0x54f   :  { %3112 = vrot.lane.b32.xlu2 %v3111_v29, %s3415_s0 }
 0x554   :  { %v3043_v7 = vpop.permute.xlu1 %3042 }
 0x555   :  { %v3045_v9 = vunpack.i.h.bf16 %v3043_v7  ;;  %v3044_v19 = vunpack.i.l.bf16 %v3043_v7  ;;  %v5457_v7 = vld [vmem:[#allocation10_spill] sm:$0xff] }
 0x556   :  { %v3068_v18 = vpop.permute.xlu0 %3067 }
 0x557   :  { %v2370_v4 = vsel %vm2367_vm2, %v5151_v21, %v3044_v19  ;;  %v2371_v0 = vsel %vm2367_vm2, %v5154_v6, %v3045_v9  ;;  %v3069_v33 = vunpack.i.l.bf16 %v3068_v18 }
 0x558   :  { %v2385_v45 = vpack.c.bf16 %v2371_v0, %v2370_v4 }
 0x55a   :  { %2469 = vmatmul.bf16.vlgmr.msra.gmra.mxu3 %v2385_v45 }
 0x55e   :  { %v3083_v15 = vpop.permute.xlu0 %3082 }
 0x55f   :  { %v3085_v38 = vunpack.i.h.bf16 %v3083_v15  ;;  %v3084_v34 = vunpack.i.l.bf16 %v3083_v15 }
 0x566   :  { %v3093_v35 = vpop.permute.xlu0 %3092 }
 0x567   :  { %v3095_v16 = vunpack.i.h.bf16 %v3093_v35  ;;  %v3094_v50 = vunpack.i.l.bf16 %v3093_v35 }
 0x569   :  { %v2349_v29 = vsel %vm405_vm0, %v5456_v24, %v3095_v16  ;;  %v2348_v9 = vsel %vm405_vm0, %v5457_v7, %v3094_v50 }
 0x56a   :  { %2474 = vmatmul.bf16.gmra.mxu3 %v2386_v31 }
 0x57a   :  { %2479 = vmatmul.bf16.gmra.mxu3 %v2387_v28 }
 0x57f   :  { %v1968_v23 = vpop.xlane.xlu1 %1967 }
 0x580   :  { %3365 = vrcp.f32 %v1968_v23 }
 0x581   :  { %v1966_v40 = vpop.xlane.xlu2 %1965 }
 0x582   :  { %3367 = vrcp.f32 %v1966_v40 }
 0x583   :  { %3369 = vrcp.f32 %v5450_v14  ;;  %v5459_v14 = vld [vmem:[#allocation24_spill] sm:$0xff] }
 0x584   :  { %3371 = vrcp.f32 %v5451_v61 }
 0x586   :  { %v3366_v56 = vpop.eup %3365 }
 0x587   :  { %v2127_v21 = vmul.f32 %v3366_v56, %v5135_v17 }
 0x588   :  { %v3368_v10 = vpop.eup %3367 }
 0x589   :  { %v2126_v6 = vmul.f32 %v3368_v10, %v5127_v42  ;;  %v3370_v31 = vpop.eup %3369  ;;  %v3070_v42 = vunpack.i.h.bf16 %v3068_v18 }
 0x58a   :  { %2484 = vmatmul.bf16.gmra.mxu3 %v2388_v32  ;;  %v3372_v8 = vpop.eup %3371  ;;  %v770_v22 = vmul.f32 %v3370_v31, %v5452_v39  ;;  %v3108_v31 = vpop.permute.xlu0 %3107 }
 0x58b   :  { %v3116_v1 = vpack.i.bf16 %v2127_v21, %v2126_v6  ;;  %v771_v48 = vmul.f32 %v3372_v8, %v5453_v47  ;;  %v3109_v39 = vunpack.i.l.bf16 %v3108_v31 }
 0x58d   :  { %3117 = vrot.lane.b32.xlu1 %v3116_v1, %s3413_s22  ;;  %v5458_v1 = vld [vmem:[#allocation15_spill] sm:$0xff]  ;;  %s2525_s22 = sshll.u32 %s3416_s2, 4  ;;  %s2526_s22 = int_to_ptr.vmem [resolvable:$true] %s2525_s22 }
 0x58e   :  { %3373 = vrcp.f32 %v5458_v1 }
 0x58f   :  { %3375 = vrcp.f32 %v5459_v14 }
 0x592   :  { %v3073_v28 = vpop.permute.xlu2 %3072 }
 0x593   :  { %v3075_v30 = vunpack.i.h.bf16 %v3073_v28  ;;  %v3074_v58 = vunpack.i.l.bf16 %v3073_v28 }
 0x594   :  { %v3374_v8 = vpop.eup %3373 }
 0x595   :  { %v3376_v28 = vpop.eup %3375 }
 0x597   :  { %v3063_v46 = vpop.permute.xlu1 %3062 }
 0x598   :  { %v3065_v17 = vunpack.i.h.bf16 %v3063_v46  ;;  %v3064_v12 = vunpack.i.l.bf16 %v3063_v46  ;;  %v3110_v46 = vunpack.i.h.bf16 %v3108_v31 }
 0x59a   :  { %v2345_v55 = vsel %vm405_vm0, %v771_v48, %v3065_v17  ;;  %v2344_v26 = vsel %vm405_vm0, %v770_v22, %v3064_v12  ;;  %v3098_v2 = vpop.permute.xlu2 %3097  ;;  %v5460_v17 = vld [vmem:[#allocation25_spill] sm:$0xff] }
 0x59b   :  { %v2361_v11 = vsel %vm2350_vm1, %v2344_v26, %v3069_v33  ;;  %v2362_v63 = vsel %vm2350_vm1, %v2345_v55, %v3070_v42  ;;  %v3100_v20 = vunpack.i.h.bf16 %v3098_v2  ;;  %v3099_v52 = vunpack.i.l.bf16 %v3098_v2  ;;  %v5461_v42 = vld [vmem:[#allocation17_spill] sm:$0xff] }
 0x59c   :  { %v2378_v43 = vsel %vm2367_vm2, %v2361_v11, %v3074_v58  ;;  %v2379_v36 = vsel %vm2367_vm2, %v2362_v63, %v3075_v30  ;;  %v760_v12 = vmul.f32 %v3374_v8, %v5460_v17  ;;  %v761_v33 = vmul.f32 %v3376_v28, %v5461_v42 }
 0x59d   :  { %v2389_v60 = vpack.c.bf16 %v2379_v36, %v2378_v43  ;;  %v2365_v0 = vsel %vm2350_vm1, %v2348_v9, %v3099_v52  ;;  %v2366_v45 = vsel %vm2350_vm1, %v2349_v29, %v3100_v20 }
 0x59e   :  { %v2335_v58 = vsel %vm405_vm0, %v761_v33, %v3110_v46  ;;  %v2334_v55 = vsel %vm405_vm0, %v760_v12, %v3109_v39 }
 0x59f   :  { %2489 = vmatmul.bf16.gmra.mxu3 %v2389_v60  ;;  %v3078_v44 = vpop.permute.xlu1 %3077 }
 0x5a0   :  { %v3080_v27 = vunpack.i.h.bf16 %v3078_v44  ;;  %v3079_v3 = vunpack.i.l.bf16 %v3078_v44 }
 0x5a2   :  { %v2347_v49 = vsel %vm405_vm0, %v5454_v57, %v3080_v27  ;;  %v2346_v37 = vsel %vm405_vm0, %v5455_v25, %v3079_v3 }
 0x5a3   :  { %v2363_v54 = vsel %vm2350_vm1, %v2346_v37, %v3084_v34  ;;  %v2364_v53 = vsel %vm2350_vm1, %v2347_v49, %v3085_v38 }
 0x5a9   :  { %v3113_v18 = vpop.permute.xlu2 %3112 }
 0x5aa   :  { %v3115_v22 = vunpack.i.h.bf16 %v3113_v18  ;;  %v3114_v47 = vunpack.i.l.bf16 %v3113_v18 }
 0x5ac   :  { %v2351_v63 = vsel %vm2350_vm1, %v2334_v55, %v3114_v47  ;;  %v2352_v43 = vsel %vm2350_vm1, %v2335_v58, %v3115_v22 }
 0x5b2   :  { %v3088_v62 = vpop.permute.xlu1 %3087 }
 0x5b3   :  { %v3090_v59 = vunpack.i.h.bf16 %v3088_v62  ;;  %v3089_v13 = vunpack.i.l.bf16 %v3088_v62 }
 0x5b5   :  { %v2380_v32 = vsel %vm2367_vm2, %v2363_v54, %v3089_v13  ;;  %v2381_v5 = vsel %vm2367_vm2, %v2364_v53, %v3090_v59 }
 0x5b6   :  { %v2390_v41 = vpack.c.bf16 %v2381_v5, %v2380_v32 }
 0x5b8   :  { %2494 = vmatmul.bf16.gmra.mxu3 %v2390_v41 }
 0x5ba   :  { %v3103_v51 = vpop.permute.xlu1 %3102 }
 0x5bb   :  { %v3105_v19 = vunpack.i.h.bf16 %v3103_v51  ;;  %v3104_v4 = vunpack.i.l.bf16 %v3103_v51 }
 0x5bd   :  { %v2382_v23 = vsel %vm2367_vm2, %v2365_v0, %v3104_v4  ;;  %v2383_v40 = vsel %vm2367_vm2, %v2366_v45, %v3105_v19 }
 0x5be   :  { %v2391_v56 = vpack.c.bf16 %v2383_v40, %v2382_v23 }
 0x5c8   :  { %2499 = vmatmul.bf16.gmra.mxu3 %v2391_v56 }
 0x5dd   :  { %v2470_v10 = vpop.f32.mrf.mxu3 }
 0x5de   :  { %2507 = vst [vmem:[#allocation2 + $0x10] sm:$0xff] %v2470_v10 }
 0x5e5   :  { %v2472_v21 = vpop.f32.mrf.mxu3 }
 0x5e6   :  { %2508 = vst [vmem:[#allocation2 + $0x18] sm:$0xff] %v2472_v21 }
 0x5ed   :  { %v2475_v6 = vpop.f32.mrf.mxu3 }
 0x5ee   :  { %2509 = vst [vmem:[#allocation2 + $0x20] sm:$0xff] %v2475_v6 }
 0x5f5   :  { %v2477_v61 = vpop.f32.mrf.mxu3 }
 0x5f6   :  { %2510 = vst [vmem:[#allocation2 + $0x28] sm:$0xff] %v2477_v61 }
 0x5fd   :  { %v2480_v48 = vpop.f32.mrf.mxu3 }
 0x5fe   :  { %2511 = vst [vmem:[#allocation2 + $0x30] sm:$0xff] %v2480_v48 }
 0x5ff   :  { %v3118_v30 = vpop.permute.xlu1 %3117 }
 0x600   :  { %v3120_v26 = vunpack.i.h.bf16 %v3118_v30  ;;  %v3119_v11 = vunpack.i.l.bf16 %v3118_v30 }
 0x602   :  { %v2368_v36 = vsel %vm2367_vm2, %v2351_v63, %v3119_v11  ;;  %v2369_v60 = vsel %vm2367_vm2, %v2352_v43, %v3120_v26 }
 0x603   :  { %v2384_v15 = vpack.c.bf16 %v2369_v60, %v2368_v36 }
 0x605   :  { %2464 = vmatmul.bf16.vlgmr.msrb.gmra.mxu0 %v2384_v15  ;;  %v2482_v44 = vpop.f32.mrf.mxu3 }
 0x606   :  { %2512 = vst [vmem:[#allocation2 + $0x38] sm:$0xff] %v2482_v44 }
 0x60d   :  { %v2485_v27 = vpop.f32.mrf.mxu3 }
 0x60e   :  { %2513 = vst [vmem:[#allocation2 + $0x40] sm:$0xff] %v2485_v27 }
 0x615   :  { %v2487_v3 = vpop.f32.mrf.mxu3 }
 0x616   :  { %2514 = vst [vmem:[#allocation2 + $0x48] sm:$0xff] %v2487_v3 }
 0x622   :  { %v2490_v57 = vpop.f32.mrf.mxu3 }
 0x623   :  { %2515 = vst [vmem:[#allocation2 + $0x50] sm:$0xff] %v2490_v57 }
 0x62a   :  { %v2492_v49 = vpop.f32.mrf.mxu3 }
 0x62b   :  { %2516 = vst [vmem:[#allocation2 + $0x58] sm:$0xff] %v2492_v49 }
 0x63b   :  { %v2495_v25 = vpop.f32.mrf.mxu3 }
 0x63c   :  { %2517 = vst [vmem:[#allocation2 + $0x60] sm:$0xff] %v2495_v25 }
 0x643   :  { %v2497_v37 = vpop.f32.mrf.mxu3 }
 0x644   :  { %2518 = vst [vmem:[#allocation2 + $0x68] sm:$0xff] %v2497_v37 }
 0x64b   :  { %v2500_v38 = vpop.f32.mrf.mxu3 }
 0x64c   :  { %2519 = vst [vmem:[#allocation2 + $0x70] sm:$0xff] %v2500_v38 }
 0x653   :  { %v2502_v34 = vpop.f32.mrf.mxu3 }
 0x654   :  { %2520 = vst [vmem:[#allocation2 + $0x78] sm:$0xff] %v2502_v34 }
 0x682   :  { %v2465_v62 = vpop.f32.mrf.mxu0 }
 0x683   :  { %2505 = vst [vmem:[#allocation2] sm:$0xff] %v2465_v62 }
 0x68a   :  { %v2467_v59 = vpop.f32.mrf.mxu0 }
 0x68b   :  { %2506 = vst [vmem:[#allocation2 + $0x8] sm:$0xff] %v2467_v59 }
 0x68c   :  { %2533 = dma.vmem_to_hbm [thread:$0]  %s2526_s22, 2048, %s2528_s14, [#allocation3], %s3417_s15, %s3417_s15, %s3418_s16  }
 0x68d   :  { %3411 = dma.done.wait [#allocation3], 2048  }
 0x68e   :  { %3412 = vsyncadd [#allocation3], 4294965248 }
 0x68f   :  { %2538 = vsyncpa [#allocation3], 1 }

</bundles_post_ra>
